<compile_context>
chip_gen: v5e
topology: v5e:2x2
jax: 0.10.0
libtpu: 0.0.40
codegen_flags: <defaults>
</compile_context>

<pallas_src>
import jax
import jax.numpy as jnp
import numpy as np
from jax.experimental import pallas as pl
from jax.experimental.pallas import tpu as pltpu


# ----------------------------------------------------------------------------
# Kernel 1: per-edge compute on a (tile_e, 2*Dn+De) gathered+concatenated tile
#   outputs one lane-dense (tile_e, Da+De) block = [xx | gcn_edge]
# ----------------------------------------------------------------------------
def make_edge_kernel(num_heads):
    H = num_heads

    def edge_kernel(cat_ref,
                    w1_ref, b1_ref, w2_ref, b2_ref,
                    wqev_ref, bqev_ref,
                    a1_ref, a1b_ref, a2_ref, a2b_ref,
                    out_ref):
        f32 = jnp.float32
        cat = cat_ref[...]                                   # (T, 2*Dn+De)

        # nn_edge: Linear(2Dn+De -> Dn+De) + ReLU + Linear(-> De); the final ReLU
        # comes from MMG_single (depth == 1).  Dropout is identity in eval.
        h1 = jnp.maximum(
            jnp.dot(cat, w1_ref[...], preferred_element_type=f32) + b1_ref[...], 0.0)
        ge = jnp.maximum(
            jnp.dot(h1, w2_ref[...], preferred_element_type=f32) + b2_ref[...], 0.0)

        # Fused q | edge | value projection (block-diagonal weight, head-major
        # output channels) — one MXU push instead of three tiny ones.
        pv = jnp.dot(cat, wqev_ref[...], preferred_element_type=f32) + bqev_ref[...]
        d_qe = a1_ref.shape[0]                               # Dn + De
        d_at = a2_ref.shape[1]                               # Da (head-major)
        d_o = d_at // H
        qe = pv[:, :d_qe]                                    # [q_hm | ed_hm]
        value = pv[:, d_qe:d_qe + d_at]                      # head-major value

        # Attention MLP (per-head Conv1d k=1) expanded to head-major flat channels.
        ah = jnp.maximum(
            jnp.dot(qe, a1_ref[...], preferred_element_type=f32) + a1b_ref[...], 0.0)
        logits = jnp.dot(ah, a2_ref[...], preferred_element_type=f32) + a2b_ref[...]

        # Per-head softmax: heads are contiguous d_o-wide lane groups, so no
        # iota/mask passes are needed; denominator via EUP approx reciprocal.
        parts = []
        for h in range(H):
            sl = logits[:, h * d_o:(h + 1) * d_o]
            m = jnp.max(sl, axis=-1, keepdims=True)
            e = jnp.exp(sl - m)
            s = jnp.sum(e, axis=-1, keepdims=True)
            parts.append(e * pl.reciprocal(s, approx=True))
        prob = jnp.concatenate(parts, axis=-1)

        xx = prob * value                                    # einsum('bm,bm->bm')
        out_ref[...] = jnp.concatenate([xx, ge], axis=-1)    # lane-dense merged store

    return edge_kernel


# ----------------------------------------------------------------------------
# Kernel 2: sorted-segment scatter-max over edge_index[0]  +  prop MLP + ReLU
#   segment offsets arrive in SMEM via scalar prefetch; each segment is reduced
#   with 8-row vectorized maxes; 8 node rows are assembled in registers and
#   written with a single sublane-dense store.
# ----------------------------------------------------------------------------
def node_kernel(off_ref, xs_ref, x_ref,
                wp1x_ref, wp1a_ref, bp1_ref, wp2_ref, bp2_ref,
                out_ref, agg_ref):
    f32 = jnp.float32
    neg = -3.0e38
    N_pad = x_ref.shape[0]          # multiple of 8 (wrapper pads)
    Da = xs_ref.shape[1]

    def seg_max(node):
        start = off_ref[node]
        cnt = off_ref[node + 1] - start
        nblk = (cnt + 7) // 8

        def per_block(i, acc):
            base = start + i * 8                         # xs has >=8 guard rows
            rows = xs_ref[pl.ds(base, 8), :]             # (8, Da) vector load
            ridx = jax.lax.broadcasted_iota(jnp.int32, (8, Da), 0) + i * 8
            return jnp.maximum(acc, jnp.where(ridx < cnt, rows, neg))

        acc = jax.lax.fori_loop(0, nblk, per_block, jnp.full((8, Da), neg, f32))
        row = jnp.max(acc, axis=0, keepdims=True)
        # torch_scatter: segments with no edges -> 0.  (This would also zero a
        # legitimate value below -1e38; harmless in practice.)
        return jnp.where(row < -1.0e38, 0.0, row)

    def per_node_block(nb, carry):
        base_node = nb * 8
        rows = [seg_max(base_node + j) for j in range(8)]   # unrolled: 8 segments
        agg_ref[pl.ds(pl.multiple_of(base_node, 8), 8), :] = jnp.concatenate(rows, axis=0)
        return carry

    jax.lax.fori_loop(0, N_pad // 8, per_node_block, 0)

    agg = agg_ref[...]
    x = x_ref[...]
    h = jnp.maximum(
        jnp.dot(x, wp1x_ref[...], preferred_element_type=f32)
        + jnp.dot(agg, wp1a_ref[...], preferred_element_type=f32)
        + bp1_ref[...], 0.0)
    out = jnp.dot(h, wp2_ref[...], preferred_element_type=f32) + bp2_ref[...]
    # Final ReLU applied by MMG_single (depth == 1); dropout identity in eval.
    out_ref[...] = jnp.maximum(out, 0.0)


# ----------------------------------------------------------------------------
# Wrapper: gather+concat, weight fusion / head-major permutation, pallas_calls
# ----------------------------------------------------------------------------
def mmg_single_pallas(x, edge_feat, edge_index, params, num_heads, tile_e=256):
    f32 = jnp.float32
    N, Dn = x.shape
    E, De = edge_feat.shape
    Da = params["Wv"].shape[1]
    H = num_heads
    dn, de, do = Dn // H, De // H, Da // H

    src = edge_index[0].astype(jnp.int32)
    dst = edge_index[1].astype(jnp.int32)

    # --- fused gather + concat: one (E_pad, 2*Dn+De) array fed to the edge kernel
    # Gen_Index(flow='target_to_source'): x_i = x[edge_index[0]], x_j = x[edge_index[1]]
    E_pad = pl.cdiv(E, tile_e) * tile_e
    cat = jnp.concatenate(
        [jnp.take(x, src, axis=0), edge_feat, jnp.take(x, dst, axis=0)], axis=1)
    cat = jnp.pad(cat, ((0, E_pad - E), (0, 0)))

    # --- head-major channel permutations (wrapper-side, zero runtime cost) ---
    # PyTorch .view(B, d, H) flattens channels as flat = c*H + h; head-major
    # position k = h*d + c maps to old index (k % d)*H + (k // d).
    def hm_perm(d):
        k = np.arange(d * H)
        return jnp.asarray((k % d) * H + (k // d), dtype=jnp.int32)

    perm_n, perm_e, perm_o = hm_perm(dn), hm_perm(de), hm_perm(do)

    Wq_hm, bq_hm = params["Wq"][:, perm_n], params["bq"][perm_n]
    We_hm, be_hm = params["We"][:, perm_e], params["be"][perm_e]
    Wv_hm, bv_hm = params["Wv"][:, perm_o], params["bv"][perm_o]

    # Fused q|e|v projection: block-diagonal over the [x_i | edge | x_j] blocks.
    Wqev = jnp.zeros((2 * Dn + De, Dn + De + Da), f32)
    Wqev = (Wqev.at[:Dn, :Dn].set(Wq_hm)
                 .at[Dn:Dn + De, Dn:Dn + De].set(We_hm)
                 .at[Dn + De:, Dn + De:].set(Wv_hm))
    bqev = jnp.concatenate([bq_hm, be_hm, bv_hm])

    # Per-head attention MLP expanded to head-major flat channels (block diagonal).
    eye = jnp.eye(H, dtype=f32)
    A1 = params["A1"]
    A1_hm = jnp.concatenate(
        [jnp.kron(eye, A1[:dn]), jnp.kron(eye, A1[dn:])], axis=0)   # (Dn+De, Dn+De)
    a1_hm = jnp.tile(params["a1"], H)
    A2_hm = jnp.kron(eye, params["A2"])                              # (Dn+De, Da)
    a2_hm = jnp.tile(params["a2"], H)

    b2d = lambda v: v[None, :]

    edge_consts = (params["W1"], b2d(params["b1"]),
                   params["W2"], b2d(params["b2"]),
                   Wqev, b2d(bqev),
                   A1_hm, b2d(a1_hm), A2_hm, b2d(a2_hm))

    grid = (E_pad // tile_e,)
    # Constant-index blocks: the Pallas pipeline only issues a DMA when the block
    # index changes, so these 10 weight/bias slabs are fetched once total.
    const_spec = lambda a: pl.BlockSpec(a.shape, lambda i: (0, 0))

    combined = pl.pallas_call(
        make_edge_kernel(H),
        grid=grid,
        in_specs=[pl.BlockSpec((tile_e, 2 * Dn + De), lambda i: (i, 0))]
                 + [const_spec(a) for a in edge_consts],
        out_specs=pl.BlockSpec((tile_e, Da + De), lambda i: (i, 0)),
        out_shape=jax.ShapeDtypeStruct((E_pad, Da + De), f32),
        compiler_params=pltpu.CompilerParams(dimension_semantics=("parallel",)),
    )(cat, *edge_consts)

    xx_pad = combined[:, :Da]       # head-major atten channels, E_pad rows
    ge = combined[:E, Da:]          # gcn edge feature (already ReLU'ed)

    # --- node side: Aggre_Index(aggr='max') via sorted segments + prop MLP ---
    # Padded edge rows get sentinel src == N so they sort after every real
    # segment and are never reduced (offsets only span nodes 0..N_pad-1 with
    # zero counts for padded nodes).
    src_pad = jnp.pad(src, (0, E_pad - E), constant_values=N)
    order = jnp.argsort(src_pad)
    xx_sorted = jnp.take(xx_pad, order, axis=0)
    # +8 guard rows so the 8-row blocked reads in the kernel never run past the end.
    xx_sorted = jnp.concatenate([xx_sorted, jnp.zeros((8, Da), f32)], axis=0)

    # Pad node count to a multiple of 8 so the kernel can do sublane-dense
    # 8-row stores into the aggregate scratch; padded rows are sliced off below.
    N_pad = ((N + 7) // 8) * 8
    x_pad = jnp.pad(x, ((0, N_pad - N), (0, 0)))
    counts = jnp.bincount(src, length=N).astype(jnp.int32)
    counts = jnp.pad(counts, (0, N_pad - N))                 # padded nodes: empty
    offsets = jnp.concatenate(
        [jnp.zeros((1,), jnp.int32), jnp.cumsum(counts).astype(jnp.int32)])

    Wp1 = params["Wp1"]
    Wp1x = Wp1[:Dn]
    Wp1a = Wp1[Dn:][perm_o]         # rows permuted to match head-major xx channels

    node_inputs = (xx_sorted, x_pad, Wp1x, Wp1a, b2d(params["bp1"]),
                   params["Wp2"], b2d(params["bp2"]))
    node_specs = [pl.BlockSpec(a.shape, lambda i, off: (0, 0)) for a in node_inputs]

    out_nodes = pl.pallas_call(
        node_kernel,
        grid_spec=pltpu.PrefetchScalarGridSpec(
            num_scalar_prefetch=1,
            grid=(1,),
            in_specs=node_specs,
            out_specs=pl.BlockSpec((N_pad, Dn), lambda i, off: (0, 0)),
            scratch_shapes=[pltpu.VMEM((N_pad, Da), f32)],
        ),
        out_shape=jax.ShapeDtypeStruct((N_pad, Dn), f32),
        # TODO(synk): for very large N/E, tile the node kernel over edge chunks
        # and shard the prop MLP across v7x's two TensorCores.
        compiler_params=pltpu.CompilerParams(dimension_semantics=("arbitrary",)),
    )(offsets, *node_inputs)

    return out_nodes[:N], ge


# ----------------------------------------------------------------------------
# Pure-JAX reference (mirrors the PyTorch forward exactly, for validation)
# ----------------------------------------------------------------------------
def mmg_single_reference(x, edge_feat, edge_index, params, num_heads):
    hp = jax.lax.Precision.HIGHEST
    N, Dn = x.shape
    E, De = edge_feat.shape
    Da = params["Wv"].shape[1]
    H = num_heads
    dn, de = Dn // H, De // H
    src, dst = edge_index[0], edge_index[1]
    x_i, x_j = x[src], x[dst]

    cat = jnp.concatenate([x_i, edge_feat, x_j], axis=1)
    h = jax.nn.relu(jnp.dot(cat, params["W1"], precision=hp) + params["b1"])
    ge = jnp.dot(h, params["W2"], precision=hp) + params["b2"]

    value = jnp.dot(x_j, params["Wv"], precision=hp) + params["bv"]
    q = (jnp.dot(x_i, params["Wq"], precision=hp) + params["bq"]).reshape(E, dn, H)
    ed = (jnp.dot(edge_feat, params["We"], precision=hp) + params["be"]).reshape(E, de, H)
    cat3 = jnp.concatenate([q, ed], axis=1)
    h3 = jax.nn.relu(jnp.einsum("ech,co->eoh", cat3, params["A1"], precision=hp)
                     + params["a1"][None, :, None])
    logit3 = (jnp.einsum("ech,co->eoh", h3, params["A2"], precision=hp)
              + params["a2"][None, :, None])
    prob3 = jax.nn.softmax(logit3, axis=1)
    xx = prob3.reshape(E, Da) * value

    agg = jax.ops.segment_max(xx, src, num_segments=N)
    agg = jnp.where(jnp.isfinite(agg), agg, 0.0)

    cat2 = jnp.concatenate([x, agg], axis=1)
    h2 = jax.nn.relu(jnp.dot(cat2, params["Wp1"], precision=hp) + params["bp1"])
    out = jnp.dot(h2, params["Wp2"], precision=hp) + params["bp2"]
    return jax.nn.relu(out), jax.nn.relu(ge)


# ----------------------------------------------------------------------------
# Deterministic parameter init (shapes follow the module __init__)
# ----------------------------------------------------------------------------
def init_params(key, dim_node, dim_edge, dim_atten, num_heads):
    dn, de, do = dim_node // num_heads, dim_edge // num_heads, dim_atten // num_heads

    def lin(k, din, dout):
        kw, kb = jax.random.split(k)
        s = 1.0 / np.sqrt(din)
        return (jax.random.uniform(kw, (din, dout), jnp.float32, -s, s),
                jax.random.uniform(kb, (dout,), jnp.float32, -s, s))

    ks = jax.random.split(key, 9)
    p = {}
    p["W1"], p["b1"] = lin(ks[0], 2 * dim_node + dim_edge, dim_node + dim_edge)  # nn_edge L1
    p["W2"], p["b2"] = lin(ks[1], dim_node + dim_edge, dim_edge)                 # nn_edge L2
    p["Wq"], p["bq"] = lin(ks[2], dim_node, dim_node)                            # proj_query
    p["We"], p["be"] = lin(ks[3], dim_edge, dim_edge)                            # proj_edge
    p["Wv"], p["bv"] = lin(ks[4], dim_node, dim_atten)                           # proj_value
    p["A1"], p["a1"] = lin(ks[5], dn + de, dn + de)                              # attn MLP L1 (per head)
    p["A2"], p["a2"] = lin(ks[6], dn + de, do)                                   # attn MLP L2 (per head)
    p["Wp1"], p["bp1"] = lin(ks[7], dim_node + dim_atten, dim_node + dim_atten)  # prop L1
    p["Wp2"], p["bp2"] = lin(ks[8], dim_node + dim_atten, dim_node)              # prop L2
    return p


if __name__ == "__main__":
    key = jax.random.PRNGKey(0)
    dim_node = dim_edge = dim_atten = 32
    num_heads = 2
    N, E = 16, 24

    k1, k2, k3 = jax.random.split(key, 3)
    obj_feature_3d = jax.random.normal(k1, (N, dim_node), jnp.float32)
    edge_feature_3d = jax.random.normal(k2, (E, dim_edge), jnp.float32)
    src = jnp.arange(E, dtype=jnp.int32) % N          # covers every node
    dst = (jnp.arange(E, dtype=jnp.int32) * 5 + 3) % N
    edge_index = jnp.stack([src, dst], axis=0)
    batch_ids = jnp.zeros((N,), jnp.int32)            # unused by MMG_single.forward

    params = init_params(k3, dim_node, dim_edge, dim_atten, num_heads)

    out_nodes, out_edges = mmg_single_pallas(
        obj_feature_3d, edge_feature_3d, edge_index, params, num_heads)
    jax.block_until_ready((out_nodes, out_edges))

    ref_nodes, ref_edges = mmg_single_reference(
        obj_feature_3d, edge_feature_3d, edge_index, params, num_heads)
    # Tolerance slightly loosened because the softmax denominator uses
    # pl.reciprocal(approx=True) (EUP approximate reciprocal).
    np.testing.assert_allclose(np.asarray(out_nodes), np.asarray(ref_nodes),
                               rtol=5e-3, atol=5e-3)
    np.testing.assert_allclose(np.asarray(out_edges), np.asarray(ref_edges),
                               rtol=5e-3, atol=5e-3)
    print("KERNEL_OK")
</pallas_src>

<mosaic_0001>
module attributes {stable_mosaic.version = 11 : i64} {
  func.func @edge_kernel(%arg0: i32, %arg1: memref<256x96xf32, #tpu.memory_space<vmem>>, %arg2: memref<96x64xf32, #tpu.memory_space<vmem>>, %arg3: memref<1x64xf32, #tpu.memory_space<vmem>>, %arg4: memref<64x32xf32, #tpu.memory_space<vmem>>, %arg5: memref<1x32xf32, #tpu.memory_space<vmem>>, %arg6: memref<96x96xf32, #tpu.memory_space<vmem>>, %arg7: memref<1x96xf32, #tpu.memory_space<vmem>>, %arg8: memref<64x64xf32, #tpu.memory_space<vmem>>, %arg9: memref<1x64xf32, #tpu.memory_space<vmem>>, %arg10: memref<64x32xf32, #tpu.memory_space<vmem>>, %arg11: memref<1x32xf32, #tpu.memory_space<vmem>>, %arg12: memref<256x64xf32, #tpu.memory_space<vmem>>) attributes {dimension_semantics = [#tpu.dimension_semantics<parallel>], iteration_bounds = array<i64: 1>, scalar_prefetch = 0 : i64, scratch_operands = 0 : i64, tpu.core_type = #tpu.core_type<tc>, window_params = [{transform_indices = @transform_0, window_bounds = array<i64: 256, 96>}, {pipeline_mode = #tpu.pipeline_mode<synchronous>, transform_indices = @transform_1, window_bounds = array<i64: 96, 64>}, {pipeline_mode = #tpu.pipeline_mode<synchronous>, transform_indices = @transform_2, window_bounds = array<i64: 1, 64>}, {pipeline_mode = #tpu.pipeline_mode<synchronous>, transform_indices = @transform_3, window_bounds = array<i64: 64, 32>}, {pipeline_mode = #tpu.pipeline_mode<synchronous>, transform_indices = @transform_4, window_bounds = array<i64: 1, 32>}, {pipeline_mode = #tpu.pipeline_mode<synchronous>, transform_indices = @transform_5, window_bounds = array<i64: 96, 96>}, {pipeline_mode = #tpu.pipeline_mode<synchronous>, transform_indices = @transform_6, window_bounds = array<i64: 1, 96>}, {pipeline_mode = #tpu.pipeline_mode<synchronous>, transform_indices = @transform_7, window_bounds = array<i64: 64, 64>}, {pipeline_mode = #tpu.pipeline_mode<synchronous>, transform_indices = @transform_8, window_bounds = array<i64: 1, 64>}, {pipeline_mode = #tpu.pipeline_mode<synchronous>, transform_indices = @transform_9, window_bounds = array<i64: 64, 32>}, {pipeline_mode = #tpu.pipeline_mode<synchronous>, transform_indices = @transform_10, window_bounds = array<i64: 1, 32>}, {transform_indices = @transform_11, window_bounds = array<i64: 256, 64>}]} {
    %c0 = arith.constant 0 : index
    %c0_0 = arith.constant 0 : index
    %0 = vector.load %arg1[%c0, %c0_0] : memref<256x96xf32, #tpu.memory_space<vmem>>, vector<256x96xf32>
    %c0_1 = arith.constant 0 : index
    %c0_2 = arith.constant 0 : index
    %1 = vector.load %arg2[%c0_1, %c0_2] : memref<96x64xf32, #tpu.memory_space<vmem>>, vector<96x64xf32>
    %cst = arith.constant dense<0.000000e+00> : vector<256x64xf32>
    %2 = tpu.matmul %0, %1, %cst {dimension_numbers = #tpu.dot_dimension_numbers<[1], [0], [0], [1], [0, 0, 1, 1], [], []>} : vector<256x96xf32>, vector<96x64xf32>, vector<256x64xf32> -> vector<256x64xf32>
    %c0_3 = arith.constant 0 : index
    %c0_4 = arith.constant 0 : index
    %3 = vector.load %arg3[%c0_3, %c0_4] : memref<1x64xf32, #tpu.memory_space<vmem>>, vector<1x64xf32>
    %4 = vector.broadcast %3 : vector<1x64xf32> to vector<256x64xf32>
    %5 = arith.addf %2, %4 : vector<256x64xf32>
    %cst_5 = arith.constant 0.000000e+00 : f32
    %6 = vector.broadcast %cst_5 : f32 to vector<256x64xf32>
    %7 = arith.maximumf %5, %6 : vector<256x64xf32>
    %c0_6 = arith.constant 0 : index
    %c0_7 = arith.constant 0 : index
    %8 = vector.load %arg4[%c0_6, %c0_7] : memref<64x32xf32, #tpu.memory_space<vmem>>, vector<64x32xf32>
    %cst_8 = arith.constant dense<0.000000e+00> : vector<256x32xf32>
    %9 = tpu.matmul %7, %8, %cst_8 {dimension_numbers = #tpu.dot_dimension_numbers<[1], [0], [0], [1], [0, 0, 1, 1], [], []>} : vector<256x64xf32>, vector<64x32xf32>, vector<256x32xf32> -> vector<256x32xf32>
    %c0_9 = arith.constant 0 : index
    %c0_10 = arith.constant 0 : index
    %10 = vector.load %arg5[%c0_9, %c0_10] : memref<1x32xf32, #tpu.memory_space<vmem>>, vector<1x32xf32>
    %11 = vector.broadcast %10 : vector<1x32xf32> to vector<256x32xf32>
    %12 = arith.addf %9, %11 : vector<256x32xf32>
    %cst_11 = arith.constant 0.000000e+00 : f32
    %13 = vector.broadcast %cst_11 : f32 to vector<256x32xf32>
    %14 = arith.maximumf %12, %13 : vector<256x32xf32>
    %c0_12 = arith.constant 0 : index
    %c0_13 = arith.constant 0 : index
    %15 = vector.load %arg6[%c0_12, %c0_13] : memref<96x96xf32, #tpu.memory_space<vmem>>, vector<96x96xf32>
    %cst_14 = arith.constant dense<0.000000e+00> : vector<256x96xf32>
    %16 = tpu.matmul %0, %15, %cst_14 {dimension_numbers = #tpu.dot_dimension_numbers<[1], [0], [0], [1], [0, 0, 1, 1], [], []>} : vector<256x96xf32>, vector<96x96xf32>, vector<256x96xf32> -> vector<256x96xf32>
    %c0_15 = arith.constant 0 : index
    %c0_16 = arith.constant 0 : index
    %17 = vector.load %arg7[%c0_15, %c0_16] : memref<1x96xf32, #tpu.memory_space<vmem>>, vector<1x96xf32>
    %18 = vector.broadcast %17 : vector<1x96xf32> to vector<256x96xf32>
    %19 = arith.addf %16, %18 : vector<256x96xf32>
    %20 = vector.extract_strided_slice %19 {offsets = [0, 0], sizes = [256, 64], strides = [1, 1]} : vector<256x96xf32> to vector<256x64xf32>
    %21 = vector.extract_strided_slice %19 {offsets = [0, 64], sizes = [256, 32], strides = [1, 1]} : vector<256x96xf32> to vector<256x32xf32>
    %c0_17 = arith.constant 0 : index
    %c0_18 = arith.constant 0 : index
    %22 = vector.load %arg8[%c0_17, %c0_18] : memref<64x64xf32, #tpu.memory_space<vmem>>, vector<64x64xf32>
    %cst_19 = arith.constant dense<0.000000e+00> : vector<256x64xf32>
    %23 = tpu.matmul %20, %22, %cst_19 {dimension_numbers = #tpu.dot_dimension_numbers<[1], [0], [0], [1], [0, 0, 1, 1], [], []>} : vector<256x64xf32>, vector<64x64xf32>, vector<256x64xf32> -> vector<256x64xf32>
    %c0_20 = arith.constant 0 : index
    %c0_21 = arith.constant 0 : index
    %24 = vector.load %arg9[%c0_20, %c0_21] : memref<1x64xf32, #tpu.memory_space<vmem>>, vector<1x64xf32>
    %25 = vector.broadcast %24 : vector<1x64xf32> to vector<256x64xf32>
    %26 = arith.addf %23, %25 : vector<256x64xf32>
    %cst_22 = arith.constant 0.000000e+00 : f32
    %27 = vector.broadcast %cst_22 : f32 to vector<256x64xf32>
    %28 = arith.maximumf %26, %27 : vector<256x64xf32>
    %c0_23 = arith.constant 0 : index
    %c0_24 = arith.constant 0 : index
    %29 = vector.load %arg10[%c0_23, %c0_24] : memref<64x32xf32, #tpu.memory_space<vmem>>, vector<64x32xf32>
    %cst_25 = arith.constant dense<0.000000e+00> : vector<256x32xf32>
    %30 = tpu.matmul %28, %29, %cst_25 {dimension_numbers = #tpu.dot_dimension_numbers<[1], [0], [0], [1], [0, 0, 1, 1], [], []>} : vector<256x64xf32>, vector<64x32xf32>, vector<256x32xf32> -> vector<256x32xf32>
    %c0_26 = arith.constant 0 : index
    %c0_27 = arith.constant 0 : index
    %31 = vector.load %arg11[%c0_26, %c0_27] : memref<1x32xf32, #tpu.memory_space<vmem>>, vector<1x32xf32>
    %32 = vector.broadcast %31 : vector<1x32xf32> to vector<256x32xf32>
    %33 = arith.addf %30, %32 : vector<256x32xf32>
    %34 = vector.extract_strided_slice %33 {offsets = [0, 0], sizes = [256, 16], strides = [1, 1]} : vector<256x32xf32> to vector<256x16xf32>
    %cst_28 = arith.constant dense<0xFF800000> : vector<256xf32>
    %35 = vector.multi_reduction <maximumf>, %34, %cst_28 [1] : vector<256x16xf32> to vector<256xf32>
    %36 = vector.shape_cast %35 : vector<256xf32> to vector<256x1xf32>
    %37 = vector.broadcast %36 : vector<256x1xf32> to vector<256x16xf32>
    %38 = arith.subf %34, %37 : vector<256x16xf32>
    %39 = math.exp %38 : vector<256x16xf32>
    %cst_29 = arith.constant dense<0.000000e+00> : vector<256xf32>
    %40 = vector.multi_reduction <add>, %39, %cst_29 [1] : vector<256x16xf32> to vector<256xf32>
    %41 = vector.shape_cast %40 : vector<256xf32> to vector<256x1xf32>
    %42 = tpu.reciprocal %41 {approx = true} : vector<256x1xf32> -> vector<256x1xf32>
    %43 = vector.broadcast %42 : vector<256x1xf32> to vector<256x16xf32>
    %44 = arith.mulf %39, %43 : vector<256x16xf32>
    %45 = vector.extract_strided_slice %33 {offsets = [0, 16], sizes = [256, 16], strides = [1, 1]} : vector<256x32xf32> to vector<256x16xf32>
    %cst_30 = arith.constant dense<0xFF800000> : vector<256xf32>
    %46 = vector.multi_reduction <maximumf>, %45, %cst_30 [1] : vector<256x16xf32> to vector<256xf32>
    %47 = vector.shape_cast %46 : vector<256xf32> to vector<256x1xf32>
    %48 = vector.broadcast %47 : vector<256x1xf32> to vector<256x16xf32>
    %49 = arith.subf %45, %48 : vector<256x16xf32>
    %50 = math.exp %49 : vector<256x16xf32>
    %cst_31 = arith.constant dense<0.000000e+00> : vector<256xf32>
    %51 = vector.multi_reduction <add>, %50, %cst_31 [1] : vector<256x16xf32> to vector<256xf32>
    %52 = vector.shape_cast %51 : vector<256xf32> to vector<256x1xf32>
    %53 = tpu.reciprocal %52 {approx = true} : vector<256x1xf32> -> vector<256x1xf32>
    %54 = vector.broadcast %53 : vector<256x1xf32> to vector<256x16xf32>
    %55 = arith.mulf %50, %54 : vector<256x16xf32>
    %56 = tpu.concatenate %44, %55 in 1 : vector<256x16xf32>, vector<256x16xf32> -> vector<256x32xf32>
    %57 = arith.mulf %56, %21 : vector<256x32xf32>
    %58 = tpu.concatenate %57, %14 in 1 : vector<256x32xf32>, vector<256x32xf32> -> vector<256x64xf32>
    %c0_32 = arith.constant 0 : index
    %c0_33 = arith.constant 0 : index
    %59 = vector.load %arg12[%c0_32, %c0_33] : memref<256x64xf32, #tpu.memory_space<vmem>>, vector<256x64xf32>
    tpu.vector_store %arg12[%c0_32, %c0_33], %58 {strides = array<i32>} : memref<256x64xf32, #tpu.memory_space<vmem>>, vector<256x64xf32>,
    return
  }
  func.func @transform_0(%arg0: i32) -> (i32, i32) {
    %c0_i32 = arith.constant 0 : i32
    %c0_i32_0 = arith.constant 0 : i32
    return %arg0, %c0_i32 : i32, i32
  }
  func.func @transform_1(%arg0: i32) -> (i32, i32) {
    %c0_i32 = arith.constant 0 : i32
    %c0_i32_0 = arith.constant 0 : i32
    %c0_i32_1 = arith.constant 0 : i32
    return %c0_i32, %c0_i32_0 : i32, i32
  }
  func.func @transform_2(%arg0: i32) -> (i32, i32) {
    %c0_i32 = arith.constant 0 : i32
    %c0_i32_0 = arith.constant 0 : i32
    %c0_i32_1 = arith.constant 0 : i32
    return %c0_i32, %c0_i32_0 : i32, i32
  }
  func.func @transform_3(%arg0: i32) -> (i32, i32) {
    %c0_i32 = arith.constant 0 : i32
    %c0_i32_0 = arith.constant 0 : i32
    %c0_i32_1 = arith.constant 0 : i32
    return %c0_i32, %c0_i32_0 : i32, i32
  }
  func.func @transform_4(%arg0: i32) -> (i32, i32) {
    %c0_i32 = arith.constant 0 : i32
    %c0_i32_0 = arith.constant 0 : i32
    %c0_i32_1 = arith.constant 0 : i32
    return %c0_i32, %c0_i32_0 : i32, i32
  }
  func.func @transform_5(%arg0: i32) -> (i32, i32) {
    %c0_i32 = arith.constant 0 : i32
    %c0_i32_0 = arith.constant 0 : i32
    %c0_i32_1 = arith.constant 0 : i32
    return %c0_i32, %c0_i32_0 : i32, i32
  }
  func.func @transform_6(%arg0: i32) -> (i32, i32) {
    %c0_i32 = arith.constant 0 : i32
    %c0_i32_0 = arith.constant 0 : i32
    %c0_i32_1 = arith.constant 0 : i32
    return %c0_i32, %c0_i32_0 : i32, i32
  }
  func.func @transform_7(%arg0: i32) -> (i32, i32) {
    %c0_i32 = arith.constant 0 : i32
    %c0_i32_0 = arith.constant 0 : i32
    %c0_i32_1 = arith.constant 0 : i32
    return %c0_i32, %c0_i32_0 : i32, i32
  }
  func.func @transform_8(%arg0: i32) -> (i32, i32) {
    %c0_i32 = arith.constant 0 : i32
    %c0_i32_0 = arith.constant 0 : i32
    %c0_i32_1 = arith.constant 0 : i32
    return %c0_i32, %c0_i32_0 : i32, i32
  }
  func.func @transform_9(%arg0: i32) -> (i32, i32) {
    %c0_i32 = arith.constant 0 : i32
    %c0_i32_0 = arith.constant 0 : i32
    %c0_i32_1 = arith.constant 0 : i32
    return %c0_i32, %c0_i32_0 : i32, i32
  }
  func.func @transform_10(%arg0: i32) -> (i32, i32) {
    %c0_i32 = arith.constant 0 : i32
    %c0_i32_0 = arith.constant 0 : i32
    %c0_i32_1 = arith.constant 0 : i32
    return %c0_i32, %c0_i32_0 : i32, i32
  }
  func.func @transform_11(%arg0: i32) -> (i32, i32) {
    %c0_i32 = arith.constant 0 : i32
    %c0_i32_0 = arith.constant 0 : i32
    return %arg0, %c0_i32 : i32, i32
  }
}

</mosaic_0001>

<bundles_post_ra>
// kernel: tpu_custom_call.1
= control target key start
LH: loop header
LB: loop body
LE: loop exit
PB: predicated region body
PF: predicated region fallthrough
CT: control target
= control target key end

     0   :  { %vm86_vm0 = vcmask 785408   ;;  %vm340_vm1 = vcmask 523264   ;;  %s2831_s17 = smov 32   ;;  %vm1185_vm2 = vcmask 130048   ;;  %vm1538_vm3 = vcmask 261248   ;;  %s2832_s14 = smov 112   ;;  %s5025_s1 = inlined_call_operand.vmem [shape: f32[96,64], index: 1, kind: input, shape index: {}]   ;;  %s5026_s2 = inlined_call_operand.vmem [shape: f32[1,64], index: 2, kind: input, shape index: {}]   ;;  %s5027_s0 = inlined_call_operand.vmem [shape: f32[256,96], index: 0, kind: input, shape index: {}]   ;;  %s5028_s5 = inlined_call_operand.vmem [shape: f32[96,96], index: 5, kind: input, shape index: {}]   ;;  %s5029_s6 = inlined_call_operand.vmem [shape: f32[1,96], index: 6, kind: input, shape index: {}]   ;;  %s5030_s3 = inlined_call_operand.vmem [shape: f32[64,32], index: 3, kind: input, shape index: {}]   ;;  %s5031_s4 = inlined_call_operand.vmem [shape: f32[1,32], index: 4, kind: input, shape index: {}]   ;;  %s5032_s7 = inlined_call_operand.vmem [shape: f32[64,64], index: 7, kind: input, shape index: {}]   ;;  %s5033_s8 = inlined_call_operand.vmem [shape: f32[1,64], index: 8, kind: input, shape index: {}]   ;;  %s5034_s9 = inlined_call_operand.vmem [shape: f32[64,32], index: 9, kind: input, shape index: {}]   ;;  %s5035_s10 = inlined_call_operand.vmem [shape: f32[1,32], index: 10, kind: input, shape index: {}]   ;;  %s5036_s11 = inlined_call_operand.vmem [shape: f32[256,64], index: 11, kind: output, shape index: {}]  }
   0x1   :  { %v81_v0 = vld [vmem:[%s5025_s1 + $0x58] sm:$0xff]  ;;  %v80_v1 = vld [vmem:[%s5025_s1 + $0x50] sm:$0xff]  ;;  %v79_v2 = vld [vmem:[%s5025_s1 + $0x48] sm:$0xff]  ;;  %vm2307_vm4 = vcmask 261120  }
   0x2   :  { %187 = vmatpush.msra.mxu0 %v81_v0  ;;  %2536 = vmatpush.msra.mxu2 %v81_v0  ;;  %v78_v3 = vld [vmem:[%s5025_s1 + $0x40] sm:$0xff]  ;;  %v77_v4 = vld [vmem:[%s5025_s1 + $0x38] sm:$0xff]  ;;  %v76_v5 = vld [vmem:[%s5025_s1 + $0x30] sm:$0xff] }
   0x3   :  { %v75_v6 = vld [vmem:[%s5025_s1 + $0x28] sm:$0xff]  ;;  %v74_v7 = vld [vmem:[%s5025_s1 + $0x20] sm:$0xff]  ;;  %v73_v8 = vld [vmem:[%s5025_s1 + $0x18] sm:$0xff] }
   0x4   :  { %188 = vmatpush.msra.mxu0 %v80_v1  ;;  %2537 = vmatpush.msra.mxu2 %v80_v1  ;;  %v72_v9 = vld [vmem:[%s5025_s1 + $0x10] sm:$0xff]  ;;  %v71_v10 = vld [vmem:[%s5025_s1 + $0x8] sm:$0xff]  ;;  %v70_v11 = vld [vmem:[%s5025_s1] sm:$0xff] }
   0x5   :  { %v38_v12 = vld [vmem:[%s5027_s0] sm:$0xff]  ;;  %v2935_v13 = vld [vmem:[%s5027_s0 + $0xd0] sm:$0xff]  ;;  %v593_v14 = vld [vmem:[%s5028_s5 + $0x58] sm:$0xff] }
   0x6   :  { %189 = vmatpush.msra.mxu0 %v79_v2  ;;  %2538 = vmatpush.msra.mxu2 %v79_v2  ;;  %v592_v15 = vld [vmem:[%s5028_s5 + $0x50] sm:$0xff]  ;;  %v591_v16 = vld [vmem:[%s5028_s5 + $0x48] sm:$0xff]  ;;  %v590_v17 = vld [vmem:[%s5028_s5 + $0x40] sm:$0xff] }
   0x7   :  { %v39_v18 = vld [vmem:[%s5027_s0 + $0x8] sm:$0xff]  ;;  %v2958_v19 = vld [vmem:[%s5027_s0 + $0xd8] sm:$0xff]  ;;  %v588_v21 = vld [vmem:[%s5028_s5 + $0x30] sm:$0xff] }
   0x8   :  { %190 = vmatpush.msra.mxu0 %v78_v3  ;;  %2539 = vmatpush.msra.mxu2 %v78_v3  ;;  %v589_v20 = vld [vmem:[%s5028_s5 + $0x38] sm:$0xff]  ;;  %v587_v22 = vld [vmem:[%s5028_s5 + $0x28] sm:$0xff]  ;;  %v586_v23 = vld [vmem:[%s5028_s5 + $0x20] sm:$0xff] }
   0x9   :  { %v40_v24 = vld [vmem:[%s5027_s0 + $0x10] sm:$0xff]  ;;  %v2981_v25 = vld [vmem:[%s5027_s0 + $0xe0] sm:$0xff]  ;;  %v585_v26 = vld [vmem:[%s5028_s5 + $0x18] sm:$0xff] }
   0xa   :  { %191 = vmatpush.msra.mxu0 %v77_v4  ;;  %2540 = vmatpush.msra.mxu2 %v77_v4  ;;  %v584_v27 = vld [vmem:[%s5028_s5 + $0x10] sm:$0xff]  ;;  %v583_v28 = vld [vmem:[%s5028_s5 + $0x8] sm:$0xff]  ;;  %v582_v29 = vld [vmem:[%s5028_s5] sm:$0xff] }
   0xb   :  { %v41_v30 = vld [vmem:[%s5027_s0 + $0x18] sm:$0xff]  ;;  %v3004_v31 = vld [vmem:[%s5027_s0 + $0xe8] sm:$0xff]  ;;  %v42_v32 = vld [vmem:[%s5027_s0 + $0x20] sm:$0xff] }
   0xc   :  { %192 = vmatpush.msra.mxu0 %v76_v5  ;;  %2541 = vmatpush.msra.mxu2 %v76_v5  ;;  %v3015_v33 = vld [vmem:[%s5027_s0 + $0xf0] sm:$0xff]  ;;  %v43_v34 = vld [vmem:[%s5027_s0 + $0x28] sm:$0xff]  ;;  %v3026_v35 = vld [vmem:[%s5027_s0 + $0xf8] sm:$0xff] }
   0xd   :  { %v44_v36 = vld [vmem:[%s5027_s0 + $0x30] sm:$0xff]  ;;  %v45_v37 = vld [vmem:[%s5027_s0 + $0x38] sm:$0xff]  ;;  %v46_v38 = vld [vmem:[%s5027_s0 + $0x40] sm:$0xff] }
   0xe   :  { %193 = vmatpush.msra.mxu0 %v75_v6  ;;  %2542 = vmatpush.msra.mxu2 %v75_v6  ;;  %v47_v39 = vld [vmem:[%s5027_s0 + $0x48] sm:$0xff]  ;;  %v48_v40 = vld [vmem:[%s5027_s0 + $0x50] sm:$0xff]  ;;  %v49_v41 = vld [vmem:[%s5027_s0 + $0x58] sm:$0xff] }
   0xf   :  { %v50_v42 = vld [vmem:[%s5027_s0 + $0x60] sm:$0xff]  ;;  %v51_v43 = vld [vmem:[%s5027_s0 + $0x68] sm:$0xff]  ;;  %v52_v44 = vld [vmem:[%s5027_s0 + $0x70] sm:$0xff] }
  0x10   :  { %194 = vmatpush.msra.mxu0 %v74_v7  ;;  %2543 = vmatpush.msra.mxu2 %v74_v7  ;;  %v53_v45 = vld [vmem:[%s5027_s0 + $0x78] sm:$0xff]  ;;  %v3086_v47 = vld [vmem:[%s5027_s0 + $0x80] sm:$0xff]  ;;  %v55_v51 = vld [vmem:[%s5027_s0 + $0x88] sm:$0xff] }
  0x11   :  { %v335_v48 = vld [vmem:[%s5030_s3 + $0x38] sm:$0xff]  ;;  %v56_v54 = vld [vmem:[%s5027_s0 + $0x90] sm:$0xff]  ;;  %v58_v61 = vld [vmem:[%s5027_s0 + $0xa0] sm:$0xff] }
  0x12   :  { %195 = vmatpush.msra.mxu0 %v73_v8  ;;  %2544 = vmatpush.msra.mxu2 %v73_v8  ;;  %v57_v57 = vld [vmem:[%s5027_s0 + $0x98] sm:$0xff]  ;;  %v334_v58 = vld [vmem:[%s5030_s3 + $0x30] sm:$0xff]  ;;  %v333_v63 = vld [vmem:[%s5030_s3 + $0x28] sm:$0xff] }
  0x13   :  { %2548 = vmatpush.msra.mxu1 %v335_v48  ;;  %2549 = vmatpush.msra.mxu3 %v335_v48  ;;  %v59_v1 = vld [vmem:[%s5027_s0 + $0xa8] sm:$0xff]  ;;  %v332_v2 = vld [vmem:[%s5030_s3 + $0x20] sm:$0xff]  ;;  %v331_v3 = vld [vmem:[%s5030_s3 + $0x18] sm:$0xff] }
  0x14   :  { %196 = vmatpush.msra.mxu0 %v72_v9  ;;  %2545 = vmatpush.msra.mxu2 %v72_v9  ;;  %v330_v4 = vld [vmem:[%s5030_s3 + $0x10] sm:$0xff]  ;;  %v329_v6 = vld [vmem:[%s5030_s3 + $0x8] sm:$0xff]  ;;  %v328_v9 = vld [vmem:[%s5030_s3] sm:$0xff] }
  0x15   :  { %2550 = vmatpush.msra.mxu1 %v334_v58  ;;  %2551 = vmatpush.msra.mxu3 %v334_v58  ;;  %v60_v8 = vld [vmem:[%s5027_s0 + $0xb0] sm:$0xff] }
  0x16   :  { %197 = vmatpush.msra.mxu0 %v71_v10  ;;  %2546 = vmatpush.msra.mxu2 %v71_v10 }
  0x17   :  { %2552 = vmatpush.msra.mxu1 %v333_v63  ;;  %2553 = vmatpush.msra.mxu3 %v333_v63 }
  0x18   :  { %198 = vmatpush.msra.mxu0 %v70_v11  ;;  %2547 = vmatpush.msra.mxu2 %v70_v11 }
  0x19   :  { %2376 = vmatmul.msk.f32.vlgmr.msra.gmra.mxu0 %vm86_vm0, %v38_v12  ;;  %2402 = vmatmul.msk.f32.vlgmr.msra.gmra.mxu2 %vm86_vm0, %v2935_v13 }
  0x1a   :  { %602 = vmatpush.msrb.mxu2 %v593_v14  ;;  %445 = vmatpush.msrb.mxu0 %v335_v48 }
  0x1b   :  { %2554 = vmatpush.msra.mxu1 %v332_v2  ;;  %2555 = vmatpush.msra.mxu3 %v332_v2 }
  0x1c   :  { %603 = vmatpush.msrb.mxu2 %v592_v15  ;;  %446 = vmatpush.msrb.mxu0 %v334_v58 }
  0x1d   :  { %2556 = vmatpush.msra.mxu1 %v331_v3  ;;  %2557 = vmatpush.msra.mxu3 %v331_v3 }
  0x1e   :  { %604 = vmatpush.msrb.mxu2 %v591_v16  ;;  %447 = vmatpush.msrb.mxu0 %v333_v63  ;;  %v62_v16 = vld [vmem:[%s5027_s0 + $0xc0] sm:$0xff] }
  0x1f   :  { %2558 = vmatpush.msra.mxu1 %v330_v4  ;;  %2559 = vmatpush.msra.mxu3 %v330_v4 }
  0x20   :  { %605 = vmatpush.msrb.mxu2 %v590_v17  ;;  %448 = vmatpush.msrb.mxu0 %v332_v2 }
  0x21   :  { %2377 = vmatmul.msk.f32.gmra.mxu0 %vm86_vm0, %v39_v18  ;;  %2403 = vmatmul.msk.f32.gmra.mxu2 %vm86_vm0, %v2958_v19 }
  0x22   :  { %606 = vmatpush.msrb.mxu2 %v589_v20  ;;  %449 = vmatpush.msrb.mxu0 %v331_v3  ;;  %v63_v20 = vld [vmem:[%s5027_s0 + $0xc8] sm:$0xff] }
  0x23   :  { %2560 = vmatpush.msra.mxu1 %v329_v6  ;;  %2561 = vmatpush.msra.mxu3 %v329_v6 }
  0x24   :  { %607 = vmatpush.msrb.mxu2 %v588_v21  ;;  %450 = vmatpush.msrb.mxu0 %v330_v4  ;;  %v3198_v21 = vld [vmem:[%s5026_s2] ss:$0 sm:$0xff] }
  0x25   :  { %2562 = vmatpush.msra.mxu1 %v328_v9  ;;  %2563 = vmatpush.msra.mxu3 %v328_v9 }
  0x26   :  { %608 = vmatpush.msrb.mxu2 %v587_v22  ;;  %451 = vmatpush.msrb.mxu0 %v329_v6 }
  0x28   :  { %609 = vmatpush.msrb.mxu2 %v586_v23  ;;  %452 = vmatpush.msrb.mxu0 %v328_v9 }
  0x29   :  { %2378 = vmatmul.msk.f32.gmra.mxu0 %vm86_vm0, %v40_v24  ;;  %2404 = vmatmul.msk.f32.gmra.mxu2 %vm86_vm0, %v2981_v25 }
  0x2a   :  { %610 = vmatpush.msrb.mxu2 %v585_v26 }
  0x2c   :  { %611 = vmatpush.msrb.mxu2 %v584_v27 }
  0x2e   :  { %612 = vmatpush.msrb.mxu2 %v583_v28 }
  0x30   :  { %613 = vmatpush.msrb.mxu2 %v582_v29 }
  0x31   :  { %2379 = vmatmul.msk.f32.gmra.mxu0 %vm86_vm0, %v41_v30  ;;  %2405 = vmatmul.msk.f32.gmra.mxu2 %vm86_vm0, %v3004_v31 }
  0x39   :  { %2380 = vmatmul.msk.f32.gmra.mxu0 %vm86_vm0, %v42_v32  ;;  %2406 = vmatmul.msk.f32.gmra.mxu2 %vm86_vm0, %v3015_v33 }
  0x41   :  { %2381 = vmatmul.msk.f32.gmra.mxu0 %vm86_vm0, %v43_v34  ;;  %2407 = vmatmul.msk.f32.gmra.mxu2 %vm86_vm0, %v3026_v35 }
  0x49   :  { %2382 = vmatmul.msk.f32.gmra.mxu0 %vm86_vm0, %v44_v36  ;;  %2440 = vmatmul.msk.f32.vlgmr.msrb.gmra.mxu2 %vm86_vm0, %v38_v12  ;;  %v61_v12 = vld [vmem:[%s5027_s0 + $0xb8] sm:$0xff] }
  0x51   :  { %2383 = vmatmul.msk.f32.gmra.mxu0 %vm86_vm0, %v45_v37  ;;  %2441 = vmatmul.msk.f32.gmra.mxu2 %vm86_vm0, %v39_v18 }
  0x59   :  { %2384 = vmatmul.msk.f32.gmra.mxu0 %vm86_vm0, %v46_v38  ;;  %2442 = vmatmul.msk.f32.gmra.mxu2 %vm86_vm0, %v40_v24 }
  0x61   :  { %2385 = vmatmul.msk.f32.gmra.mxu0 %vm86_vm0, %v47_v39  ;;  %2443 = vmatmul.msk.f32.gmra.mxu2 %vm86_vm0, %v41_v30 }
  0x69   :  { %2386 = vmatmul.msk.f32.gmra.mxu0 %vm86_vm0, %v48_v40  ;;  %2444 = vmatmul.msk.f32.gmra.mxu2 %vm86_vm0, %v42_v32 }
  0x71   :  { %2387 = vmatmul.msk.f32.gmra.mxu0 %vm86_vm0, %v49_v41  ;;  %2445 = vmatmul.msk.f32.gmra.mxu2 %vm86_vm0, %v43_v34 }
  0x79   :  { %2388 = vmatmul.msk.f32.gmra.mxu0 %vm86_vm0, %v50_v42  ;;  %2446 = vmatmul.msk.f32.gmra.mxu2 %vm86_vm0, %v44_v36 }
  0x81   :  { %2389 = vmatmul.msk.f32.gmra.mxu0 %vm86_vm0, %v51_v43  ;;  %2447 = vmatmul.msk.f32.gmra.mxu2 %vm86_vm0, %v45_v37 }
  0x89   :  { %2390 = vmatmul.msk.f32.gmra.mxu0 %vm86_vm0, %v52_v44  ;;  %2448 = vmatmul.msk.f32.gmra.mxu2 %vm86_vm0, %v46_v38 }
  0x91   :  { %2391 = vmatmul.msk.f32.gmra.mxu0 %vm86_vm0, %v53_v45  ;;  %2449 = vmatmul.msk.f32.gmra.mxu2 %vm86_vm0, %v47_v39 }
  0x96   :  { %v3081_v46 = vpop.f32.mrf.mxu0 }
  0x97   :  { %v201_v22 = vadd.f32 %v3198_v21, %v3081_v46 }
  0x99   :  { %2392 = vmatmul.msk.f32.gmra.mxu0 %vm86_vm0, %v3086_v47  ;;  %2450 = vmatmul.msk.f32.gmra.mxu2 %vm86_vm0, %v48_v40  ;;  %v296_v26 = vmax.f32 %v201_v22, 0.0 }
  0x9c   :  { %v3094_v49 = vpop.f32.mrf.mxu2 }
  0x9e   :  { %v3096_v50 = vpop.f32.mrf.mxu0 }
  0x9f   :  { %v204_v27 = vadd.f32 %v3198_v21, %v3096_v50 }
  0xa1   :  { %2393 = vmatmul.msk.f32.gmra.mxu0 %vm86_vm0, %v55_v51  ;;  %2451 = vmatmul.msk.f32.gmra.mxu2 %vm86_vm0, %v49_v41  ;;  %v297_v30 = vmax.f32 %v204_v27, 0.0 }
  0xa4   :  { %v3103_v52 = vpop.f32.mrf.mxu2 }
  0xa6   :  { %v3105_v53 = vpop.f32.mrf.mxu0 }
  0xa7   :  { %v207_v32 = vadd.f32 %v3198_v21, %v3105_v53 }
  0xa9   :  { %2394 = vmatmul.msk.f32.gmra.mxu0 %vm86_vm0, %v56_v54  ;;  %2452 = vmatmul.msk.f32.gmra.mxu2 %vm86_vm0, %v50_v42  ;;  %v298_v37 = vmax.f32 %v207_v32, 0.0 }
  0xac   :  { %v3112_v55 = vpop.f32.mrf.mxu2 }
  0xae   :  { %v3114_v56 = vpop.f32.mrf.mxu0 }
  0xaf   :  { %v210_v38 = vadd.f32 %v3198_v21, %v3114_v56 }
  0xb1   :  { %2395 = vmatmul.msk.f32.gmra.mxu0 %vm86_vm0, %v57_v57  ;;  %2453 = vmatmul.msk.f32.gmra.mxu2 %vm86_vm0, %v51_v43  ;;  %v299_v41 = vmax.f32 %v210_v38, 0.0 }
  0xb4   :  { %v3124_v59 = vpop.f32.mrf.mxu2 }
  0xb6   :  { %v3126_v60 = vpop.f32.mrf.mxu0 }
  0xb7   :  { %v213_v42 = vadd.f32 %v3198_v21, %v3126_v60  ;;  %v3247_v60 = vld [vmem:[%s5029_s6] ss:$0 sm:$0xff]  ;;  %s2830_s6 = smov 64  }
  0xb9   :  { %2396 = vmatmul.msk.f32.gmra.mxu0 %vm86_vm0, %v58_v61  ;;  %2454 = vmatmul.msk.f32.gmra.mxu2 %vm86_vm0, %v52_v44 }
  0xbc   :  { %v3133_v62 = vpop.f32.mrf.mxu2 }
  0xbe   :  { %v3138_v0 = vpop.f32.mrf.mxu0 }
  0xbf   :  { %v216_v48 = vadd.f32 %v3198_v21, %v3138_v0 }
  0xc1   :  { %2397 = vmatmul.msk.f32.gmra.mxu0 %vm86_vm0, %v59_v1  ;;  %2455 = vmatmul.msk.f32.gmra.mxu2 %vm86_vm0, %v53_v45  ;;  %v300_v45 = vmax.f32 %v213_v42, 0.0  ;;  %v301_v53 = vmax.f32 %v216_v48, 0.0  ;;  %v717_v48 = vld [vmem:[%s5032_s7 + $0x30] sm:$0xff] }
  0xc4   :  { %v3154_v5 = vpop.f32.mrf.mxu2 }
  0xc6   :  { %v3159_v7 = vpop.f32.mrf.mxu0 }
  0xc9   :  { %2398 = vmatmul.msk.f32.gmra.mxu0 %vm86_vm0, %v60_v8  ;;  %2456 = vmatmul.msk.f32.gmra.mxu2 %vm86_vm0, %v3086_v47 }
  0xcc   :  { %v3170_v10 = vpop.f32.mrf.mxu2 }
  0xcd   :  { %v3259_v3 = vadd.f32 %v3247_v60, %v3170_v10 }
  0xce   :  { %v3172_v11 = vpop.f32.mrf.mxu0 }
  0xcf   :  { %v222_v4 = vadd.f32 %v3198_v21, %v3172_v11  ;;  %2051 = vrot.lane.b32.xlu2 %v3259_v3, %s2830_s6 }
  0xd1   :  { %2399 = vmatmul.msk.f32.gmra.mxu0 %vm86_vm0, %v61_v12  ;;  %2457 = vmatmul.msk.f32.gmra.mxu2 %vm86_vm0, %v55_v51 }
  0xd4   :  { %v3179_v14 = vpop.f32.mrf.mxu2 }
  0xd5   :  { %v3255_v2 = vadd.f32 %v3247_v60, %v3179_v14 }
  0xd6   :  { %v3181_v15 = vpop.f32.mrf.mxu0 }
  0xd7   :  { %2053 = vrot.lane.b32.xlu1 %v3255_v2, %s2830_s6  ;;  %v225_v14 = vadd.f32 %v3198_v21, %v3181_v15 }
  0xd9   :  { %2400 = vmatmul.msk.f32.gmra.mxu0 %vm86_vm0, %v62_v16  ;;  %2458 = vmatmul.msk.f32.gmra.mxu2 %vm86_vm0, %v56_v54 }
  0xdc   :  { %v3188_v17 = vpop.f32.mrf.mxu2 }
  0xde   :  { %v3190_v18 = vpop.f32.mrf.mxu0 }
  0xdf   :  { %v228_v27 = vadd.f32 %v3198_v21, %v3190_v18 }
  0xe1   :  { %2401 = vmatmul.msk.f32.gmra.mxu0 %vm86_vm0, %v63_v20  ;;  %2459 = vmatmul.msk.f32.gmra.mxu2 %vm86_vm0, %v57_v57  ;;  %v219_v57 = vadd.f32 %v3198_v21, %v3159_v7  ;;  %v303_v7 = vmax.f32 %v222_v4, 0.0  ;;  %v305_v32 = vmax.f32 %v228_v27, 0.0  ;;  %v714_v27 = vld [vmem:[%s5032_s7 + $0x18] sm:$0xff] }
  0xe3   :  { %v302_v63 = vmax.f32 %v219_v57, 0.0 }
  0xe4   :  { %v624_v23 = vpop.f32.mrf.mxu2 }
  0xe5   :  { %v3270_v9 = vadd.f32 %v3247_v60, %v624_v23 }
  0xe6   :  { %v3204_v24 = vpop.f32.mrf.mxu0 }
  0xe7   :  { %2057 = vrot.lane.b32.xlu2 %v3270_v9, %s2830_s6 }
  0xe9   :  { %2408 = vmatmul.msk.f32.vlgmr.msrb.gmra.mxu0 %vm340_vm1, %v296_v26  ;;  %2460 = vmatmul.msk.f32.gmra.mxu2 %vm86_vm0, %v58_v61 }
  0xec   :  { %v3210_v28 = vpop.f32.mrf.mxu2 }
  0xee   :  { %v3212_v29 = vpop.f32.mrf.mxu0 }
  0xf1   :  { %2409 = vmatmul.msk.f32.gmra.mxu0 %vm340_vm1, %v297_v30  ;;  %2461 = vmatmul.msk.f32.gmra.mxu2 %vm86_vm0, %v59_v1 }
  0xf4   :  { %v630_v34 = vpop.f32.mrf.mxu2 }
  0xf5   :  { %v3273_v10 = vadd.f32 %v3247_v60, %v630_v34 }
  0xf6   :  { %v3218_v36 = vpop.f32.mrf.mxu0 }
  0xf7   :  { %2061 = vrot.lane.b32.xlu1 %v3273_v10, %s2830_s6  ;;  %v237_v57 = vadd.f32 %v3198_v21, %v3218_v36 }
  0xf9   :  { %2410 = vmatmul.msk.f32.gmra.mxu0 %vm340_vm1, %v298_v37  ;;  %2462 = vmatmul.msk.f32.gmra.mxu2 %vm86_vm0, %v60_v8 }
  0xfc   :  { %v633_v39 = vpop.f32.mrf.mxu2 }
  0xfd   :  { %v3297_v22 = vadd.f32 %v3247_v60, %v633_v39  ;;  %v718_v39 = vld [vmem:[%s5032_s7 + $0x38] sm:$0xff] }
  0xfe   :  { %v3224_v40 = vpop.f32.mrf.mxu0  ;;  %827 = vmatpush.msrb.mxu3 %v718_v39  ;;  %v713_v39 = vld [vmem:[%s5032_s7 + $0x10] sm:$0xff] }
  0xff   :  { %2063 = vrot.lane.b32.xlu2 %v3297_v22, %s2830_s6  ;;  %v240_v4 = vadd.f32 %v3198_v21, %v3224_v40  ;;  %v715_v40 = vld [vmem:[%s5032_s7 + $0x20] sm:$0xff] }
 0x100   :  { %828 = vmatpush.msrb.mxu3 %v717_v48 }
 0x101   :  { %2411 = vmatmul.msk.f32.gmra.mxu0 %vm340_vm1, %v299_v41  ;;  %2463 = vmatmul.msk.f32.gmra.mxu2 %vm86_vm0, %v61_v12  ;;  %v3280_v12 = vadd.f32 %v3247_v60, %v3188_v17  ;;  %v3293_v17 = vadd.f32 %v3247_v60, %v3210_v28  ;;  %v231_v41 = vadd.f32 %v3198_v21, %v3204_v24 }
 0x103   :  { %2055 = vrot.lane.b32.xlu0 %v3280_v12, %s2830_s6 }
 0x104   :  { %v3230_v43 = vpop.f32.mrf.mxu2 }
 0x106   :  { %v242_v44 = vpop.f32.mrf.mxu0 }
 0x107   :  { %v243_v46 = vadd.f32 %v3198_v21, %v242_v44 }
 0x109   :  { %v310_v47 = vmax.f32 %v243_v46, 0.0  ;;  %2412 = vmatmul.msk.f32.gmra.mxu0 %vm340_vm1, %v300_v45  ;;  %2464 = vmatmul.msk.f32.gmra.mxu2 %vm86_vm0, %v62_v16 }
 0x10b   :  { %2422 = vmatmul.msk.f32.vlgmr.msra.gmra.mxu1 %vm340_vm1, %v310_v47  ;;  %2059 = vrot.lane.b32.xlu0 %v3293_v17, %s2830_s6  ;;  %v234_v47 = vadd.f32 %v3198_v21, %v3212_v29 }
 0x10c   :  { %v639_v50 = vpop.f32.mrf.mxu2 }
 0x10d   :  { %v3300_v23 = vadd.f32 %v3247_v60, %v639_v50 }
 0x10e   :  { %v245_v51 = vpop.f32.mrf.mxu0 }
 0x10f   :  { %v246_v54 = vadd.f32 %v3198_v21, %v245_v51  ;;  %2067 = vrot.lane.b32.xlu1 %v3300_v23, %s2830_s6 }
 0x111   :  { %v311_v56 = vmax.f32 %v246_v54, 0.0  ;;  %2413 = vmatmul.msk.f32.gmra.mxu0 %vm340_vm1, %v301_v53  ;;  %2465 = vmatmul.msk.f32.gmra.mxu2 %vm86_vm0, %v63_v20  ;;  %v304_v20 = vmax.f32 %v225_v14, 0.0  ;;  %v307_v53 = vmax.f32 %v234_v47, 0.0 }
 0x113   :  { %2423 = vmatmul.msk.f32.gmra.mxu1 %vm340_vm1, %v311_v56 }
 0x114   :  { %v642_v58 = vpop.f32.mrf.mxu2 }
 0x115   :  { %v3320_v34 = vadd.f32 %v3247_v60, %v642_v58  ;;  %v716_v58 = vld [vmem:[%s5032_s7 + $0x28] sm:$0xff] }
 0x116   :  { %v248_v61 = vpop.f32.mrf.mxu0  ;;  %829 = vmatpush.msrb.mxu3 %v716_v58 }
 0x117   :  { %v249_v0 = vadd.f32 %v3198_v21, %v248_v61  ;;  %2069 = vrot.lane.b32.xlu2 %v3320_v34, %s2830_s6 }
 0x118   :  { %830 = vmatpush.msrb.mxu3 %v715_v40 }
 0x119   :  { %v312_v1 = vmax.f32 %v249_v0, 0.0  ;;  %2414 = vmatmul.msk.f32.gmra.mxu0 %vm340_vm1, %v302_v63  ;;  %2466 = vmatmul.msk.f32.gmra.mxu2 %vm86_vm0, %v2935_v13 }
 0x11a   :  { %831 = vmatpush.msrb.mxu3 %v714_v27 }
 0x11b   :  { %2424 = vmatmul.msk.f32.gmra.mxu1 %vm340_vm1, %v312_v1  ;;  %v308_v1 = vmax.f32 %v237_v57, 0.0 }
 0x11c   :  { %v645_v6 = vpop.f32.mrf.mxu2  ;;  %832 = vmatpush.msrb.mxu3 %v713_v39 }
 0x11d   :  { %v3341_v44 = vadd.f32 %v3247_v60, %v645_v6 }
 0x11e   :  { %v251_v13 = vpop.f32.mrf.mxu0 }
 0x11f   :  { %v252_v8 = vadd.f32 %v3198_v21, %v251_v13 }
 0x121   :  { %v313_v11 = vmax.f32 %v252_v8, 0.0  ;;  %2415 = vmatmul.msk.f32.gmra.mxu0 %vm340_vm1, %v303_v7  ;;  %2467 = vmatmul.msk.f32.gmra.mxu2 %vm86_vm0, %v2958_v19  ;;  %v309_v8 = vmax.f32 %v240_v4, 0.0 }
 0x123   :  { %2425 = vmatmul.msk.f32.gmra.mxu1 %vm340_vm1, %v313_v11 }
 0x124   :  { %v648_v16 = vpop.f32.mrf.mxu2 }
 0x125   :  { %v3323_v37 = vadd.f32 %v3247_v60, %v648_v16 }
 0x126   :  { %v254_v19 = vpop.f32.mrf.mxu0 }
 0x127   :  { %v255_v15 = vadd.f32 %v3198_v21, %v254_v19  ;;  %2073 = vrot.lane.b32.xlu1 %v3323_v37, %s2830_s6 }
 0x129   :  { %v314_v26 = vmax.f32 %v255_v15, 0.0  ;;  %2416 = vmatmul.msk.f32.gmra.mxu0 %vm340_vm1, %v304_v20  ;;  %2468 = vmatmul.msk.f32.gmra.mxu2 %vm86_vm0, %v2981_v25  ;;  %v3316_v25 = vadd.f32 %v3247_v60, %v3230_v43  ;;  %v306_v43 = vmax.f32 %v231_v41, 0.0  ;;  %v3424_v41 = vld [vmem:[%s5031_s4] ss:$0 sm:$0xff] }
 0x12b   :  { %2426 = vmatmul.msk.f32.gmra.mxu1 %vm340_vm1, %v314_v26  ;;  %2065 = vrot.lane.b32.xlu0 %v3316_v25, %s2830_s6 }
 0x12c   :  { %v651_v28 = vpop.f32.mrf.mxu2 }
 0x12d   :  { %v3345_v24 = vadd.f32 %v3247_v60, %v651_v28 }
 0x12e   :  { %v257_v30 = vpop.f32.mrf.mxu0 }
 0x12f   :  { %v258_v18 = vadd.f32 %v3198_v21, %v257_v30  ;;  %2075 = vrot.lane.b32.xlu2 %v3345_v24, %s2830_s6 }
 0x131   :  { %v315_v38 = vmax.f32 %v258_v18, 0.0  ;;  %2417 = vmatmul.msk.f32.gmra.mxu0 %vm340_vm1, %v305_v32  ;;  %2469 = vmatmul.msk.f32.gmra.mxu2 %vm86_vm0, %v3004_v31 }
 0x133   :  { %2427 = vmatmul.msk.f32.gmra.mxu1 %vm340_vm1, %v315_v38  ;;  %2071 = vrot.lane.b32.xlu0 %v3341_v44, %s2830_s6 }
 0x134   :  { %v654_v42 = vpop.f32.mrf.mxu2 }
 0x135   :  { %v3364_v29 = vadd.f32 %v3247_v60, %v654_v42 }
 0x136   :  { %v260_v31 = vpop.f32.mrf.mxu0 }
 0x137   :  { %v261_v45 = vadd.f32 %v3198_v21, %v260_v31  ;;  %v279_v31 = vadd.f32 %v3198_v21, %v3094_v49  ;;  %v712_v49 = vld [vmem:[%s5032_s7 + $0x8] sm:$0xff] }
 0x138   :  { %833 = vmatpush.msrb.mxu3 %v712_v49 }
 0x139   :  { %v316_v46 = vmax.f32 %v261_v45, 0.0  ;;  %2418 = vmatmul.msk.f32.gmra.mxu0 %vm340_vm1, %v306_v43  ;;  %2470 = vmatmul.msk.f32.gmra.mxu2 %vm86_vm0, %v3015_v33  ;;  %v322_v47 = vmax.f32 %v279_v31, 0.0 }
 0x13b   :  { %2428 = vmatmul.msk.f32.gmra.mxu1 %vm340_vm1, %v316_v46  ;;  %2077 = vrot.lane.b32.xlu0 %v3364_v29, %s2830_s6 }
 0x13c   :  { %v657_v50 = vpop.f32.mrf.mxu2 }
 0x13d   :  { %v3361_v51 = vadd.f32 %v3247_v60, %v657_v50 }
 0x13e   :  { %v263_v33 = vpop.f32.mrf.mxu0 }
 0x13f   :  { %v264_v54 = vadd.f32 %v3198_v21, %v263_v33  ;;  %2079 = vrot.lane.b32.xlu1 %v3361_v51, %s2830_s6  ;;  %v282_v33 = vadd.f32 %v3198_v21, %v3103_v52  ;;  %v285_v52 = vadd.f32 %v3198_v21, %v3112_v55 }
 0x141   :  { %v317_v56 = vmax.f32 %v264_v54, 0.0  ;;  %2419 = vmatmul.msk.f32.gmra.mxu0 %vm340_vm1, %v307_v53  ;;  %2471 = vmatmul.msk.f32.gmra.mxu2 %vm86_vm0, %v3026_v35  ;;  %v323_v57 = vmax.f32 %v282_v33, 0.0  ;;  %v324_v4 = vmax.f32 %v285_v52, 0.0 }
 0x143   :  { %2429 = vmatmul.msk.f32.gmra.mxu1 %vm340_vm1, %v317_v56 }
 0x144   :  { %v660_v61 = vpop.f32.mrf.mxu2 }
 0x145   :  { %v3381_v63 = vadd.f32 %v3247_v60, %v660_v61  ;;  %v711_v61 = vld [vmem:[%s5032_s7] sm:$0xff] }
 0x146   :  { %v266_v0 = vpop.f32.mrf.mxu0  ;;  %834 = vmatpush.msrb.mxu3 %v711_v61 }
 0x147   :  { %v267_v35 = vadd.f32 %v3198_v21, %v266_v0  ;;  %2081 = vrot.lane.b32.xlu2 %v3381_v63, %s2830_s6 }
 0x149   :  { %v318_v36 = vmax.f32 %v267_v35, 0.0  ;;  %2420 = vmatmul.msk.f32.gmra.mxu0 %vm340_vm1, %v308_v1 }
 0x14b   :  { %2430 = vmatmul.msk.f32.gmra.mxu1 %vm340_vm1, %v318_v36 }
 0x14c   :  { %v663_v6 = vpop.f32.mrf.mxu2 }
 0x14d   :  { %v3391_v13 = vadd.f32 %v3247_v60, %v663_v6 }
 0x14e   :  { %v269_v7 = vpop.f32.mrf.mxu0 }
 0x14f   :  { %v270_v11 = vadd.f32 %v3198_v21, %v269_v7  ;;  %2083 = vrot.lane.b32.xlu0 %v3391_v13, %s2830_s6 }
 0x151   :  { %v319_v14 = vmax.f32 %v270_v11, 0.0  ;;  %2421 = vmatmul.msk.f32.gmra.mxu0 %vm340_vm1, %v309_v8  ;;  %v288_v8 = vadd.f32 %v3198_v21, %v3124_v59 }
 0x153   :  { %2431 = vmatmul.msk.f32.vlgmr.msra.gmra.mxu3 %vm340_vm1, %v319_v14  ;;  %v325_v40 = vmax.f32 %v288_v8, 0.0 }
 0x154   :  { %v666_v16 = vpop.f32.mrf.mxu2 }
 0x155   :  { %v3402_v19 = vadd.f32 %v3247_v60, %v666_v16 }
 0x156   :  { %v272_v20 = vpop.f32.mrf.mxu0 }
 0x157   :  { %v273_v15 = vadd.f32 %v3198_v21, %v272_v20  ;;  %2085 = vrot.lane.b32.xlu1 %v3402_v19, %s2830_s6 }
 0x159   :  { %v320_v26 = vmax.f32 %v273_v15, 0.0  ;;  %v291_v15 = vadd.f32 %v3198_v21, %v3133_v62 }
 0x15b   :  { %2432 = vmatmul.msk.f32.gmra.mxu3 %vm340_vm1, %v320_v26 }
 0x15c   :  { %v669_v28 = vpop.f32.mrf.mxu2 }
 0x15d   :  { %v3412_v30 = vadd.f32 %v3247_v60, %v669_v28 }
 0x15e   :  { %v275_v32 = vpop.f32.mrf.mxu0 }
 0x15f   :  { %v276_v18 = vadd.f32 %v3198_v21, %v275_v32  ;;  %2087 = vrot.lane.b32.xlu2 %v3412_v30, %s2830_s6  ;;  %v326_v32 = vmax.f32 %v291_v15, 0.0 }
 0x161   :  { %v321_v38 = vmax.f32 %v276_v18, 0.0 }
 0x163   :  { %2433 = vmatmul.msk.f32.gmra.mxu3 %vm340_vm1, %v321_v38 }
 0x164   :  { %v672_v42 = vpop.f32.mrf.mxu2 }
 0x165   :  { %v3429_v43 = vadd.f32 %v3247_v60, %v672_v42  ;;  %v294_v42 = vadd.f32 %v3198_v21, %v3154_v5 }
 0x166   :  { %v454_v45 = vpop.f32.mrf.mxu0 }
 0x167   :  { %v455_v46 = vadd.f32 %v3424_v41, %v454_v45  ;;  %2089 = vrot.lane.b32.xlu0 %v3429_v43, %s2830_s6 }
 0x169   :  { %v550_v48 = vmax.f32 %v455_v46, 0.0 }
 0x16b   :  { %2434 = vmatmul.msk.f32.gmra.mxu3 %vm340_vm1, %v322_v47  ;;  %2211 = vrot.lane.b32.xlu1 %v550_v48, %s2831_s17  ;;  %v327_v48 = vmax.f32 %v294_v42, 0.0 }
 0x16c   :  { %v675_v50 = vpop.f32.mrf.mxu2 }
 0x16d   :  { %v3443_v56 = vadd.f32 %v3247_v60, %v675_v50 }
 0x16e   :  { %v457_v53 = vpop.f32.mrf.mxu0 }
 0x16f   :  { %v458_v54 = vadd.f32 %v3424_v41, %v457_v53 }
 0x171   :  { %v551_v58 = vmax.f32 %v458_v54, 0.0 }
 0x173   :  { %2435 = vmatmul.msk.f32.gmra.mxu3 %vm340_vm1, %v323_v57  ;;  %2213 = vrot.lane.b32.xlu2 %v551_v58, %s2831_s17 }
 0x174   :  { %v678_v0 = vpop.f32.mrf.mxu2  ;;  %2091 = vrot.lane.b32.xlu1 %v3443_v56, %s2830_s6 }
 0x175   :  { %v3456_v36 = vadd.f32 %v3247_v60, %v678_v0 }
 0x176   :  { %v460_v1 = vpop.f32.mrf.mxu0 }
 0x177   :  { %v461_v35 = vadd.f32 %v3424_v41, %v460_v1 }
 0x179   :  { %v552_v6 = vmax.f32 %v461_v35, 0.0 }
 0x17b   :  { %2436 = vmatmul.msk.f32.gmra.mxu3 %vm340_vm1, %v324_v4  ;;  %2215 = vrot.lane.b32.xlu0 %v552_v6, %s2831_s17 }
 0x17c   :  { %v681_v7 = vpop.f32.mrf.mxu2  ;;  %2093 = vrot.lane.b32.xlu2 %v3456_v36, %s2830_s6 }
 0x17d   :  { %v3466_v14 = vadd.f32 %v3247_v60, %v681_v7 }
 0x17e   :  { %v463_v55 = vpop.f32.mrf.mxu0 }
 0x17f   :  { %v464_v11 = vadd.f32 %v3424_v41, %v463_v55 }
 0x181   :  { %v553_v16 = vmax.f32 %v464_v11, 0.0 }
 0x183   :  { %2437 = vmatmul.msk.f32.gmra.mxu3 %vm340_vm1, %v325_v40  ;;  %2217 = vrot.lane.b32.xlu1 %v553_v16, %s2831_s17 }
 0x184   :  { %2095 = vrot.lane.b32.xlu0 %v3466_v14, %s2830_s6  ;;  %v684_v20 = vpop.f32.mrf.mxu2 }
 0x185   :  { %v3476_v28 = vadd.f32 %v3247_v60, %v684_v20 }
 0x186   :  { %v466_v59 = vpop.f32.mrf.mxu0 }
 0x187   :  { %v467_v26 = vadd.f32 %v3424_v41, %v466_v59 }
 0x188   :  { %v496_v27 = vpop.f32.mrf.mxu1 }
 0x189   :  { %v554_v18 = vmax.f32 %v467_v26, 0.0  ;;  %v497_v38 = vadd.f32 %v3424_v41, %v496_v27 }
 0x18b   :  { %v564_v39 = vmax.f32 %v497_v38, 0.0  ;;  %2438 = vmatmul.msk.f32.gmra.mxu3 %vm340_vm1, %v326_v32  ;;  %2219 = vrot.lane.b32.xlu2 %v554_v18, %s2831_s17 }
 0x18c   :  { %2097 = vrot.lane.b32.xlu1 %v3476_v28, %s2830_s6  ;;  %v687_v62 = vpop.f32.mrf.mxu2 }
 0x18d   :  { %2239 = vrot.lane.b32.xlu0 %v564_v39, %s2831_s17  ;;  %v3488_v46 = vadd.f32 %v3247_v60, %v687_v62 }
 0x18e   :  { %v469_v31 = vpop.f32.mrf.mxu0 }
 0x18f   :  { %v470_v45 = vadd.f32 %v3424_v41, %v469_v31 }
 0x190   :  { %v499_v47 = vpop.f32.mrf.mxu1 }
 0x191   :  { %v500_v49 = vadd.f32 %v3424_v41, %v499_v47  ;;  %v555_v50 = vmax.f32 %v470_v45, 0.0 }
 0x193   :  { %v565_v33 = vmax.f32 %v500_v49, 0.0  ;;  %2439 = vmatmul.msk.f32.gmra.mxu3 %vm340_vm1, %v327_v48  ;;  %2099 = vrot.lane.b32.xlu2 %v3488_v46, %s2830_s6 }
 0x194   :  { %v690_v5 = vpop.f32.mrf.mxu2 }
 0x195   :  { %2221 = vrot.lane.b32.xlu0 %v555_v50, %s2831_s17  ;;  %2241 = vrot.lane.b32.xlu1 %v565_v33, %s2831_s17  ;;  %v3499_v58 = vadd.f32 %v3247_v60, %v690_v5  ;;  %v971_v33 = vld [vmem:[%s5034_s9 + $0x38] sm:$0xff] }
 0x196   :  { %v472_v21 = vpop.f32.mrf.mxu0  ;;  %1080 = vmatpush.msrb.mxu1 %v971_v33 }
 0x197   :  { %v473_v53 = vadd.f32 %v3424_v41, %v472_v21 }
 0x198   :  { %v502_v54 = vpop.f32.mrf.mxu1 }
 0x199   :  { %v503_v57 = vadd.f32 %v3424_v41, %v502_v54  ;;  %v556_v0 = vmax.f32 %v473_v53, 0.0 }
 0x19b   :  { %v566_v61 = vmax.f32 %v503_v57, 0.0  ;;  %2472 = vmatmul.msk.f32.vlgmr.msrb.gmra.mxu3 %vm340_vm1, %v3259_v3 }
 0x19c   :  { %v693_v52 = vpop.f32.mrf.mxu2 }
 0x19d   :  { %2101 = vrot.lane.b32.xlu0 %v3499_v58, %s2830_s6  ;;  %2243 = vrot.lane.b32.xlu2 %v566_v61, %s2831_s17  ;;  %v3510_v7 = vadd.f32 %v3247_v60, %v693_v52  ;;  %v970_v52 = vld [vmem:[%s5034_s9 + $0x30] sm:$0xff] }
 0x19e   :  { %2223 = vrot.lane.b32.xlu1 %v556_v0, %s2831_s17  ;;  %v475_v1 = vpop.f32.mrf.mxu0  ;;  %1081 = vmatpush.msrb.mxu1 %v970_v52 }
 0x19f   :  { %v476_v35 = vadd.f32 %v3424_v41, %v475_v1 }
 0x1a0   :  { %v505_v4 = vpop.f32.mrf.mxu1 }
 0x1a1   :  { %v506_v6 = vadd.f32 %v3424_v41, %v505_v4  ;;  %v557_v8 = vmax.f32 %v476_v35, 0.0 }
 0x1a3   :  { %v567_v3 = vmax.f32 %v506_v6, 0.0  ;;  %2473 = vmatmul.msk.f32.gmra.mxu3 %vm340_vm1, %v3255_v2 }
 0x1a4   :  { %v696_v55 = vpop.f32.mrf.mxu2 }
 0x1a5   :  { %2245 = vrot.lane.b32.xlu0 %v567_v3, %s2831_s17  ;;  %2225 = vrot.lane.b32.xlu2 %v557_v8, %s2831_s17  ;;  %v3521_v15 = vadd.f32 %v3247_v60, %v696_v55  ;;  %v969_v55 = vld [vmem:[%s5034_s9 + $0x28] sm:$0xff] }
 0x1a6   :  { %2103 = vrot.lane.b32.xlu1 %v3510_v7, %s2830_s6  ;;  %v478_v11 = vpop.f32.mrf.mxu0  ;;  %1082 = vmatpush.msrb.mxu1 %v969_v55  ;;  %v3670_v55 = vpop.permute.xlu0 %2055 }
 0x1a7   :  { %v479_v40 = vadd.f32 %v3424_v41, %v478_v11 }
 0x1a8   :  { %v508_v16 = vpop.f32.mrf.mxu1 }
 0x1a9   :  { %v509_v20 = vadd.f32 %v3424_v41, %v508_v16  ;;  %v558_v59 = vmax.f32 %v479_v40, 0.0 }
 0x1ab   :  { %v568_v26 = vmax.f32 %v509_v20, 0.0  ;;  %2474 = vmatmul.msk.f32.gmra.mxu3 %vm340_vm1, %v3280_v12 }
 0x1ac   :  { %v699_v2 = vpop.f32.mrf.mxu2 }
 0x1ad   :  { %2227 = vrot.lane.b32.xlu0 %v558_v59, %s2831_s17  ;;  %2105 = vrot.lane.b32.xlu2 %v3521_v15, %s2830_s6  ;;  %v3532_v39 = vadd.f32 %v3247_v60, %v699_v2 }
 0x1ae   :  { %2247 = vrot.lane.b32.xlu1 %v568_v26, %s2831_s17  ;;  %v481_v27 = vpop.f32.mrf.mxu0  ;;  %v968_v26 = vld [vmem:[%s5034_s9 + $0x20] sm:$0xff] }
 0x1af   :  { %v482_v32 = vadd.f32 %v3424_v41, %v481_v27  ;;  %1083 = vmatpush.msrb.mxu1 %v968_v26 }
 0x1b0   :  { %v511_v18 = vpop.f32.mrf.mxu1 }
 0x1b1   :  { %v512_v38 = vadd.f32 %v3424_v41, %v511_v18  ;;  %v559_v12 = vmax.f32 %v482_v32, 0.0  ;;  %v967_v32 = vld [vmem:[%s5034_s9 + $0x18] sm:$0xff] }
 0x1b2   :  { %1084 = vmatpush.msrb.mxu1 %v967_v32 }
 0x1b3   :  { %v569_v62 = vmax.f32 %v512_v38, 0.0  ;;  %2475 = vmatmul.msk.f32.gmra.mxu3 %vm340_vm1, %v3270_v9 }
 0x1b4   :  { %v702_v42 = vpop.f32.mrf.mxu2 }
 0x1b5   :  { %2107 = vrot.lane.b32.xlu0 %v3532_v39, %s2830_s6  ;;  %2249 = vrot.lane.b32.xlu2 %v569_v62, %s2831_s17  ;;  %v3543_v49 = vadd.f32 %v3247_v60, %v702_v42  ;;  %v966_v62 = vld [vmem:[%s5034_s9 + $0x10] sm:$0xff] }
 0x1b6   :  { %2229 = vrot.lane.b32.xlu1 %v559_v12, %s2831_s17  ;;  %v484_v31 = vpop.f32.mrf.mxu0  ;;  %1085 = vmatpush.msrb.mxu1 %v966_v62 }
 0x1b7   :  { %v485_v45 = vadd.f32 %v3424_v41, %v484_v31  ;;  %v965_v31 = vld [vmem:[%s5034_s9 + $0x8] sm:$0xff] }
 0x1b8   :  { %v514_v47 = vpop.f32.mrf.mxu1  ;;  %1086 = vmatpush.msrb.mxu1 %v965_v31 }
 0x1b9   :  { %v515_v48 = vadd.f32 %v3424_v41, %v514_v47  ;;  %v560_v50 = vmax.f32 %v485_v45, 0.0 }
 0x1bb   :  { %v570_v9 = vmax.f32 %v515_v48, 0.0  ;;  %2476 = vmatmul.msk.f32.gmra.mxu3 %vm340_vm1, %v3293_v17  ;;  %v964_v48 = vld [vmem:[%s5034_s9] sm:$0xff] }
 0x1bc   :  { %v705_v21 = vpop.f32.mrf.mxu2  ;;  %1087 = vmatpush.msrb.mxu1 %v964_v48 }
 0x1bd   :  { %2251 = vrot.lane.b32.xlu0 %v570_v9, %s2831_s17  ;;  %2231 = vrot.lane.b32.xlu2 %v560_v50, %s2831_s17  ;;  %v3557_v17 = vadd.f32 %v3247_v60, %v705_v21 }
 0x1be   :  { %2109 = vrot.lane.b32.xlu1 %v3543_v49, %s2830_s6  ;;  %v487_v5 = vpop.f32.mrf.mxu0 }
 0x1bf   :  { %v488_v53 = vadd.f32 %v3424_v41, %v487_v5 }
 0x1c0   :  { %v517_v54 = vpop.f32.mrf.mxu1 }
 0x1c1   :  { %v518_v57 = vadd.f32 %v3424_v41, %v517_v54  ;;  %v561_v61 = vmax.f32 %v488_v53, 0.0 }
 0x1c3   :  { %v571_v0 = vmax.f32 %v518_v57, 0.0  ;;  %2477 = vmatmul.msk.f32.gmra.mxu3 %vm340_vm1, %v3273_v10 }
 0x1c4   :  { %v708_v35 = vpop.f32.mrf.mxu2 }
 0x1c5   :  { %2233 = vrot.lane.b32.xlu0 %v561_v61, %s2831_s17  ;;  %2111 = vrot.lane.b32.xlu2 %v3557_v17, %s2830_s6  ;;  %v3571_v10 = vadd.f32 %v3247_v60, %v708_v35 }
 0x1c6   :  { %2253 = vrot.lane.b32.xlu1 %v571_v0, %s2831_s17  ;;  %v490_v1 = vpop.f32.mrf.mxu0 }
 0x1c7   :  { %v491_v4 = vadd.f32 %v3424_v41, %v490_v1 }
 0x1c8   :  { %v520_v6 = vpop.f32.mrf.mxu1 }
 0x1c9   :  { %v521_v8 = vadd.f32 %v3424_v41, %v520_v6  ;;  %v562_v11 = vmax.f32 %v491_v4, 0.0 }
 0x1cb   :  { %v572_v3 = vmax.f32 %v521_v8, 0.0  ;;  %2478 = vmatmul.msk.f32.gmra.mxu3 %vm340_vm1, %v3297_v22 }
 0x1cd   :  { %2255 = vrot.lane.b32.xlu2 %v572_v3, %s2831_s17  ;;  %2113 = vrot.lane.b32.xlu0 %v3571_v10, %s2830_s6 }
 0x1ce   :  { %2235 = vrot.lane.b32.xlu1 %v562_v11, %s2831_s17  ;;  %v493_v40 = vpop.f32.mrf.mxu0 }
 0x1cf   :  { %v494_v60 = vadd.f32 %v3424_v41, %v493_v40 }
 0x1d1   :  { %v563_v16 = vmax.f32 %v494_v60, 0.0 }
 0x1d3   :  { %2479 = vmatmul.msk.f32.gmra.mxu3 %vm340_vm1, %v3316_v25 }
 0x1d5   :  { %2237 = vrot.lane.b32.xlu2 %v563_v16, %s2831_s17  ;;  %v3677_v16 = vpop.permute.xlu1 %2053 }
 0x1d6   :  { %v523_v22 = vpop.f32.mrf.mxu3 }
 0x1d7   :  { %v524_v20 = vadd.f32 %v3424_v41, %v523_v22  ;;  %v3679_v22 = vpop.permute.xlu0 %2059 }
 0x1d9   :  { %v573_v59 = vmax.f32 %v524_v20, 0.0  ;;  %v3681_v20 = vpop.permute.xlu2 %2051 }
 0x1db   :  { %2480 = vmatmul.msk.f32.gmra.mxu3 %vm340_vm1, %v3300_v23  ;;  %2257 = vrot.lane.b32.xlu0 %v573_v59, %s2831_s17 }
 0x1de   :  { %v526_v2 = vpop.f32.mrf.mxu3 }
 0x1df   :  { %v527_v27 = vadd.f32 %v3424_v41, %v526_v2  ;;  %v3687_v2 = vpop.permute.xlu1 %2061 }
 0x1e0   :  { %5081 = vst [vmem:[#allocation5_spill] sm:$0xff] %v3687_v2 }
 0x1e1   :  { %v574_v25 = vmax.f32 %v527_v27, 0.0  ;;  %v3689_v27 = vpop.permute.xlu0 %2065 }
 0x1e2   :  { %5082 = vst [vmem:[#allocation6_spill] sm:$0xff] %v3689_v27 }
 0x1e3   :  { %2481 = vmatmul.msk.f32.gmra.mxu3 %vm340_vm1, %v3320_v34  ;;  %2259 = vrot.lane.b32.xlu1 %v574_v25, %s2831_s17  ;;  %v3694_v25 = vpop.permute.xlu2 %2057 }
 0x1e6   :  { %v529_v18 = vpop.f32.mrf.mxu3 }
 0x1e7   :  { %v530_v38 = vadd.f32 %v3424_v41, %v529_v18 }
 0x1e9   :  { %v575_v23 = vmax.f32 %v530_v38, 0.0  ;;  %v3700_v38 = vpop.permute.xlu1 %2067 }
 0x1ea   :  { %5083 = vst [vmem:[#allocation7_spill] sm:$0xff] %v3700_v38 }
 0x1eb   :  { %2482 = vmatmul.msk.f32.gmra.mxu3 %vm340_vm1, %v3341_v44  ;;  %2261 = vrot.lane.b32.xlu2 %v575_v23, %s2831_s17  ;;  %v3702_v23 = vpop.permute.xlu0 %2071 }
 0x1ec   :  { %5084 = vst [vmem:[#allocation8_spill] sm:$0xff] %v3702_v23 }
 0x1ee   :  { %v532_v12 = vpop.f32.mrf.mxu3 }
 0x1ef   :  { %v533_v42 = vadd.f32 %v3424_v41, %v532_v12  ;;  %v3704_v12 = vpop.permute.xlu2 %2063 }
 0x1f0   :  { %5085 = vst [vmem:[#allocation9_spill] sm:$0xff] %v3704_v12 }
 0x1f1   :  { %v576_v34 = vmax.f32 %v533_v42, 0.0 }
 0x1f3   :  { %2483 = vmatmul.msk.f32.gmra.mxu3 %vm340_vm1, %v3323_v37  ;;  %2263 = vrot.lane.b32.xlu0 %v576_v34, %s2831_s17  ;;  %v3710_v34 = vpop.permute.xlu1 %2073  ;;  %v3712_v31 = vpop.permute.xlu0 %2077 }
 0x1f4   :  { %5086 = vst [vmem:[#allocation10_spill] sm:$0xff] %v3710_v34 }
 0x1f5   :  { %5087 = vst [vmem:[#allocation11_spill] sm:$0xff] %v3712_v31 }
 0x1f6   :  { %v535_v45 = vpop.f32.mrf.mxu3 }
 0x1f7   :  { %v536_v47 = vadd.f32 %v3424_v41, %v535_v45 }
 0x1f9   :  { %v577_v44 = vmax.f32 %v536_v47, 0.0  ;;  %v3715_v47 = vpop.permute.xlu2 %2069 }
 0x1fa   :  { %5088 = vst [vmem:[#allocation12_spill] sm:$0xff] %v3715_v47 }
 0x1fb   :  { %2484 = vmatmul.msk.f32.gmra.mxu3 %vm340_vm1, %v3345_v24  ;;  %2265 = vrot.lane.b32.xlu1 %v577_v44, %s2831_s17 }
 0x1fe   :  { %v538_v50 = vpop.f32.mrf.mxu3 }
 0x1ff   :  { %v539_v9 = vadd.f32 %v3424_v41, %v538_v50  ;;  %v3721_v50 = vpop.permute.xlu1 %2079 }
 0x200   :  { %5089 = vst [vmem:[#allocation13_spill] sm:$0xff] %v3721_v50 }
 0x201   :  { %v578_v37 = vmax.f32 %v539_v9, 0.0  ;;  %v3723_v9 = vpop.permute.xlu0 %2083 }
 0x202   :  { %5090 = vst [vmem:[#allocation14_spill] sm:$0xff] %v3723_v9 }
 0x203   :  { %2485 = vmatmul.msk.f32.gmra.mxu3 %vm340_vm1, %v3364_v29  ;;  %2267 = vrot.lane.b32.xlu2 %v578_v37, %s2831_s17  ;;  %v3640_v29 = vld [vmem:[%s5033_s8] ss:$0 sm:$0xff] }
 0x206   :  { %v3625_v33 = vpop.f32.mrf.mxu3 }
 0x207   :  { %5078 = vst [vmem:[#allocation2_spill] sm:$0xff] %v3625_v33 }
 0x20b   :  { %2486 = vmatmul.msk.f32.gmra.mxu3 %vm340_vm1, %v3361_v51 }
 0x20e   :  { %v3629_v5 = vpop.f32.mrf.mxu3 }
 0x20f   :  { %5079 = vst [vmem:[#allocation3_spill] sm:$0xff] %v3629_v5 }
 0x213   :  { %2487 = vmatmul.msk.f32.gmra.mxu3 %vm340_vm1, %v3381_v63 }
 0x216   :  { %v3633_v24 = vpop.f32.mrf.mxu3 }
 0x217   :  { %5080 = vst [vmem:[#allocation4_spill] sm:$0xff] %v3633_v24 }
 0x21b   :  { %2488 = vmatmul.msk.f32.gmra.mxu3 %vm340_vm1, %v3391_v13 }
 0x21e   :  { %v836_v41 = vpop.f32.mrf.mxu3 }
 0x21f   :  { %v837_v21 = vadd.f32 %v3640_v29, %v836_v41  ;;  %v3725_v41 = vpop.permute.xlu2 %2075 }
 0x220   :  { %5091 = vst [vmem:[#allocation15_spill] sm:$0xff] %v3725_v41 }
 0x221   :  { %v932_v53 = vmax.f32 %v837_v21, 0.0 }
 0x223   :  { %2489 = vmatmul.msk.f32.gmra.mxu3 %vm340_vm1, %v3402_v19  ;;  %2504 = vmatmul.msk.f32.vlgmr.msrb.gmra.mxu1 %vm340_vm1, %v932_v53 }
 0x226   :  { %v839_v51 = vpop.f32.mrf.mxu3 }
 0x227   :  { %v840_v63 = vadd.f32 %v3640_v29, %v839_v51  ;;  %v3731_v51 = vpop.permute.xlu1 %2085 }
 0x228   :  { %5092 = vst [vmem:[#allocation16_spill] sm:$0xff] %v3731_v51 }
 0x229   :  { %v933_v54 = vmax.f32 %v840_v63, 0.0  ;;  %v3733_v63 = vpop.permute.xlu0 %2089 }
 0x22a   :  { %5093 = vst [vmem:[#allocation17_spill] sm:$0xff] %v3733_v63 }
 0x22b   :  { %2490 = vmatmul.msk.f32.gmra.mxu3 %vm340_vm1, %v3412_v30  ;;  %2505 = vmatmul.msk.f32.gmra.mxu1 %vm340_vm1, %v933_v54  ;;  %v3738_v54 = vpop.permute.xlu2 %2081 }
 0x22c   :  { %5094 = vst [vmem:[#allocation18_spill] sm:$0xff] %v3738_v54 }
 0x22e   :  { %v842_v13 = vpop.f32.mrf.mxu3 }
 0x22f   :  { %v843_v57 = vadd.f32 %v3640_v29, %v842_v13 }
 0x231   :  { %v934_v61 = vmax.f32 %v843_v57, 0.0 }
 0x233   :  { %2491 = vmatmul.msk.f32.gmra.mxu3 %vm340_vm1, %v3429_v43  ;;  %2506 = vmatmul.msk.f32.gmra.mxu1 %vm340_vm1, %v934_v61  ;;  %v3742_v61 = vpop.permute.xlu1 %2211 }
 0x236   :  { %v845_v19 = vpop.f32.mrf.mxu3 }
 0x237   :  { %v846_v0 = vadd.f32 %v3640_v29, %v845_v19  ;;  %v3744_v19 = vpop.permute.xlu0 %2215 }
 0x239   :  { %v935_v52 = vmax.f32 %v846_v0, 0.0  ;;  %v3749_v0 = vld [vmem:[%s5035_s10] ss:$0 sm:$0xff] }
 0x23b   :  { %2492 = vmatmul.msk.f32.gmra.mxu3 %vm340_vm1, %v3443_v56  ;;  %2507 = vmatmul.msk.f32.gmra.mxu1 %vm340_vm1, %v935_v52  ;;  %v3751_v52 = vpop.permute.xlu2 %2087 }
 0x23c   :  { %5095 = vst [vmem:[#allocation19_spill] sm:$0xff] %v3751_v52 }
 0x23e   :  { %v848_v30 = vpop.f32.mrf.mxu3 }
 0x23f   :  { %v849_v1 = vadd.f32 %v3640_v29, %v848_v30 }
 0x241   :  { %v936_v35 = vmax.f32 %v849_v1, 0.0 }
 0x243   :  { %2493 = vmatmul.msk.f32.gmra.mxu3 %vm340_vm1, %v3456_v36  ;;  %2508 = vmatmul.msk.f32.gmra.mxu1 %vm340_vm1, %v936_v35 }
 0x246   :  { %v851_v43 = vpop.f32.mrf.mxu3 }
 0x247   :  { %v852_v4 = vadd.f32 %v3640_v29, %v851_v43 }
 0x249   :  { %v937_v6 = vmax.f32 %v852_v4, 0.0 }
 0x24b   :  { %2494 = vmatmul.msk.f32.gmra.mxu3 %vm340_vm1, %v3466_v14  ;;  %2509 = vmatmul.msk.f32.gmra.mxu1 %vm340_vm1, %v937_v6 }
 0x24e   :  { %v854_v56 = vpop.f32.mrf.mxu3 }
 0x24f   :  { %v855_v8 = vadd.f32 %v3640_v29, %v854_v56  ;;  %v3762_v56 = vpop.permute.xlu1 %2091 }
 0x250   :  { %5096 = vst [vmem:[#allocation20_spill] sm:$0xff] %v3762_v56 }
 0x251   :  { %v938_v3 = vmax.f32 %v855_v8, 0.0  ;;  %v3764_v8 = vpop.permute.xlu0 %2095 }
 0x252   :  { %5097 = vst [vmem:[#allocation21_spill] sm:$0xff] %v3764_v8 }
 0x253   :  { %2495 = vmatmul.msk.f32.gmra.mxu3 %vm340_vm1, %v3476_v28  ;;  %2510 = vmatmul.msk.f32.gmra.mxu1 %vm340_vm1, %v938_v3 }
 0x256   :  { %v857_v36 = vpop.f32.mrf.mxu3 }
 0x257   :  { %v858_v11 = vadd.f32 %v3640_v29, %v857_v36 }
 0x259   :  { %v939_v40 = vmax.f32 %v858_v11, 0.0 }
 0x25b   :  { %2496 = vmatmul.msk.f32.gmra.mxu3 %vm340_vm1, %v3488_v46  ;;  %2511 = vmatmul.msk.f32.gmra.mxu1 %vm340_vm1, %v939_v40  ;;  %v3767_v40 = vpop.permute.xlu2 %2213 }
 0x25e   :  { %v860_v14 = vpop.f32.mrf.mxu3 }
 0x25f   :  { %v861_v60 = vadd.f32 %v3640_v29, %v860_v14 }
 0x261   :  { %v940_v28 = vmax.f32 %v861_v60, 0.0 }
 0x263   :  { %2497 = vmatmul.msk.f32.gmra.mxu3 %vm340_vm1, %v3499_v58  ;;  %2512 = vmatmul.msk.f32.gmra.mxu1 %vm340_vm1, %v940_v28 }
 0x266   :  { %v863_v59 = vpop.f32.mrf.mxu3 }
 0x267   :  { %v864_v46 = vadd.f32 %v3640_v29, %v863_v59 }
 0x269   :  { %v941_v26 = vmax.f32 %v864_v46, 0.0  ;;  %v3777_v46 = vpop.permute.xlu1 %2217 }
 0x26b   :  { %2498 = vmatmul.msk.f32.gmra.mxu3 %vm340_vm1, %v3510_v7  ;;  %2513 = vmatmul.msk.f32.gmra.mxu1 %vm340_vm1, %v941_v26 }
 0x26e   :  { %v866_v32 = vpop.f32.mrf.mxu3 }
 0x26f   :  { %v867_v58 = vadd.f32 %v3640_v29, %v866_v32  ;;  %v3779_v32 = vpop.permute.xlu0 %2239 }
 0x270   :  { %5098 = vst [vmem:[#allocation22_spill] sm:$0xff] %v3779_v32 }
 0x271   :  { %v942_v18 = vmax.f32 %v867_v58, 0.0 }
 0x273   :  { %2499 = vmatmul.msk.f32.gmra.mxu3 %vm340_vm1, %v3521_v15  ;;  %2514 = vmatmul.msk.f32.gmra.mxu1 %vm340_vm1, %v942_v18 }
 0x276   :  { %v869_v62 = vpop.f32.mrf.mxu3 }
 0x277   :  { %v870_v7 = vadd.f32 %v3640_v29, %v869_v62  ;;  %v3782_v62 = vpop.permute.xlu2 %2093 }
 0x278   :  { %5099 = vst [vmem:[#allocation23_spill] sm:$0xff] %v3782_v62 }
 0x279   :  { %v943_v42 = vmax.f32 %v870_v7, 0.0 }
 0x27b   :  { %2500 = vmatmul.msk.f32.gmra.mxu3 %vm340_vm1, %v3532_v39  ;;  %2515 = vmatmul.msk.f32.gmra.mxu1 %vm340_vm1, %v943_v42 }
 0x27e   :  { %v872_v15 = vpop.f32.mrf.mxu3 }
 0x27f   :  { %v873_v45 = vadd.f32 %v3640_v29, %v872_v15 }
 0x281   :  { %v944_v44 = vmax.f32 %v873_v45, 0.0 }
 0x283   :  { %2501 = vmatmul.msk.f32.gmra.mxu3 %vm340_vm1, %v3543_v49  ;;  %2516 = vmatmul.msk.f32.gmra.mxu1 %vm340_vm1, %v944_v44  ;;  %v3792_v44 = vpop.permute.xlu1 %2097 }
 0x284   :  { %5100 = vst [vmem:[#allocation24_spill] sm:$0xff] %v3792_v44 }
 0x286   :  { %v875_v48 = vpop.f32.mrf.mxu3 }
 0x287   :  { %v876_v39 = vadd.f32 %v3640_v29, %v875_v48 }
 0x289   :  { %v945_v37 = vmax.f32 %v876_v39, 0.0 }
 0x28b   :  { %2502 = vmatmul.msk.f32.gmra.mxu3 %vm340_vm1, %v3557_v17  ;;  %2517 = vmatmul.msk.f32.gmra.mxu1 %vm340_vm1, %v945_v37 }
 0x28e   :  { %v878_v21 = vpop.f32.mrf.mxu3 }
 0x28f   :  { %v879_v49 = vadd.f32 %v3640_v29, %v878_v21  ;;  %v3795_v21 = vpop.permute.xlu0 %2221 }
 0x290   :  { %5101 = vst [vmem:[#allocation25_spill] sm:$0xff] %v3795_v21 }
 0x291   :  { %v946_v53 = vmax.f32 %v879_v49, 0.0 }
 0x293   :  { %2503 = vmatmul.msk.f32.gmra.mxu3 %vm340_vm1, %v3571_v10  ;;  %2518 = vmatmul.msk.f32.gmra.mxu1 %vm340_vm1, %v946_v53 }
 0x296   :  { %v881_v13 = vpop.f32.mrf.mxu3 }
 0x297   :  { %v882_v17 = vadd.f32 %v3640_v29, %v881_v13  ;;  %v3800_v13 = vpop.permute.xlu2 %2219 }
 0x299   :  { %v947_v57 = vmax.f32 %v882_v17, 0.0 }
 0x29b   :  { %2519 = vmatmul.msk.f32.gmra.mxu1 %vm340_vm1, %v947_v57 }
 0x29e   :  { %v884_v10 = vpop.f32.mrf.mxu3 }
 0x29f   :  { %v885_v30 = vadd.f32 %v3640_v29, %v884_v10 }
 0x2a0   :  { %v1089_v1 = vpop.f32.mrf.mxu1 }
 0x2a1   :  { %v948_v35 = vmax.f32 %v885_v30, 0.0  ;;  %v3755_v43 = vadd.f32 %v3749_v0, %v1089_v1  ;;  %v3806_v30 = vpop.permute.xlu1 %2241 }
 0x2a2   :  { %5102 = vst [vmem:[#allocation26_spill] sm:$0xff] %v3806_v30 }
 0x2a3   :  { %2520 = vmatmul.msk.f32.gmra.mxu1 %vm340_vm1, %v948_v35  ;;  %v1186_v4 = vsel %vm1185_vm2, %v3755_v43, -inf  ;;  %v1539_v6 = vsel %vm1538_vm3, %v3755_v43, -inf }
 0x2a4   :  { %1187 = vmax.xlane.f32.xlu0 %v1186_v4  ;;  %1540 = vmax.xlane.f32.xlu1 %v1539_v6  ;;  %v3811_v6 = vpop.permute.xlu2 %2099 }
 0x2a5   :  { %5103 = vst [vmem:[#allocation27_spill] sm:$0xff] %v3811_v6 }
 0x2a6   :  { %v887_v3 = vpop.f32.mrf.mxu3 }
 0x2a7   :  { %v888_v36 = vadd.f32 %v3640_v29, %v887_v3  ;;  %v3813_v3 = vpop.permute.xlu0 %2101 }
 0x2a8   :  { %v1092_v11 = vpop.f32.mrf.mxu1  ;;  %5104 = vst [vmem:[#allocation28_spill] sm:$0xff] %v3813_v3 }
 0x2a9   :  { %v949_v14 = vmax.f32 %v888_v36, 0.0  ;;  %v3770_v60 = vadd.f32 %v3749_v0, %v1092_v11 }
 0x2ab   :  { %2521 = vmatmul.msk.f32.gmra.mxu1 %vm340_vm1, %v949_v14  ;;  %v1189_v28 = vsel %vm1185_vm2, %v3770_v60, -inf  ;;  %v1542_v59 = vsel %vm1538_vm3, %v3770_v60, -inf }
 0x2ac   :  { %1190 = vmax.xlane.f32.xlu0 %v1189_v28  ;;  %1543 = vmax.xlane.f32.xlu2 %v1542_v59 }
 0x2ae   :  { %v890_v26 = vpop.f32.mrf.mxu3 }
 0x2af   :  { %v891_v58 = vadd.f32 %v3640_v29, %v890_v26 }
 0x2b0   :  { %v1095_v18 = vpop.f32.mrf.mxu1 }
 0x2b1   :  { %v950_v7 = vmax.f32 %v891_v58, 0.0  ;;  %v3785_v42 = vadd.f32 %v3749_v0, %v1095_v18  ;;  %v3824_v18 = vpop.permute.xlu1 %2223 }
 0x2b2   :  { %5105 = vst [vmem:[#allocation29_spill] sm:$0xff] %v3824_v18 }
 0x2b3   :  { %2522 = vmatmul.msk.f32.gmra.mxu1 %vm340_vm1, %v950_v7  ;;  %v1545_v15 = vsel %vm1538_vm3, %v3785_v42, -inf  ;;  %v1192_v45 = vsel %vm1185_vm2, %v3785_v42, -inf }
 0x2b4   :  { %1546 = vmax.xlane.f32.xlu0 %v1545_v15  ;;  %1193 = vmax.xlane.f32.xlu1 %v1192_v45  ;;  %v3831_v45 = vpop.permute.xlu2 %2243 }
 0x2b5   :  { %5106 = vst [vmem:[#allocation30_spill] sm:$0xff] %v3831_v45 }
 0x2b6   :  { %v893_v48 = vpop.f32.mrf.mxu3 }
 0x2b7   :  { %v894_v39 = vadd.f32 %v3640_v29, %v893_v48  ;;  %v3833_v48 = vpop.permute.xlu0 %2245 }
 0x2b8   :  { %v1098_v37 = vpop.f32.mrf.mxu1  ;;  %5107 = vst [vmem:[#allocation31_spill] sm:$0xff] %v3833_v48 }
 0x2b9   :  { %v951_v49 = vmax.f32 %v894_v39, 0.0  ;;  %v3798_v53 = vadd.f32 %v3749_v0, %v1098_v37 }
 0x2bb   :  { %2523 = vmatmul.msk.f32.gmra.mxu1 %vm340_vm1, %v951_v49  ;;  %v1195_v17 = vsel %vm1185_vm2, %v3798_v53, -inf  ;;  %v1548_v11 = vsel %vm1538_vm3, %v3798_v53, -inf }
 0x2bc   :  { %1196 = vmax.xlane.f32.xlu1 %v1195_v17 }
 0x2be   :  { %v896_v57 = vpop.f32.mrf.mxu3 }
 0x2bf   :  { %v897_v10 = vadd.f32 %v3640_v29, %v896_v57 }
 0x2c0   :  { %v1101_v1 = vpop.f32.mrf.mxu1 }
 0x2c1   :  { %v952_v35 = vmax.f32 %v897_v10, 0.0  ;;  %v3809_v4 = vadd.f32 %v3749_v0, %v1101_v1 }
 0x2c3   :  { %2524 = vmatmul.msk.f32.gmra.mxu1 %vm340_vm1, %v952_v35  ;;  %v1198_v36 = vsel %vm1185_vm2, %v3809_v4, -inf  ;;  %v1551_v15 = vsel %vm1538_vm3, %v3809_v4, -inf }
 0x2c4   :  { %1199 = vmax.xlane.f32.xlu2 %v1198_v36  ;;  %1549 = vmax.xlane.f32.xlu1 %v1548_v11  ;;  %v3846_v36 = vpop.permute.xlu1 %2103 }
 0x2c5   :  { %5108 = vst [vmem:[#allocation32_spill] sm:$0xff] %v3846_v36 }
 0x2c6   :  { %v899_v14 = vpop.f32.mrf.mxu3 }
 0x2c7   :  { %v900_v28 = vadd.f32 %v3640_v29, %v899_v14  ;;  %v3848_v14 = vpop.permute.xlu2 %2225 }
 0x2c8   :  { %v1104_v59 = vpop.f32.mrf.mxu1  ;;  %5109 = vst [vmem:[#allocation33_spill] sm:$0xff] %v3848_v14 }
 0x2c9   :  { %v953_v26 = vmax.f32 %v900_v28, 0.0  ;;  %v3822_v58 = vadd.f32 %v3749_v0, %v1104_v59  ;;  %v3850_v28 = vpop.permute.xlu0 %2227 }
 0x2ca   :  { %5110 = vst [vmem:[#allocation34_spill] sm:$0xff] %v3850_v28 }
 0x2cb   :  { %2525 = vmatmul.msk.f32.gmra.mxu1 %vm340_vm1, %v953_v26  ;;  %v1554_v7 = vsel %vm1538_vm3, %v3822_v58, -inf  ;;  %v1201_v1 = vsel %vm1185_vm2, %v3822_v58, -inf }
 0x2cc   :  { %1555 = vmax.xlane.f32.xlu0 %v1554_v7  ;;  %1552 = vmax.xlane.f32.xlu2 %v1551_v15 }
 0x2ce   :  { %v902_v39 = vpop.f32.mrf.mxu3 }
 0x2cf   :  { %v903_v37 = vadd.f32 %v3640_v29, %v902_v39 }
 0x2d0   :  { %v1107_v49 = vpop.f32.mrf.mxu1 }
 0x2d1   :  { %v954_v17 = vmax.f32 %v903_v37, 0.0  ;;  %v3837_v57 = vadd.f32 %v3749_v0, %v1107_v49  ;;  %v3861_v49 = vpop.permute.xlu1 %2247 }
 0x2d2   :  { %5111 = vst [vmem:[#allocation35_spill] sm:$0xff] %v3861_v49 }
 0x2d3   :  { %2526 = vmatmul.msk.f32.gmra.mxu1 %vm340_vm1, %v954_v17  ;;  %v1204_v10 = vsel %vm1185_vm2, %v3837_v57, -inf  ;;  %v1557_v35 = vsel %vm1538_vm3, %v3837_v57, -inf }
 0x2d4   :  { %1205 = vmax.xlane.f32.xlu0 %v1204_v10  ;;  %1202 = vmax.xlane.f32.xlu2 %v1201_v1 }
 0x2d5   :  { %1558 = vmax.xlane.f32.xlu1 %v1557_v35  ;;  %v3864_v35 = vpop.permute.xlu2 %2105 }
 0x2d6   :  { %v905_v11 = vpop.f32.mrf.mxu3  ;;  %5112 = vst [vmem:[#allocation36_spill] sm:$0xff] %v3864_v35 }
 0x2d7   :  { %v906_v59 = vadd.f32 %v3640_v29, %v905_v11  ;;  %v3866_v11 = vpop.permute.xlu0 %2107 }
 0x2d8   :  { %v1110_v26 = vpop.f32.mrf.mxu1  ;;  %5113 = vst [vmem:[#allocation37_spill] sm:$0xff] %v3866_v11 }
 0x2d9   :  { %v955_v7 = vmax.f32 %v906_v59, 0.0  ;;  %v3854_v15 = vadd.f32 %v3749_v0, %v1110_v26  ;;  %v3877_v36 = vpop.permute.xlu1 %2229 }
 0x2da   :  { %5114 = vst [vmem:[#allocation38_spill] sm:$0xff] %v3877_v36 }
 0x2db   :  { %2527 = vmatmul.msk.f32.gmra.mxu1 %vm340_vm1, %v955_v7  ;;  %v1560_v39 = vsel %vm1538_vm3, %v3854_v15, -inf  ;;  %v1207_v37 = vsel %vm1185_vm2, %v3854_v15, -inf }
 0x2dc   :  { %1561 = vmax.xlane.f32.xlu2 %v1560_v39 }
 0x2dd   :  { %1208 = vmax.xlane.f32.xlu1 %v1207_v37  ;;  %v3882_v56 = vpop.permute.xlu2 %2249 }
 0x2de   :  { %v908_v17 = vpop.f32.mrf.mxu3  ;;  %5115 = vst [vmem:[#allocation39_spill] sm:$0xff] %v3882_v56 }
 0x2df   :  { %v909_v10 = vadd.f32 %v3640_v29, %v908_v17 }
 0x2e0   :  { %v1113_v1 = vpop.f32.mrf.mxu1 }
 0x2e1   :  { %v956_v59 = vmax.f32 %v909_v10, 0.0  ;;  %v3869_v26 = vadd.f32 %v3749_v0, %v1113_v1  ;;  %v3895_v11 = vpop.permute.xlu1 %2109 }
 0x2e2   :  { %5117 = vst [vmem:[#allocation41_spill] sm:$0xff] %v3895_v11 }
 0x2e3   :  { %2528 = vmatmul.msk.f32.gmra.mxu1 %vm340_vm1, %v956_v59  ;;  %v1563_v7 = vsel %vm1538_vm3, %v3869_v26, -inf  ;;  %v1210_v39 = vsel %vm1185_vm2, %v3869_v26, -inf  ;;  %v3884_v59 = vpop.permute.xlu0 %2251 }
 0x2e4   :  { %1564 = vmax.xlane.f32.xlu0 %v1563_v7  ;;  %1211 = vmax.xlane.f32.xlu2 %v1210_v39  ;;  %5116 = vst [vmem:[#allocation40_spill] sm:$0xff] %v3884_v59 }
 0x2e6   :  { %v911_v37 = vpop.f32.mrf.mxu3 }
 0x2e7   :  { %v912_v17 = vadd.f32 %v3640_v29, %v911_v37 }
 0x2e8   :  { %v1116_v44 = vpop.f32.mrf.mxu1 }
 0x2e9   :  { %v957_v10 = vmax.f32 %v912_v17, 0.0  ;;  %v3880_v1 = vadd.f32 %v3749_v0, %v1116_v44 }
 0x2eb   :  { %2529 = vmatmul.msk.f32.gmra.mxu1 %vm340_vm1, %v957_v10  ;;  %v1213_v7 = vsel %vm1185_vm2, %v3880_v1, -inf  ;;  %v1566_v39 = vsel %vm1538_vm3, %v3880_v1, -inf }
 0x2ec   :  { %1214 = vmax.xlane.f32.xlu0 %v1213_v7  ;;  %1567 = vmax.xlane.f32.xlu1 %v1566_v39  ;;  %v3902_v7 = vpop.permute.xlu2 %2231  ;;  %v3904_v39 = vpop.permute.xlu0 %2233 }
 0x2ed   :  { %5118 = vst [vmem:[#allocation42_spill] sm:$0xff] %v3902_v7 }
 0x2ee   :  { %v914_v37 = vpop.f32.mrf.mxu3  ;;  %5119 = vst [vmem:[#allocation43_spill] sm:$0xff] %v3904_v39 }
 0x2ef   :  { %v915_v17 = vadd.f32 %v3640_v29, %v914_v37 }
 0x2f0   :  { %v1119_v48 = vpop.f32.mrf.mxu1 }
 0x2f1   :  { %v958_v44 = vmax.f32 %v915_v17, 0.0  ;;  %v3893_v51 = vadd.f32 %v3749_v0, %v1119_v48 }
 0x2f3   :  { %2530 = vmatmul.msk.f32.gmra.mxu1 %vm340_vm1, %v958_v44  ;;  %v1569_v10 = vsel %vm1538_vm3, %v3893_v51, -inf  ;;  %v1216_v59 = vsel %vm1185_vm2, %v3893_v51, -inf }
 0x2f4   :  { %1570 = vmax.xlane.f32.xlu2 %v1569_v10  ;;  %1217 = vmax.xlane.f32.xlu1 %v1216_v59  ;;  %v3915_v10 = vpop.permute.xlu1 %2253  ;;  %v3917_v3 = vpop.permute.xlu0 %2113 }
 0x2f5   :  { %5120 = vst [vmem:[#allocation44_spill] sm:$0xff] %v3915_v10  ;;  %v3919_v6 = vpop.permute.xlu2 %2111 }
 0x2f6   :  { %v917_v37 = vpop.f32.mrf.mxu3  ;;  %5121 = vst [vmem:[#allocation45_spill] sm:$0xff] %v3917_v3 }
 0x2f7   :  { %v918_v48 = vadd.f32 %v3640_v29, %v917_v37  ;;  %5122 = vst [vmem:[#allocation46_spill] sm:$0xff] %v3919_v6 }
 0x2f8   :  { %v1122_v17 = vpop.f32.mrf.mxu1 }
 0x2f9   :  { %v959_v35 = vmax.f32 %v918_v48, 0.0  ;;  %v3908_v11 = vadd.f32 %v3749_v0, %v1122_v17 }
 0x2fb   :  { %2531 = vmatmul.msk.f32.gmra.mxu1 %vm340_vm1, %v959_v35  ;;  %v1572_v44 = vsel %vm1538_vm3, %v3908_v11, -inf  ;;  %v1219_v59 = vsel %vm1185_vm2, %v3908_v11, -inf }
 0x2fc   :  { %1573 = vmax.xlane.f32.xlu0 %v1572_v44  ;;  %1220 = vmax.xlane.f32.xlu2 %v1219_v59  ;;  %v3930_v59 = vpop.permute.xlu1 %2235  ;;  %v3932_v6 = vpop.permute.xlu0 %2257 }
 0x2fd   :  { %5123 = vst [vmem:[#allocation47_spill] sm:$0xff] %v3930_v59 }
 0x2fe   :  { %v920_v37 = vpop.f32.mrf.mxu3  ;;  %5124 = vst [vmem:[#allocation48_spill] sm:$0xff] %v3932_v6 }
 0x2ff   :  { %v921_v48 = vadd.f32 %v3640_v29, %v920_v37 }
 0x300   :  { %v1125_v17 = vpop.f32.mrf.mxu1 }
 0x301   :  { %v960_v8 = vmax.f32 %v921_v48, 0.0  ;;  %v3923_v35 = vadd.f32 %v3749_v0, %v1125_v17  ;;  %v3935_v17 = vpop.permute.xlu2 %2255 }
 0x302   :  { %5125 = vst [vmem:[#allocation49_spill] sm:$0xff] %v3935_v17 }
 0x303   :  { %2532 = vmatmul.msk.f32.gmra.mxu1 %vm340_vm1, %v960_v8  ;;  %v1222_v62 = vsel %vm1185_vm2, %v3923_v35, -inf  ;;  %v1575_v44 = vsel %vm1538_vm3, %v3923_v35, -inf }
 0x304   :  { %1223 = vmax.xlane.f32.xlu0 %v1222_v62  ;;  %1576 = vmax.xlane.f32.xlu1 %v1575_v44  ;;  %v3945_v6 = vpop.permute.xlu1 %2259  ;;  %v3947_v56 = vpop.permute.xlu0 %2263 }
 0x305   :  { %5126 = vst [vmem:[#allocation50_spill] sm:$0xff] %v3945_v6 }
 0x306   :  { %v923_v3 = vpop.f32.mrf.mxu3  ;;  %5127 = vst [vmem:[#allocation51_spill] sm:$0xff] %v3947_v56 }
 0x307   :  { %v924_v37 = vadd.f32 %v3640_v29, %v923_v3 }
 0x308   :  { %v1128_v48 = vpop.f32.mrf.mxu1 }
 0x309   :  { %v961_v10 = vmax.f32 %v924_v37, 0.0  ;;  %v3938_v8 = vadd.f32 %v3749_v0, %v1128_v48 }
 0x30b   :  { %2533 = vmatmul.msk.f32.gmra.mxu1 %vm340_vm1, %v961_v10  ;;  %v1578_v62 = vsel %vm1538_vm3, %v3938_v8, -inf  ;;  %v1225_v44 = vsel %vm1185_vm2, %v3938_v8, -inf  ;;  %v3953_v10 = vpop.permute.xlu2 %2237 }
 0x30c   :  { %1579 = vmax.xlane.f32.xlu2 %v1578_v62  ;;  %1226 = vmax.xlane.f32.xlu1 %v1225_v44  ;;  %5128 = vst [vmem:[#allocation52_spill] sm:$0xff] %v3953_v10  ;;  %v3960_v56 = vpop.permute.xlu1 %2265 }
 0x30d   :  { %5129 = vst [vmem:[#allocation53_spill] sm:$0xff] %v3960_v56 }
 0x30e   :  { %v926_v3 = vpop.f32.mrf.mxu3 }
 0x30f   :  { %v927_v37 = vadd.f32 %v3640_v29, %v926_v3 }
 0x310   :  { %v1131_v17 = vpop.f32.mrf.mxu1 }
 0x311   :  { %v962_v48 = vmax.f32 %v927_v37, 0.0  ;;  %v3951_v63 = vadd.f32 %v3749_v0, %v1131_v17 }
 0x313   :  { %2534 = vmatmul.msk.f32.gmra.mxu1 %vm340_vm1, %v962_v48  ;;  %v1581_v62 = vsel %vm1538_vm3, %v3951_v63, -inf  ;;  %v1228_v44 = vsel %vm1185_vm2, %v3951_v63, -inf  ;;  %v3967_v54 = vpop.permute.xlu2 %2261 }
 0x314   :  { %1582 = vmax.xlane.f32.xlu0 %v1581_v62  ;;  %1229 = vmax.xlane.f32.xlu2 %v1228_v44  ;;  %5130 = vst [vmem:[#allocation54_spill] sm:$0xff] %v3967_v54 }
 0x316   :  { %v929_v3 = vpop.f32.mrf.mxu3 }
 0x317   :  { %v930_v37 = vadd.f32 %v3640_v29, %v929_v3  ;;  %v1188_v6 = vpop.xlane.xlu0 %1187  ;;  %v1541_v29 = vpop.xlane.xlu1 %1540 }
 0x318   :  { %v1282_v17 = vsub.f32 %v3755_v43, %v1188_v6  ;;  %v1134_v49 = vpop.f32.mrf.mxu1  ;;  %v1635_v3 = vsub.f32 %v3755_v43, %v1541_v29 }
 0x319   :  { %v963_v52 = vmax.f32 %v930_v37, 0.0  ;;  %v3965_v48 = vadd.f32 %v3749_v0, %v1134_v49 }
 0x31a   :  { %v1314_v30 = vmul.f32 1.442695, %v1282_v17 }
 0x31b   :  { %2535 = vmatmul.msk.f32.gmra.mxu1 %vm340_vm1, %v963_v52  ;;  %v1231_v62 = vsel %vm1185_vm2, %v3965_v48, -inf  ;;  %v1584_v44 = vsel %vm1538_vm3, %v3965_v48, -inf  ;;  %v3980_v17 = vpop.permute.xlu2 %2267 }
 0x31c   :  { %2572 = vpow2.f32 %v1314_v30  ;;  %1232 = vmax.xlane.f32.xlu0 %v1231_v62  ;;  %1585 = vmax.xlane.f32.xlu1 %v1584_v44  ;;  %5131 = vst [vmem:[#allocation55_spill] sm:$0xff] %v3980_v17  ;;  %v1667_v30 = vmul.f32 1.442695, %v1635_v3 }
 0x31e   :  { %2574 = vpow2.f32 %v1667_v30 }
 0x31f   :  { %v1191_v54 = vpop.xlane.xlu0 %1190 }
 0x320   :  { %v1137_v6 = vpop.f32.mrf.mxu1 }
 0x321   :  { %v3976_v49 = vadd.f32 %v3749_v0, %v1137_v6 }
 0x322   :  { %v3978_v37 = vpop.eup %2572 }
 0x323   :  { %v1378_v52 = vsel %vm1185_vm2, %v3978_v37, 0.0  ;;  %v1234_v56 = vsel %vm1185_vm2, %v3976_v49, -inf  ;;  %v1544_v62 = vpop.xlane.xlu2 %1543  ;;  %v1587_v43 = vsel %vm1538_vm3, %v3976_v49, -inf }
 0x324   :  { %1379 = vadd.xlane.f32.xlu2 %v1378_v52  ;;  %1235 = vmax.xlane.f32.xlu1 %v1234_v56  ;;  %v1636_v29 = vsub.f32 %v3770_v60, %v1544_v62  ;;  %v3989_v6 = vpop.eup %2574 }
 0x326   :  { %v1669_v56 = vmul.f32 1.442695, %v1636_v29 }
 0x327   :  { %v1547_v52 = vpop.xlane.xlu0 %1546 }
 0x328   :  { %v1140_v44 = vpop.f32.mrf.mxu1  ;;  %2576 = vpow2.f32 %v1669_v56  ;;  %v1637_v62 = vsub.f32 %v3785_v42, %v1547_v52  ;;  %v1194_v56 = vpop.xlane.xlu1 %1193 }
 0x329   :  { %v3992_v17 = vadd.f32 %v3749_v0, %v1140_v44  ;;  %v1283_v44 = vsub.f32 %v3770_v60, %v1191_v54 }
 0x32b   :  { %v1237_v3 = vsel %vm1185_vm2, %v3992_v17, -inf  ;;  %v1316_v29 = vmul.f32 1.442695, %v1283_v44  ;;  %v1590_v54 = vsel %vm1538_vm3, %v3992_v17, -inf }
 0x32c   :  { %1588 = vmax.xlane.f32.xlu2 %v1587_v43  ;;  %v1671_v43 = vmul.f32 1.442695, %v1637_v62 }
 0x32e   :  { %v3998_v30 = vpop.eup %2576  ;;  %2578 = vpow2.f32 %v1671_v43 }
 0x32f   :  { %2580 = vpow2.f32 %v1316_v29 }
 0x330   :  { %1763 = vrot.lane.b32.xlu0 %v3989_v6, %s2832_s14  ;;  %v1197_v62 = vpop.xlane.xlu1 %1196  ;;  %v1143_v60 = vpop.f32.mrf.mxu1 }
 0x331   :  { %v1285_v44 = vsub.f32 %v3798_v53, %v1197_v62 }
 0x334   :  { %1238 = vmax.xlane.f32.xlu2 %v1237_v3  ;;  %v4004_v45 = vpop.eup %2578  ;;  %v1284_v3 = vsub.f32 %v3785_v42, %v1194_v56  ;;  %v4019_v42 = vadd.f32 %v3749_v0, %v1143_v60  ;;  %v1320_v56 = vmul.f32 1.442695, %v1285_v44 }
 0x335   :  { %v4009_v9 = vpop.eup %2580 }
 0x336   :  { %v1318_v52 = vmul.f32 1.442695, %v1284_v3  ;;  %v1381_v33 = vsel %vm1185_vm2, %v4009_v9, 0.0 }
 0x338   :  { %2582 = vpow2.f32 %v1318_v52  ;;  %v1550_v3 = vpop.xlane.xlu1 %1549  ;;  %v1593_v52 = vsel %vm1538_vm3, %v4019_v42, -inf  ;;  %v1146_v62 = vpop.f32.mrf.mxu1 }
 0x339   :  { %2584 = vpow2.f32 %v1320_v56  ;;  %v4031_v32 = vadd.f32 %v3749_v0, %v1146_v62 }
 0x33b   :  { %v1243_v56 = vsel %vm1185_vm2, %v4031_v32, -inf }
 0x33d   :  { %1765 = vrot.lane.b32.xlu1 %v3998_v30, %s2832_s14 }
 0x33e   :  { %v4015_v43 = vpop.eup %2582 }
 0x33f   :  { %v1384_v29 = vsel %vm1185_vm2, %v4015_v43, 0.0  ;;  %v4028_v60 = vpop.eup %2584 }
 0x34c   :  { %1767 = vrot.lane.b32.xlu2 %v4004_v45, %s2832_s14 }
 0x35a   :  { %1382 = vadd.xlane.f32.xlu0 %v1381_v33  ;;  %v1240_v33 = vsel %vm1185_vm2, %v4019_v42, -inf }
 0x362   :  { %1591 = vmax.xlane.f32.xlu0 %v1590_v54  ;;  %v1638_v54 = vsub.f32 %v3798_v53, %v1550_v3  ;;  %v1596_v53 = vsel %vm1538_vm3, %v4031_v32, -inf }
 0x364   :  { %v1673_v44 = vmul.f32 1.442695, %v1638_v54 }
 0x366   :  { %2586 = vpow2.f32 %v1673_v44 }
 0x367   :  { %1385 = vadd.xlane.f32.xlu1 %v1384_v29  ;;  %v1387_v29 = vsel %vm1185_vm2, %v4028_v60, 0.0 }
 0x36a   :  { %1241 = vmax.xlane.f32.xlu0 %v1240_v33  ;;  %v1200_v33 = vpop.xlane.xlu2 %1199 }
 0x36c   :  { %v4039_v3 = vpop.eup %2586 }
 0x36f   :  { %1594 = vmax.xlane.f32.xlu1 %v1593_v52  ;;  %v1556_v52 = vpop.xlane.xlu0 %1555 }
 0x370   :  { %v1640_v54 = vsub.f32 %v3822_v58, %v1556_v52 }
 0x372   :  { %v1553_v62 = vpop.xlane.xlu2 %1552 }
 0x373   :  { %v1639_v50 = vsub.f32 %v3809_v4, %v1553_v62 }
 0x375   :  { %1388 = vadd.xlane.f32.xlu2 %v1387_v29  ;;  %v1677_v29 = vmul.f32 1.442695, %v1640_v54  ;;  %v1675_v44 = vmul.f32 1.442695, %v1639_v50 }
 0x377   :  { %1244 = vmax.xlane.f32.xlu1 %v1243_v56  ;;  %2588 = vpow2.f32 %v1677_v29  ;;  %v1149_v29 = vpop.f32.mrf.mxu1 }
 0x378   :  { %2590 = vpow2.f32 %v1675_v44  ;;  %v4060_v5 = vadd.f32 %v3749_v0, %v1149_v29 }
 0x37a   :  { %v1203_v62 = vpop.xlane.xlu2 %1202  ;;  %v1599_v31 = vsel %vm1538_vm3, %v4060_v5, -inf }
 0x37b   :  { %v1287_v44 = vsub.f32 %v3822_v58, %v1203_v62 }
 0x37d   :  { %1597 = vmax.xlane.f32.xlu2 %v1596_v53  ;;  %v4045_v56 = vpop.eup %2588  ;;  %v1286_v53 = vsub.f32 %v3809_v4, %v1200_v33  ;;  %v1324_v10 = vmul.f32 1.442695, %v1287_v44  ;;  %v1206_v33 = vpop.xlane.xlu0 %1205 }
 0x37e   :  { %1769 = vrot.lane.b32.xlu0 %v4039_v3, %s2832_s14  ;;  %5132 = vst [vmem:[#allocation56_spill] sm:$0xff] %v4045_v56  ;;  %v4049_v24 = vpop.eup %2590 }
 0x37f   :  { %v1322_v52 = vmul.f32 1.442695, %v1286_v53  ;;  %v1152_v4 = vpop.f32.mrf.mxu1 }
 0x380   :  { %v4065_v53 = vadd.f32 %v3749_v0, %v1152_v4 }
 0x381   :  { %2592 = vpow2.f32 %v1322_v52  ;;  %v1288_v52 = vsub.f32 %v3837_v57, %v1206_v33 }
 0x382   :  { %2594 = vpow2.f32 %v1324_v10  ;;  %v1249_v58 = vsel %vm1185_vm2, %v4065_v53, -inf  ;;  %v1246_v10 = vsel %vm1185_vm2, %v4060_v5, -inf  ;;  %v1602_v4 = vsel %vm1538_vm3, %v4065_v53, -inf }
 0x383   :  { %v1326_v62 = vmul.f32 1.442695, %v1288_v52 }
 0x385   :  { %2596 = vpow2.f32 %v1326_v62 }
 0x387   :  { %v4054_v54 = vpop.eup %2592  ;;  %v1155_v52 = vpop.f32.mrf.mxu1 }
 0x388   :  { %v1390_v50 = vsel %vm1185_vm2, %v4054_v54, 0.0  ;;  %v4068_v59 = vpop.eup %2594 }
 0x389   :  { %5133 = vst [vmem:[#allocation57_spill] sm:$0xff] %v4068_v59  ;;  %v1393_v29 = vsel %vm1185_vm2, %v4068_v59, 0.0 }
 0x38b   :  { %v4079_v33 = vpop.eup %2596 }
 0x38c   :  { %5134 = vst [vmem:[#allocation58_spill] sm:$0xff] %v4079_v33  ;;  %v1396_v62 = vsel %vm1185_vm2, %v4079_v33, 0.0 }
 0x390   :  { %1773 = vrot.lane.b32.xlu1 %v4045_v56, %s2832_s14 }
 0x395   :  { %1771 = vrot.lane.b32.xlu2 %v4049_v24, %s2832_s14 }
 0x3a8   :  { %1391 = vadd.xlane.f32.xlu0 %v1390_v50  ;;  %v1559_v50 = vpop.xlane.xlu1 %1558 }
 0x3b0   :  { %1600 = vmax.xlane.f32.xlu0 %v1599_v31  ;;  %v1641_v31 = vsub.f32 %v3837_v57, %v1559_v50 }
 0x3b2   :  { %v1679_v44 = vmul.f32 1.442695, %v1641_v31  ;;  %v1565_v31 = vpop.xlane.xlu0 %1564 }
 0x3b4   :  { %2598 = vpow2.f32 %v1679_v44  ;;  %v1643_v44 = vsub.f32 %v3869_v26, %v1565_v31 }
 0x3b8   :  { %1250 = vmax.xlane.f32.xlu0 %v1249_v58  ;;  %v4082_v58 = vadd.f32 %v3749_v0, %v1155_v52  ;;  %v1683_v52 = vmul.f32 1.442695, %v1643_v44 }
 0x3ba   :  { %1394 = vadd.xlane.f32.xlu1 %v1393_v29  ;;  %v1252_v57 = vsel %vm1185_vm2, %v4082_v58, -inf  ;;  %v4088_v29 = vpop.eup %2598  ;;  %v1605_v50 = vsel %vm1538_vm3, %v4082_v58, -inf  ;;  %2600 = vpow2.f32 %v1683_v52  ;;  %v1215_v7 = vpop.xlane.xlu0 %1214 }
 0x3bb   :  { %5135 = vst [vmem:[#allocation59_spill] sm:$0xff] %v4088_v29  ;;  %v1291_v23 = vsub.f32 %v3880_v1, %v1215_v7 }
 0x3be   :  { %1247 = vmax.xlane.f32.xlu2 %v1246_v10  ;;  %v1562_v10 = vpop.xlane.xlu2 %1561 }
 0x3c0   :  { %v4096_v41 = vpop.eup %2600 }
 0x3c1   :  { %5136 = vst [vmem:[#allocation60_spill] sm:$0xff] %v4096_v41 }
 0x3c2   :  { %1603 = vmax.xlane.f32.xlu1 %v1602_v4  ;;  %v1642_v4 = vsub.f32 %v3854_v15, %v1562_v10  ;;  %v1158_v10 = vpop.f32.mrf.mxu1 }
 0x3c3   :  { %v4110_v52 = vadd.f32 %v3749_v0, %v1158_v10 }
 0x3c6   :  { %1397 = vadd.xlane.f32.xlu2 %v1396_v62  ;;  %v1681_v62 = vmul.f32 1.442695, %v1642_v4  ;;  %v1212_v4 = vpop.xlane.xlu2 %1211 }
 0x3c8   :  { %2602 = vpow2.f32 %v1681_v62  ;;  %v1608_v62 = vsel %vm1538_vm3, %v4110_v52, -inf }
 0x3ca   :  { %1253 = vmax.xlane.f32.xlu1 %v1252_v57  ;;  %v1209_v57 = vpop.xlane.xlu1 %1208 }
 0x3cb   :  { %v1289_v39 = vsub.f32 %v3854_v15, %v1209_v57  ;;  %v1290_v15 = vsub.f32 %v3869_v26, %v1212_v4  ;;  %v1161_v57 = vpop.f32.mrf.mxu1  ;;  %v1332_v26 = vmul.f32 1.442695, %v1291_v23 }
 0x3cc   :  { %1775 = vrot.lane.b32.xlu0 %v4088_v29, %s2832_s14 }
 0x3ce   :  { %1606 = vmax.xlane.f32.xlu2 %v1605_v50  ;;  %v4101_v34 = vpop.eup %2602  ;;  %v1328_v50 = vmul.f32 1.442695, %v1289_v39  ;;  %v1330_v39 = vmul.f32 1.442695, %v1290_v15 }
 0x3cf   :  { %5137 = vst [vmem:[#allocation61_spill] sm:$0xff] %v4101_v34 }
 0x3d0   :  { %2604 = vpow2.f32 %v1328_v50  ;;  %v4116_v50 = vadd.f32 %v3749_v0, %v1161_v57 }
 0x3d1   :  { %2606 = vpow2.f32 %v1330_v39 }
 0x3d2   :  { %v1568_v10 = vpop.xlane.xlu1 %1567  ;;  %2608 = vpow2.f32 %v1332_v26  ;;  %v1611_v39 = vsel %vm1538_vm3, %v4116_v50, -inf }
 0x3d3   :  { %v1644_v4 = vsub.f32 %v3880_v1, %v1568_v10 }
 0x3d5   :  { %v1685_v57 = vmul.f32 1.442695, %v1644_v4 }
 0x3d6   :  { %v4105_v31 = vpop.eup %2604 }
 0x3d7   :  { %5138 = vst [vmem:[#allocation62_spill] sm:$0xff] %v4105_v31  ;;  %v1399_v44 = vsel %vm1185_vm2, %v4105_v31, 0.0  ;;  %v4121_v36 = vpop.eup %2606  ;;  %2610 = vpow2.f32 %v1685_v57 }
 0x3d8   :  { %5139 = vst [vmem:[#allocation63_spill] sm:$0xff] %v4121_v36  ;;  %v1402_v15 = vsel %vm1185_vm2, %v4121_v36, 0.0  ;;  %v4128_v7 = vpop.eup %2608 }
 0x3d9   :  { %5140 = vst [vmem:[#allocation64_spill] sm:$0xff] %v4128_v7  ;;  %v1405_v23 = vsel %vm1185_vm2, %v4128_v7, 0.0 }
 0x3da   :  { %v1218_v47 = vpop.xlane.xlu1 %1217 }
 0x3dd   :  { %v4137_v10 = vpop.eup %2610 }
 0x3de   :  { %5141 = vst [vmem:[#allocation65_spill] sm:$0xff] %v4137_v10 }
 0x3e3   :  { %1779 = vrot.lane.b32.xlu1 %v4096_v41, %s2832_s14 }
 0x3e6   :  { %1777 = vrot.lane.b32.xlu2 %v4101_v34, %s2832_s14 }
 0x3f6   :  { %1400 = vadd.xlane.f32.xlu0 %v1399_v44  ;;  %v1258_v44 = vsel %vm1185_vm2, %v4116_v50, -inf }
 0x3fe   :  { %1609 = vmax.xlane.f32.xlu0 %v1608_v62  ;;  %v1255_v62 = vsel %vm1185_vm2, %v4110_v52, -inf }
 0x406   :  { %1259 = vmax.xlane.f32.xlu0 %v1258_v44  ;;  %v1164_v44 = vpop.f32.mrf.mxu1 }
 0x407   :  { %v4135_v1 = vadd.f32 %v3749_v0, %v1164_v44 }
 0x409   :  { %v1261_v26 = vsel %vm1185_vm2, %v4135_v1, -inf  ;;  %v1614_v4 = vsel %vm1538_vm3, %v4135_v1, -inf }
 0x40d   :  { %1403 = vadd.xlane.f32.xlu1 %v1402_v15  ;;  %v1574_v15 = vpop.xlane.xlu0 %1573 }
 0x40e   :  { %v1646_v57 = vsub.f32 %v3908_v11, %v1574_v15  ;;  %v1167_v15 = vpop.f32.mrf.mxu1 }
 0x40f   :  { %1256 = vmax.xlane.f32.xlu2 %v1255_v62  ;;  %v1571_v62 = vpop.xlane.xlu2 %1570 }
 0x410   :  { %v1689_v44 = vmul.f32 1.442695, %v1646_v57 }
 0x412   :  { %2612 = vpow2.f32 %v1689_v44 }
 0x415   :  { %1612 = vmax.xlane.f32.xlu1 %v1611_v39  ;;  %v1645_v39 = vsub.f32 %v3893_v51, %v1571_v62 }
 0x416   :  { %v1170_v57 = vpop.f32.mrf.mxu1 }
 0x417   :  { %1406 = vadd.xlane.f32.xlu2 %v1405_v23  ;;  %v1687_v23 = vmul.f32 1.442695, %v1645_v39 }
 0x418   :  { %v4148_v7 = vpop.eup %2612 }
 0x419   :  { %2614 = vpow2.f32 %v1687_v23  ;;  %5142 = vst [vmem:[#allocation66_spill] sm:$0xff] %v4148_v7  ;;  %v1224_v23 = vpop.xlane.xlu0 %1223 }
 0x41a   :  { %1781 = vrot.lane.b32.xlu0 %v4137_v10, %s2832_s14  ;;  %v1292_v10 = vsub.f32 %v3893_v51, %v1218_v47  ;;  %v4161_v47 = vadd.f32 %v3749_v0, %v1167_v15  ;;  %v1221_v51 = vpop.xlane.xlu2 %1220  ;;  %v1294_v15 = vsub.f32 %v3923_v35, %v1224_v23 }
 0x41b   :  { %v1293_v39 = vsub.f32 %v3908_v11, %v1221_v51 }
 0x41c   :  { %v1334_v28 = vmul.f32 1.442695, %v1292_v10  ;;  %v1617_v10 = vsel %vm1538_vm3, %v4161_v47, -inf }
 0x41d   :  { %1262 = vmax.xlane.f32.xlu1 %v1261_v26  ;;  %v1336_v44 = vmul.f32 1.442695, %v1293_v39 }
 0x41e   :  { %2616 = vpow2.f32 %v1334_v28  ;;  %v4167_v28 = vadd.f32 %v3749_v0, %v1170_v57 }
 0x41f   :  { %1615 = vmax.xlane.f32.xlu2 %v1614_v4  ;;  %v4150_v26 = vpop.eup %2614  ;;  %2618 = vpow2.f32 %v1336_v44 }
 0x420   :  { %5143 = vst [vmem:[#allocation67_spill] sm:$0xff] %v4150_v26  ;;  %v1620_v57 = vsel %vm1538_vm3, %v4167_v28, -inf }
 0x421   :  { %5145 = vst [vmem:[#allocation69_spill] sm:$0xff] %v4167_v28 }
 0x424   :  { %v4156_v4 = vpop.eup %2616 }
 0x425   :  { %5144 = vst [vmem:[#allocation68_spill] sm:$0xff] %v4156_v4  ;;  %v1408_v62 = vsel %vm1185_vm2, %v4156_v4, 0.0  ;;  %v4173_v38 = vpop.eup %2618 }
 0x426   :  { %5146 = vst [vmem:[#allocation70_spill] sm:$0xff] %v4173_v38  ;;  %v1411_v51 = vsel %vm1185_vm2, %v4173_v38, 0.0 }
 0x436   :  { %1785 = vrot.lane.b32.xlu1 %v4148_v7, %s2832_s14  ;;  %v1267_v7 = vsel %vm1185_vm2, %v4167_v28, -inf }
 0x437   :  { %1783 = vrot.lane.b32.xlu2 %v4150_v26, %s2832_s14  ;;  %v1338_v26 = vmul.f32 1.442695, %v1294_v15 }
 0x439   :  { %2620 = vpow2.f32 %v1338_v26  ;;  %v1173_v26 = vpop.f32.mrf.mxu1 }
 0x444   :  { %1409 = vadd.xlane.f32.xlu0 %v1408_v62  ;;  %v1577_v62 = vpop.xlane.xlu1 %1576 }
 0x445   :  { %v1647_v4 = vsub.f32 %v3923_v35, %v1577_v62  ;;  %v1580_v62 = vpop.xlane.xlu2 %1579 }
 0x447   :  { %v1691_v11 = vmul.f32 1.442695, %v1647_v4  ;;  %v4190_v4 = vadd.f32 %v3749_v0, %v1173_v26 }
 0x449   :  { %2622 = vpow2.f32 %v1691_v11  ;;  %5149 = vst [vmem:[#allocation73_spill] sm:$0xff] %v4190_v4  ;;  %v1270_v44 = vsel %vm1185_vm2, %v4190_v4, -inf  ;;  %v1623_v23 = vsel %vm1538_vm3, %v4190_v4, -inf  ;;  %v1583_v11 = vpop.xlane.xlu0 %1582 }
 0x44c   :  { %1618 = vmax.xlane.f32.xlu0 %v1617_v10  ;;  %v1264_v10 = vsel %vm1185_vm2, %v4161_v47, -inf  ;;  %v1227_v15 = vpop.xlane.xlu1 %1226 }
 0x44d   :  { %v1295_v26 = vsub.f32 %v3938_v8, %v1227_v15 }
 0x454   :  { %1268 = vmax.xlane.f32.xlu0 %v1267_v7  ;;  %v4179_v7 = vpop.eup %2620 }
 0x455   :  { %5147 = vst [vmem:[#allocation71_spill] sm:$0xff] %v4179_v7  ;;  %v1414_v35 = vsel %vm1185_vm2, %v4179_v7, 0.0  ;;  %v4185_v39 = vpop.eup %2622  ;;  %v1340_v7 = vmul.f32 1.442695, %v1295_v26 }
 0x456   :  { %5148 = vst [vmem:[#allocation72_spill] sm:$0xff] %v4185_v39 }
 0x460   :  { %1412 = vadd.xlane.f32.xlu1 %v1411_v51  ;;  %1265 = vmax.xlane.f32.xlu2 %v1264_v10  ;;  %v1648_v51 = vsub.f32 %v3938_v8, %v1580_v62  ;;  %v1649_v10 = vsub.f32 %v3951_v63, %v1583_v11  ;;  %v1233_v8 = vpop.xlane.xlu0 %1232  ;;  %v1230_v11 = vpop.xlane.xlu2 %1229 }
 0x461   :  { %v1297_v27 = vsub.f32 %v3965_v48, %v1233_v8 }
 0x468   :  { %1621 = vmax.xlane.f32.xlu1 %v1620_v57  ;;  %1415 = vadd.xlane.f32.xlu2 %v1414_v35  ;;  %v1586_v57 = vpop.xlane.xlu1 %1585  ;;  %v1693_v35 = vmul.f32 1.442695, %v1648_v51 }
 0x469   :  { %1787 = vrot.lane.b32.xlu0 %v4185_v39, %s2832_s14  ;;  %v1695_v39 = vmul.f32 1.442695, %v1649_v10  ;;  %v1650_v34 = vsub.f32 %v3965_v48, %v1586_v57 }
 0x46a   :  { %2624 = vpow2.f32 %v1693_v35 }
 0x46b   :  { %2626 = vpow2.f32 %v1695_v39  ;;  %v1176_v39 = vpop.f32.mrf.mxu1  ;;  %v1697_v31 = vmul.f32 1.442695, %v1650_v34 }
 0x46c   :  { %2628 = vpow2.f32 %v1340_v7  ;;  %v4216_v51 = vadd.f32 %v3749_v0, %v1176_v39  ;;  %v1764_v7 = vpop.permute.xlu0 %1763  ;;  %v1296_v39 = vsub.f32 %v3951_v63, %v1230_v11 }
 0x46e   :  { %5153 = vst [vmem:[#allocation77_spill] sm:$0xff] %v4216_v51  ;;  %v1626_v35 = vsel %vm1538_vm3, %v4216_v51, -inf  ;;  %v1342_v4 = vmul.f32 1.442695, %v1296_v39  ;;  %v1273_v11 = vsel %vm1185_vm2, %v4216_v51, -inf }
 0x470   :  { %1271 = vmax.xlane.f32.xlu1 %v1270_v44  ;;  %1624 = vmax.xlane.f32.xlu2 %v1623_v23  ;;  %v4199_v38 = vpop.xlane.xlu1 %1235  ;;  %v4201_v41 = vpop.eup %2624  ;;  %2630 = vpow2.f32 %v1342_v4 }
 0x471   :  { %5150 = vst [vmem:[#allocation74_spill] sm:$0xff] %v4201_v41  ;;  %v4203_v44 = vpop.eup %2626 }
 0x472   :  { %5151 = vst [vmem:[#allocation75_spill] sm:$0xff] %v4203_v44  ;;  %v4211_v62 = vpop.eup %2628 }
 0x473   :  { %5152 = vst [vmem:[#allocation76_spill] sm:$0xff] %v4211_v62  ;;  %v1417_v15 = vsel %vm1185_vm2, %v4211_v62, 0.0  ;;  %v1179_v26 = vpop.f32.mrf.mxu1 }
 0x474   :  { %v4227_v36 = vpop.xlane.xlu0 %1382 }
 0x476   :  { %v4238_v18 = vpop.eup %2630 }
 0x477   :  { %5155 = vst [vmem:[#allocation79_spill] sm:$0xff] %v4238_v18  ;;  %v1420_v48 = vsel %vm1185_vm2, %v4238_v18, 0.0 }
 0x478   :  { %v4209_v23 = vpop.permute.xlu1 %1765 }
 0x479   :  { %v1862_v2 = vsel %vm1185_vm2, %v4209_v23, 0.0 }
 0x47b   :  { %v1182_v57 = vpop.f32.mrf.mxu1 }
 0x480   :  { %v4218_v10 = vpop.xlane.xlu1 %1385 }
 0x488   :  { %1789 = vrot.lane.b32.xlu2 %v4201_v41, %s2832_s14  ;;  %v4225_v41 = vadd.f32 %v3749_v0, %v1179_v26  ;;  %v4229_v62 = vpop.xlane.xlu1 %1594  ;;  %v1344_v26 = vmul.f32 1.442695, %v1297_v27 }
 0x489   :  { %1791 = vrot.lane.b32.xlu1 %v4203_v44, %s2832_s14  ;;  %v4222_v44 = vpop.xlane.xlu2 %1379 }
 0x48a   :  { %5154 = vst [vmem:[#allocation78_spill] sm:$0xff] %v4225_v41  ;;  %2632 = vpow2.f32 %v1344_v26  ;;  %v1629_v26 = vsel %vm1538_vm3, %v4225_v41, -inf }
 0x48b   :  { %2634 = vpow2.f32 %v1697_v31 }
 0x490   :  { %v4236_v0 = vpop.xlane.xlu1 %1244  ;;  %v4250_v27 = vpop.eup %2632 }
 0x491   :  { %v1589_v14 = vpop.xlane.xlu2 %1588  ;;  %5156 = vst [vmem:[#allocation80_spill] sm:$0xff] %v4250_v27  ;;  %v4252_v34 = vpop.eup %2634  ;;  %v1423_v31 = vsel %vm1185_vm2, %v4250_v27, 0.0 }
 0x492   :  { %5157 = vst [vmem:[#allocation81_spill] sm:$0xff] %v4252_v34 }
 0x493   :  { %1418 = vadd.xlane.f32.xlu0 %v1417_v15  ;;  %v1276_v15 = vsel %vm1185_vm2, %v4225_v41, -inf  ;;  %v1651_v41 = vsub.f32 %v3976_v49, %v1589_v14  ;;  %v1298_v14 = vsub.f32 %v3976_v49, %v4199_v38 }
 0x495   :  { %v1699_v12 = vmul.f32 1.442695, %v1651_v41  ;;  %v1346_v41 = vmul.f32 1.442695, %v1298_v14 }
 0x497   :  { %2636 = vpow2.f32 %v1699_v12 }
 0x498   :  { %v4244_v39 = vpop.permute.xlu1 %1773 }
 0x499   :  { %v4240_v63 = vpop.xlane.xlu2 %1238 }
 0x49b   :  { %1627 = vmax.xlane.f32.xlu0 %v1626_v35  ;;  %v1592_v35 = vpop.xlane.xlu0 %1591 }
 0x49d   :  { %v4296_v21 = vpop.eup %2636 }
 0x49e   :  { %5160 = vst [vmem:[#allocation84_spill] sm:$0xff] %v4296_v21 }
 0x4a1   :  { %v4258_v8 = vpop.permute.xlu2 %1767 }
 0x4a3   :  { %1277 = vmax.xlane.f32.xlu0 %v1276_v15  ;;  %v4248_v4 = vpop.xlane.xlu0 %1241  ;;  %v4260_v15 = vpop.xlane.xlu1 %1394 }
 0x4a4   :  { %5158 = vst [vmem:[#allocation82_spill] sm:$0xff] %v4260_v15 }
 0x4a9   :  { %v4273_v18 = vpop.xlane.xlu2 %1388 }
 0x4b1   :  { %1274 = vmax.xlane.f32.xlu2 %v1273_v11  ;;  %v2828_v11 = vld [vmem:[%s5035_s10] ss:$0 sm:$0xff] }
 0x4b3   :  { %1421 = vadd.xlane.f32.xlu1 %v1420_v48  ;;  %v4267_v48 = vadd.f32 %v2828_v11, %v1182_v57  ;;  %v4283_v11 = vpop.xlane.xlu2 %1597 }
 0x4b5   :  { %5159 = vst [vmem:[#allocation83_spill] sm:$0xff] %v4267_v48  ;;  %v1632_v27 = vsel %vm1538_vm3, %v4267_v48, -inf  ;;  %v1279_v57 = vsel %vm1185_vm2, %v4267_v48, -inf }
 0x4b7   :  { %1793 = vrot.lane.b32.xlu0 %v4252_v34, %s2832_s14  ;;  %v4269_v34 = vpop.permute.xlu0 %1769 }
 0x4b9   :  { %1424 = vadd.xlane.f32.xlu2 %v1423_v31  ;;  %v1859_v31 = vsel %vm1185_vm2, %v1764_v7, 0.0  ;;  %v1652_v7 = vsub.f32 %v3992_v17, %v1592_v35 }
 0x4bb   :  { %1630 = vmax.xlane.f32.xlu1 %v1629_v26  ;;  %v4278_v26 = vpop.xlane.xlu1 %1603 }
 0x4bf   :  { %v4276_v51 = vpop.xlane.xlu0 %1391 }
 0x4c1   :  { %1633 = vmax.xlane.f32.xlu2 %v1632_v27  ;;  %v4290_v27 = vpop.permute.xlu2 %1771 }
 0x4c3   :  { %1860 = vadd.xlane.f32.xlu1 %v1859_v31  ;;  %v4287_v33 = vpop.xlane.xlu1 %1253 }
 0x4c7   :  { %v4285_v29 = vpop.xlane.xlu0 %1600 }
 0x4c9   :  { %v4302_v12 = vpop.xlane.xlu2 %1247 }
 0x4cb   :  { %1280 = vmax.xlane.f32.xlu1 %v1279_v57  ;;  %v4292_v31 = vpop.permute.xlu1 %1779  ;;  %v1701_v57 = vmul.f32 1.442695, %v1652_v7 }
 0x4cd   :  { %2638 = vpow2.f32 %v1701_v57 }
 0x4ce   :  { %2640 = vpow2.f32 %v1346_v41 }
 0x4cf   :  { %v4298_v48 = vpop.xlane.xlu0 %1250 }
 0x4d1   :  { %v4316_v7 = vpop.xlane.xlu2 %1397 }
 0x4d2   :  { %5164 = vst [vmem:[#allocation88_spill] sm:$0xff] %v4316_v7 }
 0x4d3   :  { %v4304_v35 = vpop.xlane.xlu1 %1403  ;;  %v4310_v38 = vpop.eup %2638 }
 0x4d4   :  { %5161 = vst [vmem:[#allocation85_spill] sm:$0xff] %v4304_v35  ;;  %v4314_v49 = vpop.eup %2640 }
 0x4d5   :  { %5162 = vst [vmem:[#allocation86_spill] sm:$0xff] %v4310_v38  ;;  %v1426_v41 = vsel %vm1185_vm2, %v4314_v49, 0.0 }
 0x4d6   :  { %5163 = vst [vmem:[#allocation87_spill] sm:$0xff] %v4314_v49 }
 0x4d7   :  { %v4308_v56 = vpop.permute.xlu0 %1775 }
 0x4d9   :  { %1795 = vrot.lane.b32.xlu2 %v4296_v21, %s2832_s14  ;;  %v4326_v23 = vpop.xlane.xlu2 %1606 }
 0x4db   :  { %v4320_v57 = vpop.xlane.xlu1 %1612 }
 0x4df   :  { %v4318_v14 = vpop.xlane.xlu0 %1400 }
 0x4e0   :  { %5165 = vst [vmem:[#allocation89_spill] sm:$0xff] %v4318_v14  ;;  %v1300_v14 = vsub.f32 %v4019_v42, %v4248_v4 }
 0x4e1   :  { %1863 = vadd.xlane.f32.xlu0 %v1862_v2  ;;  %v1653_v2 = vsub.f32 %v4019_v42, %v4229_v62  ;;  %v4336_v59 = vpop.permute.xlu2 %1777  ;;  %v1299_v62 = vsub.f32 %v3992_v17, %v4240_v63 }
 0x4e3   :  { %v1703_v21 = vmul.f32 1.442695, %v1653_v2  ;;  %v1348_v2 = vmul.f32 1.442695, %v1299_v62 }
 0x4e4   :  { %1797 = vrot.lane.b32.xlu1 %v4310_v38, %s2832_s14  ;;  %v4330_v38 = vpop.xlane.xlu1 %1262 }
 0x4e5   :  { %2642 = vpow2.f32 %v1703_v21  ;;  %v1865_v21 = vsel %vm1185_vm2, %v4258_v8, 0.0 }
 0x4e7   :  { %v4328_v35 = vpop.xlane.xlu0 %1609 }
 0x4e9   :  { %1427 = vadd.xlane.f32.xlu0 %v1426_v41  ;;  %v1350_v41 = vmul.f32 1.442695, %v1300_v14  ;;  %v4350_v4 = vpop.xlane.xlu2 %1256 }
 0x4eb   :  { %v4338_v49 = vpop.eup %2642  ;;  %2644 = vpow2.f32 %v1350_v41 }
 0x4ec   :  { %v4334_v7 = vpop.permute.xlu1 %1785  ;;  %5167 = vst [vmem:[#allocation91_spill] sm:$0xff] %v4338_v49  ;;  %2646 = vpow2.f32 %v1348_v2  ;;  %v1654_v2 = vsub.f32 %v4031_v32, %v4283_v11  ;;  %v1655_v11 = vsub.f32 %v4060_v5, %v4285_v29 }
 0x4ed   :  { %5166 = vst [vmem:[#allocation90_spill] sm:$0xff] %v4334_v7 }
 0x4ef   :  { %v4342_v28 = vpop.xlane.xlu0 %1259 }
 0x4f1   :  { %v4354_v17 = vpop.eup %2644  ;;  %v4364_v8 = vpop.xlane.xlu2 %1406 }
 0x4f2   :  { %5169 = vst [vmem:[#allocation93_spill] sm:$0xff] %v4354_v17  ;;  %v1432_v63 = vsel %vm1185_vm2, %v4354_v17, 0.0  ;;  %v4358_v14 = vpop.eup %2646 }
 0x4f3   :  { %5170 = vst [vmem:[#allocation94_spill] sm:$0xff] %v4358_v14 }
 0x4f4   :  { %v4348_v42 = vpop.xlane.xlu1 %1412  ;;  %5173 = vst [vmem:[#allocation97_spill] sm:$0xff] %v4364_v8  ;;  %v1301_v8 = vsub.f32 %v4031_v32, %v4236_v0  ;;  %v1871_v32 = vsel %vm1185_vm2, %v4290_v27, 0.0 }
 0x4f5   :  { %5168 = vst [vmem:[#allocation92_spill] sm:$0xff] %v4348_v42 }
 0x4f7   :  { %v4352_v7 = vpop.permute.xlu0 %1781 }
 0x4fc   :  { %v4362_v41 = vpop.xlane.xlu1 %1621 }
 0x4fd   :  { %1799 = vrot.lane.b32.xlu0 %v4338_v49, %s2832_s14  ;;  %5172 = vst [vmem:[#allocation96_spill] sm:$0xff] %v4362_v41  ;;  %v1868_v49 = vsel %vm1185_vm2, %v4269_v34, 0.0  ;;  %v1352_v41 = vmul.f32 1.442695, %v1301_v8 }
 0x4ff   :  { %v4360_v62 = vpop.xlane.xlu0 %1409 }
 0x500   :  { %5171 = vst [vmem:[#allocation95_spill] sm:$0xff] %v4360_v62  ;;  %v4376_v62 = vpop.xlane.xlu2 %1615 }
 0x502   :  { %1866 = vadd.xlane.f32.xlu2 %v1865_v21  ;;  %v1429_v21 = vsel %vm1185_vm2, %v4358_v14, 0.0 }
 0x504   :  { %v4374_v42 = vpop.xlane.xlu1 %1271 }
 0x507   :  { %v4372_v17 = vpop.xlane.xlu0 %1618 }
 0x508   :  { %v4388_v15 = vpop.permute.xlu2 %1783 }
 0x50a   :  { %1433 = vadd.xlane.f32.xlu2 %v1432_v63  ;;  %v1705_v63 = vmul.f32 1.442695, %v1654_v2 }
 0x50c   :  { %2648 = vpow2.f32 %v1705_v63  ;;  %v4380_v14 = vpop.permute.xlu1 %1791 }
 0x50d   :  { %5174 = vst [vmem:[#allocation98_spill] sm:$0xff] %v4380_v14  ;;  %2650 = vpow2.f32 %v1352_v41 }
 0x50e   :  { %1430 = vadd.xlane.f32.xlu1 %v1429_v21 }
 0x50f   :  { %v4384_v21 = vpop.xlane.xlu0 %1268 }
 0x510   :  { %v4398_v2 = vpop.xlane.xlu2 %1265 }
 0x512   :  { %v4386_v34 = vpop.eup %2648 }
 0x513   :  { %5175 = vst [vmem:[#allocation99_spill] sm:$0xff] %v4386_v34  ;;  %v4400_v63 = vpop.eup %2650 }
 0x514   :  { %5177 = vst [vmem:[#allocation101_spill] sm:$0xff] %v4400_v63 }
 0x516   :  { %1869 = vadd.xlane.f32.xlu1 %v1868_v49  ;;  %v1707_v49 = vmul.f32 1.442695, %v1655_v11 }
 0x517   :  { %v4396_v29 = vpop.permute.xlu0 %1787 }
 0x518   :  { %2652 = vpow2.f32 %v1707_v49  ;;  %v4412_v41 = vpop.xlane.xlu2 %1415  ;;  %v1656_v49 = vsub.f32 %v4065_v53, %v4278_v26 }
 0x519   :  { %5181 = vst [vmem:[#allocation105_spill] sm:$0xff] %v4412_v41  ;;  %2654 = vrcp.f32 %v4222_v44  ;;  %v1303_v44 = vsub.f32 %v4065_v53, %v4298_v48 }
 0x51e   :  { %v4402_v8 = vpop.eup %2652 }
 0x51f   :  { %5178 = vst [vmem:[#allocation102_spill] sm:$0xff] %v4402_v8  ;;  %v4410_v27 = vpop.xlane.xlu0 %1418 }
 0x520   :  { %5180 = vst [vmem:[#allocation104_spill] sm:$0xff] %v4410_v27 }
 0x522   :  { %1801 = vrot.lane.b32.xlu2 %v4386_v34, %s2832_s14  ;;  %v1435_v34 = vsel %vm1185_vm2, %v4400_v63, 0.0  ;;  %v2655_v63 = vpop.eup %2654 }
 0x526   :  { %v4394_v0 = vpop.xlane.xlu1 %1421 }
 0x527   :  { %5176 = vst [vmem:[#allocation100_spill] sm:$0xff] %v4394_v0  ;;  %1872 = vadd.xlane.f32.xlu0 %v1871_v32  ;;  %v1709_v0 = vmul.f32 1.442695, %v1656_v49  ;;  %v4417_v14 = vpop.xlane.xlu0 %1627 }
 0x52e   :  { %v4406_v11 = vpop.xlane.xlu1 %1630 }
 0x52f   :  { %5179 = vst [vmem:[#allocation103_spill] sm:$0xff] %v4406_v11  ;;  %1436 = vadd.xlane.f32.xlu0 %v1435_v34  ;;  %1803 = vrot.lane.b32.xlu1 %v4402_v8, %s2832_s14  ;;  %v4419_v11 = vpop.xlane.xlu2 %1624  ;;  %v1506_v8 = vmul.f32 %v2655_v63, %v3978_v37  ;;  %v1356_v37 = vmul.f32 1.442695, %v1303_v44 }
 0x536   :  { %v1861_v32 = vpop.xlane.xlu1 %1860 }
 0x537   :  { %2656 = vrcp.f32 %v1861_v32  ;;  %v4433_v32 = vpop.xlane.xlu0 %1277 }
 0x538   :  { %2658 = vpow2.f32 %v1709_v0 }
 0x539   :  { %2660 = vpow2.f32 %v1356_v37 }
 0x53d   :  { %v2657_v34 = vpop.eup %2656 }
 0x53e   :  { %v1987_v27 = vmul.f32 %v2657_v34, %v3989_v6  ;;  %v4427_v49 = vpop.eup %2658  ;;  %v1302_v6 = vsub.f32 %v4060_v5, %v4302_v12 }
 0x53f   :  { %v4445_v48 = vpop.permute.xlu0 %1793  ;;  %v4447_v63 = vpop.eup %2660 }
 0x540   :  { %v2019_v41 = vsel %vm1185_vm2, %v1506_v8, %v1987_v27  ;;  %v1354_v53 = vmul.f32 1.442695, %v1302_v6  ;;  %v1441_v27 = vsel %vm1185_vm2, %v4447_v63, 0.0 }
 0x541   :  { %v2147_v26 = vmul.f32 %v3681_v20, %v2019_v41  ;;  %v4441_v20 = vpop.permute.xlu2 %1789 }
 0x542   :  { %2662 = vpow2.f32 %v1354_v53 }
 0x543   :  { %v2308_v0 = vsel %vm2307_vm4, %v2147_v26, %v3742_v61  ;;  %1805 = vrot.lane.b32.xlu0 %v4427_v49, %s2832_s14  ;;  %v1874_v61 = vsel %vm1185_vm2, %v4244_v39, 0.0  ;;  %2664 = vrcp.f32 %v4227_v36 }
 0x544   :  { %2340 = vst.msk [vmem:[%s5036_s11] sm:$0xff] %vm340_vm1, %v2308_v0  ;;  %v1657_v0 = vsub.f32 %v4082_v58, %v4326_v23 }
 0x546   :  { %v1711_v53 = vmul.f32 1.442695, %v1657_v0  ;;  %v1659_v0 = vsub.f32 %v4116_v50, %v4320_v57 }
 0x548   :  { %v4454_v12 = vpop.eup %2662 }
 0x549   :  { %v4449_v8 = vpop.xlane.xlu2 %1274  ;;  %v1438_v39 = vsel %vm1185_vm2, %v4454_v12, 0.0  ;;  %v2665_v41 = vpop.eup %2664 }
 0x54a   :  { %v1507_v26 = vmul.f32 %v2665_v41, %v4009_v9  ;;  %v1304_v9 = vsub.f32 %v4082_v58, %v4287_v33 }
 0x54b   :  { %1875 = vadd.xlane.f32.xlu2 %v1874_v61  ;;  %v1877_v61 = vsel %vm1185_vm2, %v4308_v56, 0.0  ;;  %v1658_v56 = vsub.f32 %v4110_v52, %v4328_v35 }
 0x54d   :  { %v1713_v33 = vmul.f32 1.442695, %v1658_v56 }
 0x551   :  { %v4458_v34 = vpop.xlane.xlu2 %1424 }
 0x553   :  { %1442 = vadd.xlane.f32.xlu2 %v1441_v27 }
 0x554   :  { %v1864_v5 = vpop.xlane.xlu0 %1863 }
 0x555   :  { %2666 = vrcp.f32 %v1864_v5 }
 0x556   :  { %2668 = vpow2.f32 %v1711_v53 }
 0x559   :  { %1439 = vadd.xlane.f32.xlu1 %v1438_v39  ;;  %v4490_v39 = vpop.xlane.xlu1 %1280 }
 0x55b   :  { %v2667_v44 = vpop.eup %2666 }
 0x55c   :  { %v1988_v36 = vmul.f32 %v2667_v44, %v3998_v30  ;;  %v4476_v30 = vpop.xlane.xlu2 %1633  ;;  %v4478_v23 = vpop.eup %2668 }
 0x55e   :  { %v2020_v37 = vsel %vm1185_vm2, %v1507_v26, %v1988_v36 }
 0x55f   :  { %v2148_v6 = vmul.f32 %v3677_v16, %v2020_v37  ;;  %v1358_v16 = vmul.f32 1.442695, %v1304_v9 }
 0x561   :  { %v2309_v27 = vsel %vm2307_vm4, %v2148_v6, %v3767_v40  ;;  %1878 = vadd.xlane.f32.xlu1 %v1877_v61  ;;  %2670 = vpow2.f32 %v1358_v16  ;;  %v1880_v40 = vsel %vm1185_vm2, %v4336_v59, 0.0  ;;  %v4497_v59 = vpop.permute.xlu1 %1797  ;;  %v1715_v6 = vmul.f32 1.442695, %v1659_v0 }
 0x562   :  { %2341 = vst.msk [vmem:[%s5036_s11 + $0x8] sm:$0xff] %vm340_vm1, %v2309_v27  ;;  %2672 = vpow2.f32 %v1713_v33 }
 0x563   :  { %2674 = vrcp.f32 %v4218_v10 }
 0x564   :  { %v4486_v5 = vpop.permute.xlu2 %1795 }
 0x567   :  { %v4488_v58 = vpop.eup %2670 }
 0x568   :  { %v1444_v35 = vsel %vm1185_vm2, %v4488_v58, 0.0  ;;  %v4495_v44 = vpop.eup %2672 }
 0x569   :  { %v2675_v26 = vpop.eup %2674 }
 0x56a   :  { %v1508_v10 = vmul.f32 %v2675_v26, %v4015_v43  ;;  %v4522_v43 = vpop.xlane.xlu0 %1427 }
 0x56b   :  { %1807 = vrot.lane.b32.xlu2 %v4478_v23, %s2832_s14 }
 0x56d   :  { %1881 = vadd.xlane.f32.xlu0 %v1880_v40 }
 0x575   :  { %1445 = vadd.xlane.f32.xlu0 %v1444_v35  ;;  %v1867_v41 = vpop.xlane.xlu2 %1866  ;;  %v4528_v35 = vpop.permute.xlu0 %1799 }
 0x576   :  { %2676 = vrcp.f32 %v1867_v41  ;;  %v1883_v41 = vsel %vm1185_vm2, %v4292_v31, 0.0 }
 0x577   :  { %2678 = vpow2.f32 %v1715_v6 }
 0x578   :  { %2680 = vrcp.f32 %v4273_v18  ;;  %v1305_v18 = vsub.f32 %v4110_v52, %v4350_v4 }
 0x57a   :  { %1809 = vrot.lane.b32.xlu1 %v4495_v44, %s2832_s14  ;;  %v1360_v26 = vmul.f32 1.442695, %v1305_v18 }
 0x57c   :  { %v2677_v36 = vpop.eup %2676 }
 0x57d   :  { %v1989_v37 = vmul.f32 %v2677_v36, %v4004_v45  ;;  %v4515_v57 = vpop.eup %2678 }
 0x57f   :  { %v2021_v61 = vsel %vm1185_vm2, %v1508_v10, %v1989_v37  ;;  %v1660_v37 = vsub.f32 %v4135_v1, %v4376_v62 }
 0x580   :  { %v2149_v53 = vmul.f32 %v3670_v55, %v2021_v61  ;;  %v1306_v55 = vsub.f32 %v4116_v50, %v4342_v28 }
 0x581   :  { %v4507_v27 = vpop.xlane.xlu1 %1430 }
 0x582   :  { %v2310_v9 = vsel %vm2307_vm4, %v2149_v53, %v3744_v19  ;;  %v2681_v19 = vpop.eup %2680  ;;  %v1362_v16 = vmul.f32 1.442695, %v1306_v55  ;;  %v1886_v53 = vsel %vm1185_vm2, %v4352_v7, 0.0 }
 0x583   :  { %2342 = vst.msk [vmem:[%s5036_s11 + $0x10] sm:$0xff] %vm340_vm1, %v2310_v9  ;;  %v1509_v40 = vmul.f32 %v2681_v19, %v4028_v60  ;;  %v4565_v9 = vpop.xlane.xlu2 %1433  ;;  %v5182_v19 = vld [vmem:[#allocation82_spill] sm:$0xff] }
 0x589   :  { %1811 = vrot.lane.b32.xlu0 %v4515_v57, %s2832_s14  ;;  %v1870_v45 = vpop.xlane.xlu1 %1869 }
 0x58a   :  { %2682 = vrcp.f32 %v1870_v45 }
 0x58b   :  { %2684 = vpow2.f32 %v1362_v16  ;;  %v5183_v16 = vld [vmem:[#allocation96_spill] sm:$0xff] }
 0x58c   :  { %2686 = vrcp.f32 %v4276_v51 }
 0x58d   :  { %2688 = vpow2.f32 %v1360_v26 }
 0x590   :  { %v2683_v56 = vpop.eup %2682 }
 0x591   :  { %v1990_v33 = vmul.f32 %v2683_v56, %v4039_v3  ;;  %v4540_v3 = vpop.eup %2684  ;;  %v5184_v56 = vld [vmem:[#allocation69_spill] sm:$0xff] }
 0x592   :  { %v2687_v31 = vpop.eup %2686 }
 0x593   :  { %v2022_v50 = vsel %vm1185_vm2, %v1509_v40, %v1990_v33  ;;  %v4545_v4 = vpop.eup %2688  ;;  %v1510_v0 = vmul.f32 %v2687_v31, %v4054_v54  ;;  %v1717_v54 = vmul.f32 1.442695, %v1660_v37  ;;  %v1662_v40 = vsub.f32 %v5184_v56, %v5183_v16  ;;  %v5187_v31 = vld [vmem:[#allocation5_spill] sm:$0xff] }
 0x594   :  { %v2150_v28 = vmul.f32 %v3694_v25, %v2022_v50  ;;  %1884 = vadd.xlane.f32.xlu2 %v1883_v41  ;;  %v1450_v25 = vsel %vm1185_vm2, %v4540_v3, 0.0  ;;  %v1447_v10 = vsel %vm1185_vm2, %v4545_v4, 0.0 }
 0x596   :  { %v2311_v60 = vsel %vm2307_vm4, %v2150_v28, %v3777_v46  ;;  %v5185_v28 = vld [vmem:[#allocation57_spill] sm:$0xff] }
 0x597   :  { %2343 = vst.msk [vmem:[%s5036_s11 + $0x18] sm:$0xff] %vm340_vm1, %v2311_v60  ;;  %v5186_v60 = vld [vmem:[#allocation56_spill] sm:$0xff] }
 0x59a   :  { %v1873_v52 = vpop.xlane.xlu0 %1872 }
 0x59b   :  { %2690 = vrcp.f32 %v1873_v52 }
 0x59c   :  { %1451 = vadd.xlane.f32.xlu2 %v1450_v25  ;;  %2692 = vpow2.f32 %v1717_v54 }
 0x5a1   :  { %v2691_v46 = vpop.eup %2690  ;;  %v4586_v41 = vpop.permute.xlu1 %1803 }
 0x5a2   :  { %v1991_v36 = vmul.f32 %v2691_v46, %v4049_v24  ;;  %v1307_v24 = vsub.f32 %v4135_v1, %v4330_v38  ;;  %v1661_v1 = vsub.f32 %v4161_v47, %v4372_v17  ;;  %v4575_v38 = vpop.permute.xlu2 %1801  ;;  %v1721_v17 = vmul.f32 1.442695, %v1662_v40  ;;  %v4606_v37 = vpop.xlane.xlu0 %1436 }
 0x5a3   :  { %v1308_v40 = vsub.f32 %v4161_v47, %v4398_v2 }
 0x5a4   :  { %v2023_v51 = vsel %vm1185_vm2, %v1510_v0, %v1991_v36  ;;  %1448 = vadd.xlane.f32.xlu1 %v1447_v10  ;;  %v1364_v62 = vmul.f32 1.442695, %v1307_v24  ;;  %v1719_v45 = vmul.f32 1.442695, %v1661_v1  ;;  %v5188_v0 = vld [vmem:[#allocation25_spill] sm:$0xff]  ;;  %v5190_v1 = vld [vmem:[#allocation58_spill] sm:$0xff] }
 0x5a5   :  { %v2151_v6 = vmul.f32 %v3679_v22, %v2023_v51  ;;  %v1889_v22 = vsel %vm1185_vm2, %v4388_v15, 0.0 }
 0x5a6   :  { %2694 = vpow2.f32 %v1364_v62 }
 0x5a7   :  { %v2312_v61 = vsel %vm2307_vm4, %v2151_v6, %v3800_v13  ;;  %v4569_v13 = vpop.eup %2692  ;;  %2696 = vrcp.f32 %v5182_v19  ;;  %v5189_v6 = vld [vmem:[#allocation88_spill] sm:$0xff] }
 0x5a8   :  { %2344 = vst.msk [vmem:[%s5036_s11 + $0x20] sm:$0xff] %vm340_vm1, %v2312_v61  ;;  %2698 = vpow2.f32 %v1719_v45  ;;  %v1309_v61 = vsub.f32 %v5184_v56, %v4384_v21  ;;  %v5193_v56 = vld [vmem:[#allocation89_spill] sm:$0xff] }
 0x5aa   :  { %v1368_v54 = vmul.f32 1.442695, %v1309_v61 }
 0x5ac   :  { %1887 = vadd.xlane.f32.xlu1 %v1886_v53  ;;  %v4577_v7 = vpop.eup %2694 }
 0x5ad   :  { %v1453_v55 = vsel %vm1185_vm2, %v4577_v7, 0.0  ;;  %v2697_v33 = vpop.eup %2696 }
 0x5ae   :  { %v4584_v18 = vpop.eup %2698  ;;  %v1511_v26 = vmul.f32 %v2697_v33, %v5185_v28  ;;  %v5194_v33 = vld [vmem:[#allocation9_spill] sm:$0xff] }
 0x5b3   :  { %1890 = vadd.xlane.f32.xlu0 %v1889_v22 }
 0x5b4   :  { %1813 = vrot.lane.b32.xlu2 %v4569_v13, %s2832_s14 }
 0x5b5   :  { %v4611_v53 = vpop.permute.xlu0 %1805 }
 0x5bb   :  { %1454 = vadd.xlane.f32.xlu0 %v1453_v55  ;;  %v5191_v55 = vld [vmem:[#allocation90_spill] sm:$0xff] }
 0x5bc   :  { %v1892_v19 = vsel %vm1185_vm2, %v5191_v55, 0.0 }
 0x5be   :  { %v1876_v15 = vpop.xlane.xlu2 %1875 }
 0x5bf   :  { %2700 = vrcp.f32 %v1876_v15  ;;  %v5192_v15 = vld [vmem:[#allocation59_spill] sm:$0xff] }
 0x5c0   :  { %2702 = vpow2.f32 %v1721_v17 }
 0x5c1   :  { %2704 = vrcp.f32 %v5189_v6 }
 0x5c5   :  { %v2701_v50 = vpop.eup %2700  ;;  %1815 = vrot.lane.b32.xlu1 %v4584_v18, %s2832_s14 }
 0x5c6   :  { %v1992_v52 = vmul.f32 %v2701_v50, %v5186_v60  ;;  %v4602_v51 = vpop.eup %2702  ;;  %v5195_v60 = vld [vmem:[#allocation29_spill] sm:$0xff] }
 0x5c7   :  { %v2705_v62 = vpop.eup %2704 }
 0x5c8   :  { %v2024_v25 = vsel %vm1185_vm2, %v1511_v26, %v1992_v52  ;;  %v1512_v45 = vmul.f32 %v2705_v62, %v5190_v1  ;;  %v1366_v26 = vmul.f32 1.442695, %v1308_v40  ;;  %v5199_v62 = vld [vmem:[#allocation33_spill] sm:$0xff]  ;;  %v4650_v40 = vpop.xlane.xlu2 %1442 }
 0x5c9   :  { %v2152_v46 = vmul.f32 %v5187_v31, %v2024_v25  ;;  %v5196_v31 = vld [vmem:[#allocation62_spill] sm:$0xff]  ;;  %v5200_v1 = vld [vmem:[#allocation73_spill] sm:$0xff] }
 0x5cb   :  { %v2313_v36 = vsel %vm2307_vm4, %v2152_v46, %v5188_v0  ;;  %v5197_v0 = vld [vmem:[#allocation61_spill] sm:$0xff] }
 0x5cc   :  { %2345 = vst.msk [vmem:[%s5036_s11 + $0x28] sm:$0xff] %vm340_vm1, %v2313_v36  ;;  %v4600_v10 = vpop.xlane.xlu1 %1439 }
 0x5cf   :  { %1817 = vrot.lane.b32.xlu0 %v4602_v51, %s2832_s14 }
 0x5d4   :  { %v1879_v24 = vpop.xlane.xlu1 %1878 }
 0x5d5   :  { %2706 = vrcp.f32 %v1879_v24  ;;  %v5198_v24 = vld [vmem:[#allocation6_spill] sm:$0xff] }
 0x5d6   :  { %2708 = vpow2.f32 %v1368_v54 }
 0x5d7   :  { %2710 = vrcp.f32 %v5193_v56 }
 0x5db   :  { %v2707_v22 = vpop.eup %2706 }
 0x5dc   :  { %v1993_v16 = vmul.f32 %v2707_v22, %v5192_v15  ;;  %v4622_v28 = vpop.eup %2708 }
 0x5dd   :  { %1893 = vadd.xlane.f32.xlu2 %v1892_v19  ;;  %v1459_v47 = vsel %vm1185_vm2, %v4622_v28, 0.0  ;;  %v2711_v2 = vpop.eup %2710  ;;  %v1310_v19 = vsub.f32 %v5200_v1, %v4374_v42  ;;  %v4662_v42 = vpop.permute.xlu2 %1807 }
 0x5de   :  { %v2025_v21 = vsel %vm1185_vm2, %v1512_v45, %v1993_v16  ;;  %v1513_v46 = vmul.f32 %v2711_v2, %v5196_v31  ;;  %v1663_v45 = vsub.f32 %v5200_v1, %v4419_v11  ;;  %v1898_v11 = vsel %vm1185_vm2, %v4441_v20, 0.0  ;;  %v5203_v20 = vld [vmem:[#allocation103_spill] sm:$0xff] }
 0x5df   :  { %v2153_v17 = vmul.f32 %v5194_v33, %v2025_v21  ;;  %v1370_v16 = vmul.f32 1.442695, %v1310_v19  ;;  %v1895_v21 = vsel %vm1185_vm2, %v4396_v29, 0.0  ;;  %v5201_v29 = vld [vmem:[#allocation77_spill] sm:$0xff] }
 0x5e0   :  { %v1882_v50 = vpop.xlane.xlu0 %1881  ;;  %v1723_v15 = vmul.f32 1.442695, %v1663_v45 }
 0x5e1   :  { %v2314_v52 = vsel %vm2307_vm4, %v2153_v17, %v5195_v60  ;;  %2712 = vrcp.f32 %v1882_v50  ;;  %v1664_v50 = vsub.f32 %v5201_v29, %v4417_v14  ;;  %v5202_v60 = vld [vmem:[#allocation85_spill] sm:$0xff]  ;;  %v5206_v14 = vld [vmem:[#allocation60_spill] sm:$0xff] }
 0x5e2   :  { %2346 = vst.msk [vmem:[%s5036_s11 + $0x30] sm:$0xff] %vm340_vm1, %v2314_v52  ;;  %2714 = vpow2.f32 %v1366_v26  ;;  %v5204_v52 = vld [vmem:[#allocation78_spill] sm:$0xff] }
 0x5e3   :  { %2716 = vpow2.f32 %v1723_v15  ;;  %v1725_v26 = vmul.f32 1.442695, %v1664_v50 }
 0x5e4   :  { %2718 = vpow2.f32 %v1370_v16 }
 0x5e5   :  { %1460 = vadd.xlane.f32.xlu2 %v1459_v47  ;;  %2720 = vrcp.f32 %v5202_v60  ;;  %v1665_v47 = vsub.f32 %v5204_v52, %v5203_v20  ;;  %v5210_v20 = vld [vmem:[#allocation95_spill] sm:$0xff] }
 0x5e7   :  { %v2713_v25 = vpop.eup %2712 }
 0x5e8   :  { %v1994_v36 = vmul.f32 %v2713_v25, %v5197_v0  ;;  %v4635_v61 = vpop.eup %2714  ;;  %v1727_v25 = vmul.f32 1.442695, %v1665_v47  ;;  %v4691_v15 = vpop.xlane.xlu0 %1445  ;;  %v5211_v47 = vld [vmem:[#allocation98_spill] sm:$0xff] }
 0x5e9   :  { %v1456_v55 = vsel %vm1185_vm2, %v4635_v61, 0.0  ;;  %v4656_v56 = vpop.eup %2716 }
 0x5ea   :  { %v2026_v6 = vsel %vm1185_vm2, %v1513_v46, %v1994_v36  ;;  %v4658_v33 = vpop.eup %2718  ;;  %v5205_v36 = vld [vmem:[#allocation63_spill] sm:$0xff] }
 0x5eb   :  { %v2154_v54 = vmul.f32 %v5198_v24, %v2026_v6  ;;  %v1462_v17 = vsel %vm1185_vm2, %v4658_v33, 0.0  ;;  %v2721_v31 = vpop.eup %2720 }
 0x5ec   :  { %v1514_v6 = vmul.f32 %v2721_v31, %v5205_v36  ;;  %v4674_v24 = vpop.permute.xlu1 %1809 }
 0x5ed   :  { %v2315_v22 = vsel %vm2307_vm4, %v2154_v54, %v5199_v62 }
 0x5ee   :  { %2347 = vst.msk [vmem:[%s5036_s11 + $0x38] sm:$0xff] %vm340_vm1, %v2315_v22  ;;  %v5207_v22 = vld [vmem:[#allocation7_spill] sm:$0xff] }
 0x5ef   :  { %1457 = vadd.xlane.f32.xlu1 %v1456_v55  ;;  %v5208_v55 = vld [vmem:[#allocation34_spill] sm:$0xff] }
 0x5f7   :  { %1896 = vadd.xlane.f32.xlu1 %v1895_v21  ;;  %v1312_v21 = vsub.f32 %v5204_v52, %v4433_v32  ;;  %v5213_v32 = vld [vmem:[#allocation65_spill] sm:$0xff] }
 0x5f9   :  { %1899 = vadd.xlane.f32.xlu0 %v1898_v11  ;;  %v5209_v11 = vld [vmem:[#allocation97_spill] sm:$0xff] }
 0x5fd   :  { %1819 = vrot.lane.b32.xlu2 %v4656_v56, %s2832_s14 }
 0x601   :  { %1463 = vadd.xlane.f32.xlu0 %v1462_v17  ;;  %v4698_v17 = vpop.permute.xlu0 %1811 }
 0x607   :  { %v1885_v2 = vpop.xlane.xlu2 %1884 }
 0x608   :  { %2722 = vrcp.f32 %v1885_v2  ;;  %v1901_v2 = vsel %vm1185_vm2, %v5211_v47, 0.0  ;;  %v5218_v47 = vld [vmem:[#allocation8_spill] sm:$0xff] }
 0x609   :  { %2724 = vpow2.f32 %v1725_v26  ;;  %v1374_v26 = vmul.f32 1.442695, %v1312_v21 }
 0x60a   :  { %2726 = vpow2.f32 %v1727_v25 }
 0x60b   :  { %2728 = vrcp.f32 %v5209_v11 }
 0x60e   :  { %v2723_v46 = vpop.eup %2722 }
 0x60f   :  { %v4671_v0 = vpop.eup %2724  ;;  %v1995_v54 = vmul.f32 %v2723_v46, %v5206_v14  ;;  %v5212_v46 = vld [vmem:[#allocation64_spill] sm:$0xff] }
 0x610   :  { %1821 = vrot.lane.b32.xlu1 %v4671_v0, %s2832_s14  ;;  %v4681_v45 = vpop.eup %2726 }
 0x611   :  { %v2027_v62 = vsel %vm1185_vm2, %v1514_v6, %v1995_v54  ;;  %v2729_v60 = vpop.eup %2728  ;;  %v1311_v6 = vsub.f32 %v5201_v29, %v4449_v8  ;;  %v5216_v29 = vld [vmem:[#allocation68_spill] sm:$0xff] }
 0x612   :  { %v2155_v1 = vmul.f32 %v5207_v22, %v2027_v62  ;;  %v1515_v36 = vmul.f32 %v2729_v60, %v5212_v46  ;;  %v5214_v62 = vld [vmem:[#allocation12_spill] sm:$0xff]  ;;  %v5220_v46 = vld [vmem:[#allocation83_spill] sm:$0xff] }
 0x614   :  { %v2316_v19 = vsel %vm2307_vm4, %v2155_v1, %v5208_v55  ;;  %v1372_v55 = vmul.f32 1.442695, %v1311_v6 }
 0x615   :  { %2348 = vst.msk [vmem:[%s5036_s11 + $0x40] sm:$0xff] %vm340_vm1, %v2316_v19  ;;  %1823 = vrot.lane.b32.xlu0 %v4681_v45, %s2832_s14  ;;  %v5215_v19 = vld [vmem:[#allocation38_spill] sm:$0xff] }
 0x617   :  { %v4693_v16 = vpop.xlane.xlu1 %1448 }
 0x61f   :  { %v1888_v50 = vpop.xlane.xlu1 %1887 }
 0x620   :  { %2730 = vrcp.f32 %v1888_v50 }
 0x621   :  { %2732 = vpow2.f32 %v1374_v26  ;;  %v5217_v26 = vld [vmem:[#allocation67_spill] sm:$0xff] }
 0x622   :  { %2734 = vrcp.f32 %v5210_v20 }
 0x626   :  { %v2731_v25 = vpop.eup %2730  ;;  %v1891_v31 = vpop.xlane.xlu0 %1890  ;;  %1902 = vadd.xlane.f32.xlu2 %v1901_v2 }
 0x627   :  { %v1996_v52 = vmul.f32 %v2731_v25, %v5213_v32  ;;  %2736 = vrcp.f32 %v1891_v31  ;;  %v4708_v54 = vpop.eup %2732  ;;  %v5219_v25 = vld [vmem:[#allocation42_spill] sm:$0xff] }
 0x628   :  { %v2735_v1 = vpop.eup %2734  ;;  %v1468_v8 = vsel %vm1185_vm2, %v4708_v54, 0.0  ;;  %2738 = vpow2.f32 %v1372_v55 }
 0x629   :  { %v2028_v14 = vsel %vm1185_vm2, %v1515_v36, %v1996_v52  ;;  %v1516_v50 = vmul.f32 %v2735_v1, %v5216_v29  ;;  %v1313_v36 = vsub.f32 %v5220_v46, %v4490_v39  ;;  %v1666_v52 = vsub.f32 %v5220_v46, %v4476_v30  ;;  %v4739_v1 = vpop.xlane.xlu2 %1451 }
 0x62a   :  { %v2156_v22 = vmul.f32 %v5214_v62, %v2028_v14  ;;  %v1904_v39 = vsel %vm1185_vm2, %v4445_v48, 0.0  ;;  %v1916_v48 = vsel %vm1185_vm2, %v4575_v38, 0.0  ;;  %v1922_v29 = vsel %vm1185_vm2, %v4611_v53, 0.0  ;;  %v5223_v38 = vld [vmem:[#allocation66_spill] sm:$0xff] }
 0x62b   :  { %v1376_v6 = vmul.f32 1.442695, %v1313_v36  ;;  %v1729_v62 = vmul.f32 1.442695, %v1666_v52  ;;  %v5224_v36 = vld [vmem:[#allocation10_spill] sm:$0xff] }
 0x62c   :  { %v2317_v21 = vsel %vm2307_vm4, %v2156_v22, %v5215_v19  ;;  %v1907_v22 = vsel %vm1185_vm2, %v4486_v5, 0.0 }
 0x62d   :  { %v2737_v11 = vpop.eup %2736  ;;  %2349 = vst.msk [vmem:[%s5036_s11 + $0x48] sm:$0xff] %vm340_vm1, %v2317_v21  ;;  %2740 = vpow2.f32 %v1376_v6  ;;  %v1913_v21 = vsel %vm1185_vm2, %v4528_v35, 0.0 }
 0x62e   :  { %v1997_v60 = vmul.f32 %v2737_v11, %v5217_v26  ;;  %1469 = vadd.xlane.f32.xlu2 %v1468_v8  ;;  %v4731_v32 = vpop.eup %2738  ;;  %2742 = vpow2.f32 %v1729_v62  ;;  %v5221_v11 = vld [vmem:[#allocation92_spill] sm:$0xff]  ;;  %v1925_v26 = vsel %vm1185_vm2, %v4662_v42, 0.0  ;;  %v5225_v42 = vld [vmem:[#allocation43_spill] sm:$0xff] }
 0x62f   :  { %v1465_v14 = vsel %vm1185_vm2, %v4731_v32, 0.0  ;;  %2744 = vrcp.f32 %v5221_v11 }
 0x630   :  { %v2029_v20 = vsel %vm1185_vm2, %v1516_v50, %v1997_v60  ;;  %v4760_v60 = vpop.xlane.xlu0 %1454 }
 0x631   :  { %v2157_v2 = vmul.f32 %v5218_v47, %v2029_v20  ;;  %v1814_v5 = vpop.permute.xlu2 %1813  ;;  %v5222_v20 = vld [vmem:[#allocation70_spill] sm:$0xff] }
 0x633   :  { %v2318_v31 = vsel %vm2307_vm4, %v2157_v2, %v5219_v25  ;;  %v4743_v55 = vpop.eup %2740  ;;  %v1931_v25 = vsel %vm1185_vm2, %v4698_v17, 0.0 }
 0x634   :  { %2350 = vst.msk [vmem:[%s5036_s11 + $0x50] sm:$0xff] %vm340_vm1, %v2318_v31  ;;  %v4745_v30 = vpop.eup %2742  ;;  %v1471_v19 = vsel %vm1185_vm2, %v4743_v55, 0.0 }
 0x635   :  { %v2745_v50 = vpop.eup %2744 }
 0x636   :  { %v1517_v47 = vmul.f32 %v2745_v50, %v5222_v20 }
 0x637   :  { %v1816_v53 = vpop.permute.xlu1 %1815 }
 0x63a   :  { %1466 = vadd.xlane.f32.xlu1 %v1465_v14  ;;  %v1934_v14 = vsel %vm1185_vm2, %v1814_v5, 0.0 }
 0x63f   :  { %1908 = vadd.xlane.f32.xlu0 %v1907_v22 }
 0x641   :  { %v1818_v62 = vpop.permute.xlu0 %1817 }
 0x642   :  { %1905 = vadd.xlane.f32.xlu1 %v1904_v39  ;;  %v1940_v17 = vsel %vm1185_vm2, %v1818_v62, 0.0 }
 0x646   :  { %1825 = vrot.lane.b32.xlu2 %v4745_v30, %s2832_s14 }
 0x647   :  { %1472 = vadd.xlane.f32.xlu0 %v1471_v19 }
 0x64a   :  { %1914 = vadd.xlane.f32.xlu1 %v1913_v21  ;;  %v5226_v21 = vld [vmem:[#allocation105_spill] sm:$0xff] }
 0x64f   :  { %1917 = vadd.xlane.f32.xlu0 %v1916_v48  ;;  %v5227_v48 = vld [vmem:[#allocation104_spill] sm:$0xff] }
 0x650   :  { %v1894_v8 = vpop.xlane.xlu2 %1893 }
 0x651   :  { %2746 = vrcp.f32 %v1894_v8  ;;  %v1910_v8 = vsel %vm1185_vm2, %v4497_v59, 0.0  ;;  %v1919_v59 = vsel %vm1185_vm2, %v4586_v41, 0.0  ;;  %v1928_v41 = vsel %vm1185_vm2, %v4674_v24, 0.0  ;;  %v2829_v24 = vld [vmem:[%s5031_s4] ss:$0 sm:$0xff] }
 0x652   :  { %1923 = vadd.xlane.f32.xlu1 %v1922_v29  ;;  %2748 = vrcp.f32 %v5226_v21 }
 0x653   :  { %2750 = vrcp.f32 %v5227_v48  ;;  %v5235_v48 = vld [vmem:[#allocation52_spill] sm:$0xff] }
 0x657   :  { %v2747_v35 = vpop.eup %2746  ;;  %1926 = vadd.xlane.f32.xlu0 %v1925_v26 }
 0x658   :  { %v1998_v2 = vmul.f32 %v2747_v35, %v5223_v38  ;;  %v4766_v31 = vpop.xlane.xlu2 %1460  ;;  %v2749_v29 = vpop.eup %2748  ;;  %v5228_v35 = vld [vmem:[#allocation71_spill] sm:$0xff] }
 0x659   :  { %v2751_v50 = vpop.eup %2750  ;;  %v1518_v20 = vmul.f32 %v2749_v29, %v5228_v35 }
 0x65a   :  { %v2030_v46 = vsel %vm1185_vm2, %v1517_v47, %v1998_v2  ;;  %1932 = vadd.xlane.f32.xlu1 %v1931_v25  ;;  %v5229_v47 = vld [vmem:[#allocation72_spill] sm:$0xff] }
 0x65b   :  { %v2158_v52 = vmul.f32 %v5224_v36, %v2030_v46  ;;  %v5230_v25 = vld [vmem:[#allocation76_spill] sm:$0xff] }
 0x65c   :  { %v1519_v46 = vmul.f32 %v2751_v50, %v5230_v25 }
 0x65d   :  { %v2319_v6 = vsel %vm2307_vm4, %v2158_v52, %v5225_v42  ;;  %v5231_v52 = vld [vmem:[#allocation74_spill] sm:$0xff] }
 0x65e   :  { %2351 = vst.msk [vmem:[%s5036_s11 + $0x58] sm:$0xff] %vm340_vm1, %v2319_v6  ;;  %v5232_v6 = vld [vmem:[#allocation15_spill] sm:$0xff] }
 0x65f   :  { %1935 = vadd.xlane.f32.xlu0 %v1934_v14 }
 0x660   :  { %v1820_v39 = vpop.permute.xlu2 %1819 }
 0x661   :  { %v1943_v19 = vsel %vm1185_vm2, %v1820_v39, 0.0 }
 0x662   :  { %1941 = vadd.xlane.f32.xlu1 %v1940_v17  ;;  %v4778_v22 = vpop.xlane.xlu1 %1457  ;;  %v5233_v17 = vld [vmem:[#allocation47_spill] sm:$0xff] }
 0x667   :  { %1944 = vadd.xlane.f32.xlu0 %v1943_v19  ;;  %v5234_v19 = vld [vmem:[#allocation11_spill] sm:$0xff] }
 0x66a   :  { %v1897_v5 = vpop.xlane.xlu1 %1896 }
 0x66b   :  { %2752 = vrcp.f32 %v1897_v5 }
 0x66c   :  { %v1900_v11 = vpop.xlane.xlu0 %1899 }
 0x66d   :  { %2754 = vrcp.f32 %v1900_v11 }
 0x66f   :  { %1911 = vadd.xlane.f32.xlu2 %v1910_v8  ;;  %v1937_v8 = vsel %vm1185_vm2, %v1816_v53, 0.0 }
 0x671   :  { %v2753_v26 = vpop.eup %2752 }
 0x672   :  { %v1999_v38 = vmul.f32 %v2753_v26, %v5229_v47 }
 0x673   :  { %v2755_v2 = vpop.eup %2754 }
 0x674   :  { %v2031_v36 = vsel %vm1185_vm2, %v1518_v20, %v1999_v38  ;;  %v2000_v42 = vmul.f32 %v2755_v2, %v5231_v52  ;;  %v4809_v11 = vpop.xlane.xlu0 %1463  ;;  %v5236_v20 = vld [vmem:[#allocation100_spill] sm:$0xff]  ;;  %v5237_v38 = vld [vmem:[#allocation3_spill] sm:$0xff] }
 0x675   :  { %v2159_v14 = vmul.f32 %v5232_v6, %v2031_v36  ;;  %2756 = vrcp.f32 %v5236_v20  ;;  %v545_v2 = vadd.f32 %v2829_v24, %v5237_v38  ;;  %v5238_v36 = vld [vmem:[#allocation4_spill] sm:$0xff] }
 0x676   :  { %v2032_v62 = vsel %vm1185_vm2, %v1519_v46, %v2000_v42  ;;  %v548_v52 = vadd.f32 %v2829_v24, %v5238_v36  ;;  %v5239_v42 = vld [vmem:[#allocation79_spill] sm:$0xff] }
 0x677   :  { %v2320_v39 = vsel %vm2307_vm4, %v2159_v14, %v5233_v17  ;;  %v2160_v21 = vmul.f32 %v5234_v19, %v2032_v62  ;;  %1920 = vadd.xlane.f32.xlu2 %v1919_v59  ;;  %v580_v46 = vmax.f32 %v545_v2, 0.0  ;;  %v5240_v14 = vld [vmem:[#allocation75_spill] sm:$0xff] }
 0x678   :  { %2352 = vst.msk [vmem:[%s5036_s11 + $0x60] sm:$0xff] %vm340_vm1, %v2320_v39  ;;  %v5241_v39 = vld [vmem:[#allocation13_spill] sm:$0xff] }
 0x679   :  { %v2321_v5 = vsel %vm2307_vm4, %v2160_v21, %v5235_v48  ;;  %v581_v21 = vmax.f32 %v548_v52, 0.0  ;;  %v5242_v48 = vld [vmem:[#allocation22_spill] sm:$0xff] }
 0x67a   :  { %2353 = vst.msk [vmem:[%s5036_s11 + $0x68] sm:$0xff] %vm340_vm1, %v2321_v5 }
 0x67b   :  { %v2757_v53 = vpop.eup %2756 }
 0x67c   :  { %v1520_v6 = vmul.f32 %v2757_v53, %v5239_v42  ;;  %v5244_v53 = vld [vmem:[#allocation87_spill] sm:$0xff] }
 0x67f   :  { %1929 = vadd.xlane.f32.xlu2 %v1928_v41 }
 0x682   :  { %v1822_v26 = vpop.permute.xlu1 %1821 }
 0x683   :  { %v1946_v35 = vsel %vm1185_vm2, %v1822_v26, 0.0 }
 0x687   :  { %v1824_v29 = vpop.permute.xlu0 %1823  ;;  %1938 = vadd.xlane.f32.xlu2 %v1937_v8 }
 0x688   :  { %v1949_v50 = vsel %vm1185_vm2, %v1824_v29, 0.0 }
 0x689   :  { %1950 = vadd.xlane.f32.xlu1 %v1949_v50 }
 0x68f   :  { %1947 = vadd.xlane.f32.xlu2 %v1946_v35 }
 0x699   :  { %v1903_v47 = vpop.xlane.xlu2 %1902 }
 0x69a   :  { %2758 = vrcp.f32 %v1903_v47  ;;  %v5243_v47 = vld [vmem:[#allocation2_spill] sm:$0xff] }
 0x69b   :  { %2760 = vrcp.f32 %v4522_v43  ;;  %v542_v38 = vadd.f32 %v2829_v24, %v5243_v47  ;;  %v5252_v47 = vld [vmem:[#allocation93_spill] sm:$0xff] }
 0x6a0   :  { %v2759_v25 = vpop.eup %2758 }
 0x6a1   :  { %v2001_v59 = vmul.f32 %v2759_v25, %v5240_v14  ;;  %v4822_v62 = vpop.xlane.xlu2 %1469  ;;  %v2761_v35 = vpop.eup %2760 }
 0x6a2   :  { %2271 = vrot.lane.b32.xlu1 %v580_v46, %s2831_s17  ;;  %v1522_v25 = vmul.f32 %v2761_v35, %v5244_v53  ;;  %v5245_v46 = vld [vmem:[#allocation84_spill] sm:$0xff] }
 0x6a3   :  { %v2033_v17 = vsel %vm1185_vm2, %v1520_v6, %v2001_v59  ;;  %v579_v6 = vmax.f32 %v542_v38, 0.0  ;;  %v5247_v59 = vld [vmem:[#allocation14_spill] sm:$0xff] }
 0x6a4   :  { %v2161_v19 = vmul.f32 %v5241_v39, %v2033_v17  ;;  %v5248_v39 = vld [vmem:[#allocation81_spill] sm:$0xff] }
 0x6a6   :  { %v2322_v5 = vsel %vm2307_vm4, %v2161_v19, %v5242_v48 }
 0x6a7   :  { %2354 = vst.msk [vmem:[%s5036_s11 + $0x70] sm:$0xff] %vm340_vm1, %v2322_v5  ;;  %2273 = vrot.lane.b32.xlu2 %v581_v21, %s2831_s17  ;;  %v5249_v21 = vld [vmem:[#allocation30_spill] sm:$0xff] }
 0x6a9   :  { %v1826_v41 = vpop.permute.xlu2 %1825 }
 0x6aa   :  { %v1952_v8 = vsel %vm1185_vm2, %v1826_v41, 0.0 }
 0x6ab   :  { %1953 = vadd.xlane.f32.xlu0 %v1952_v8 }
 0x6ad   :  { %v4835_v29 = vpop.xlane.xlu1 %1466 }
 0x6b2   :  { %v1909_v50 = vpop.xlane.xlu0 %1908 }
 0x6b3   :  { %2762 = vrcp.f32 %v1909_v50  ;;  %v5251_v50 = vld [vmem:[#allocation26_spill] sm:$0xff] }
 0x6b4   :  { %2764 = vrcp.f32 %v4458_v34  ;;  %v5246_v34 = vld [vmem:[#allocation80_spill] sm:$0xff] }
 0x6b5   :  { %v1906_v26 = vpop.xlane.xlu1 %1905 }
 0x6b6   :  { %2766 = vrcp.f32 %v1906_v26 }
 0x6b7   :  { %2768 = vrcp.f32 %v4565_v9  ;;  %v5250_v9 = vld [vmem:[#allocation18_spill] sm:$0xff] }
 0x6b9   :  { %v2763_v20 = vpop.eup %2762 }
 0x6ba   :  { %v2765_v2 = vpop.eup %2764  ;;  %v2003_v36 = vmul.f32 %v2763_v20, %v5245_v46  ;;  %v4842_v52 = vpop.xlane.xlu0 %1472 }
 0x6bb   :  { %v1521_v14 = vmul.f32 %v2765_v2, %v5246_v34  ;;  %v5253_v2 = vld [vmem:[#allocation91_spill] sm:$0xff]  ;;  %v5255_v34 = vld [vmem:[#allocation101_spill] sm:$0xff] }
 0x6bc   :  { %v2767_v42 = vpop.eup %2766  ;;  %v2035_v43 = vsel %vm1185_vm2, %v1522_v25, %v2003_v36  ;;  %v5254_v36 = vld [vmem:[#allocation19_spill] sm:$0xff] }
 0x6bd   :  { %v2163_v17 = vmul.f32 %v5247_v59, %v2035_v43  ;;  %v2002_v19 = vmul.f32 %v2767_v42, %v5248_v39  ;;  %v1915_v24 = vpop.xlane.xlu1 %1914  ;;  %v2769_v8 = vpop.eup %2768  ;;  %v5256_v59 = vld [vmem:[#allocation35_spill] sm:$0xff] }
 0x6be   :  { %2770 = vrcp.f32 %v1915_v24  ;;  %v1524_v38 = vmul.f32 %v2769_v8, %v5252_v47 }
 0x6bf   :  { %v2324_v48 = vsel %vm2307_vm4, %v2163_v17, %v5249_v21  ;;  %v2034_v5 = vsel %vm1185_vm2, %v1521_v14, %v2002_v19  ;;  %2269 = vrot.lane.b32.xlu0 %v579_v6, %s2831_s17  ;;  %2772 = vrcp.f32 %v4606_v37  ;;  %v5257_v17 = vld [vmem:[#allocation99_spill] sm:$0xff] }
 0x6c0   :  { %2356 = vst.msk [vmem:[%s5036_s11 + $0x80] sm:$0xff] %vm340_vm1, %v2324_v48  ;;  %v2162_v41 = vmul.f32 %v5250_v9, %v2034_v5  ;;  %v5258_v48 = vld [vmem:[#allocation17_spill] sm:$0xff] }
 0x6c2   :  { %v2323_v26 = vsel %vm2307_vm4, %v2162_v41, %v5251_v50  ;;  %v1918_v35 = vpop.xlane.xlu0 %1917  ;;  %v5259_v50 = vld [vmem:[#allocation39_spill] sm:$0xff] }
 0x6c3   :  { %2355 = vst.msk [vmem:[%s5036_s11 + $0x78] sm:$0xff] %vm340_vm1, %v2323_v26  ;;  %2774 = vrcp.f32 %v1918_v35 }
 0x6c4   :  { %v2771_v20 = vpop.eup %2770  ;;  %2776 = vrcp.f32 %v4650_v40 }
 0x6c5   :  { %v2005_v53 = vmul.f32 %v2771_v20, %v5253_v2  ;;  %v1924_v25 = vpop.xlane.xlu1 %1923  ;;  %v2773_v37 = vpop.eup %2772 }
 0x6c6   :  { %2778 = vrcp.f32 %v1924_v25  ;;  %v1525_v14 = vmul.f32 %v2773_v37, %v5255_v34 }
 0x6c7   :  { %v2037_v46 = vsel %vm1185_vm2, %v1524_v38, %v2005_v53  ;;  %2780 = vrcp.f32 %v4691_v15  ;;  %v5261_v38 = vld [vmem:[#allocation44_spill] sm:$0xff] }
 0x6c8   :  { %v2165_v42 = vmul.f32 %v5254_v36, %v2037_v46 }
 0x6c9   :  { %v2775_v43 = vpop.eup %2774 }
 0x6ca   :  { %v2777_v6 = vpop.eup %2776  ;;  %v2326_v40 = vsel %vm2307_vm4, %v2165_v42, %v5256_v59  ;;  %v2006_v39 = vmul.f32 %v2775_v43, %v5257_v17  ;;  %v1927_v19 = vpop.xlane.xlu0 %1926  ;;  %v5265_v17 = vld [vmem:[#allocation50_spill] sm:$0xff] }
 0x6cb   :  { %2358 = vst.msk [vmem:[%s5036_s11 + $0x90] sm:$0xff] %vm340_vm1, %v2326_v40  ;;  %2782 = vrcp.f32 %v1927_v19  ;;  %v1527_v21 = vmul.f32 %v2777_v6, %v4447_v63  ;;  %v5263_v6 = vld [vmem:[#allocation49_spill] sm:$0xff] }
 0x6cc   :  { %v2779_v24 = vpop.eup %2778  ;;  %2784 = vrcp.f32 %v4739_v1  ;;  %v2038_v15 = vsel %vm1185_vm2, %v1525_v14, %v2006_v39  ;;  %v5260_v1 = vld [vmem:[#allocation23_spill] sm:$0xff] }
 0x6cd   :  { %v2166_v5 = vmul.f32 %v5258_v48, %v2038_v15  ;;  %v2008_v9 = vmul.f32 %v2779_v24, %v4427_v49  ;;  %v1933_v41 = vpop.xlane.xlu1 %1932  ;;  %v2781_v8 = vpop.eup %2780  ;;  %v5266_v48 = vld [vmem:[#allocation28_spill] sm:$0xff] }
 0x6ce   :  { %2786 = vrcp.f32 %v1933_v41  ;;  %v1528_v49 = vmul.f32 %v2781_v8, %v4488_v58  ;;  %v5262_v58 = vld [vmem:[#allocation21_spill] sm:$0xff]  ;;  %v5267_v41 = vld [vmem:[#allocation54_spill] sm:$0xff] }
 0x6cf   :  { %v2327_v26 = vsel %vm2307_vm4, %v2166_v5, %v5259_v50  ;;  %v2040_v35 = vsel %vm1185_vm2, %v1527_v21, %v2008_v9  ;;  %2788 = vrcp.f32 %v4760_v60  ;;  %v5268_v50 = vld [vmem:[#allocation36_spill] sm:$0xff] }
 0x6d0   :  { %2359 = vst.msk [vmem:[%s5036_s11 + $0x98] sm:$0xff] %vm340_vm1, %v2327_v26  ;;  %v2168_v20 = vmul.f32 %v5260_v1, %v2040_v35  ;;  %v5269_v1 = vld [vmem:[#allocation53_spill] sm:$0xff] }
 0x6d1   :  { %v2783_v63 = vpop.eup %2782 }
 0x6d2   :  { %v2785_v47 = vpop.eup %2784  ;;  %v2329_v2 = vsel %vm2307_vm4, %v2168_v20, %v5261_v38  ;;  %v2009_v53 = vmul.f32 %v2783_v63, %v4478_v23  ;;  %v1936_v25 = vpop.xlane.xlu0 %1935 }
 0x6d3   :  { %2361 = vst.msk [vmem:[%s5036_s11 + $0xa8] sm:$0xff] %vm340_vm1, %v2329_v2  ;;  %2790 = vrcp.f32 %v1936_v25  ;;  %v1530_v46 = vmul.f32 %v2785_v47, %v4540_v3 }
 0x6d4   :  { %v2787_v37 = vpop.eup %2786  ;;  %2792 = vrcp.f32 %v4766_v31  ;;  %v2041_v60 = vsel %vm1185_vm2, %v1528_v49, %v2009_v53  ;;  %v5264_v31 = vld [vmem:[#allocation27_spill] sm:$0xff]  ;;  %v5270_v49 = vld [vmem:[#allocation37_spill] sm:$0xff]  ;;  %v5272_v53 = vld [vmem:[#allocation94_spill] sm:$0xff] }
 0x6d5   :  { %v2169_v36 = vmul.f32 %v5262_v58, %v2041_v60  ;;  %v2011_v42 = vmul.f32 %v2787_v37, %v4515_v57  ;;  %v1942_v43 = vpop.xlane.xlu1 %1941  ;;  %v2789_v23 = vpop.eup %2788  ;;  %v5273_v37 = vld [vmem:[#allocation86_spill] sm:$0xff] }
 0x6d6   :  { %2794 = vrcp.f32 %v1942_v43  ;;  %v1531_v57 = vmul.f32 %v2789_v23, %v4577_v7  ;;  %v5275_v23 = vld [vmem:[#allocation31_spill] sm:$0xff] }
 0x6d7   :  { %v2330_v34 = vsel %vm2307_vm4, %v2169_v36, %v5263_v6  ;;  %v2043_v14 = vsel %vm1185_vm2, %v1530_v46, %v2011_v42  ;;  %2796 = vrcp.f32 %v4809_v11  ;;  %v5274_v36 = vld [vmem:[#allocation16_spill] sm:$0xff] }
 0x6d8   :  { %2362 = vst.msk [vmem:[%s5036_s11 + $0xb0] sm:$0xff] %vm340_vm1, %v2330_v34  ;;  %v2171_v59 = vmul.f32 %v5264_v31, %v2043_v14  ;;  %v5276_v14 = vld [vmem:[#allocation102_spill] sm:$0xff] }
 0x6d9   :  { %v2791_v3 = vpop.eup %2790 }
 0x6da   :  { %v2793_v40 = vpop.eup %2792  ;;  %v2332_v39 = vsel %vm2307_vm4, %v2171_v59, %v5265_v17  ;;  %v2012_v19 = vmul.f32 %v2791_v3, %v4569_v13  ;;  %v1945_v24 = vpop.xlane.xlu0 %1944 }
 0x6db   :  { %2364 = vst.msk [vmem:[%s5036_s11 + $0xc0] sm:$0xff] %vm340_vm1, %v2332_v39  ;;  %2798 = vrcp.f32 %v1945_v24  ;;  %v1533_v11 = vmul.f32 %v2793_v40, %v4622_v28  ;;  %v5277_v40 = vld [vmem:[#allocation20_spill] sm:$0xff] }
 0x6dc   :  { %v2795_v15 = vpop.eup %2794  ;;  %v2044_v21 = vsel %vm1185_vm2, %v1531_v57, %v2012_v19  ;;  %2800 = vrcp.f32 %v4507_v27  ;;  %v5271_v27 = vld [vmem:[#allocation55_spill] sm:$0xff]  ;;  %v5278_v39 = vld [vmem:[#allocation40_spill] sm:$0xff] }
 0x6dd   :  { %v2172_v5 = vmul.f32 %v5266_v48, %v2044_v21  ;;  %v2014_v7 = vmul.f32 %v2795_v15, %v4602_v51  ;;  %v2797_v9 = vpop.eup %2796 }
 0x6de   :  { %v1534_v28 = vmul.f32 %v2797_v9, %v4658_v33 }
 0x6df   :  { %v2333_v13 = vsel %vm2307_vm4, %v2172_v5, %v5267_v41  ;;  %v2046_v8 = vsel %vm1185_vm2, %v1533_v11, %v2014_v7  ;;  %v5279_v11 = vld [vmem:[#allocation24_spill] sm:$0xff] }
 0x6e0   :  { %2365 = vst.msk [vmem:[%s5036_s11 + $0xc8] sm:$0xff] %vm340_vm1, %v2333_v13  ;;  %v2174_v26 = vmul.f32 %v5268_v50, %v2046_v8  ;;  %v5280_v7 = vld [vmem:[#allocation48_spill] sm:$0xff] }
 0x6e1   :  { %v2799_v35 = vpop.eup %2798  ;;  %v5281_v8 = vld [vmem:[#allocation32_spill] sm:$0xff] }
 0x6e2   :  { %v2335_v51 = vsel %vm2307_vm4, %v2174_v26, %v5269_v1  ;;  %v2015_v20 = vmul.f32 %v2799_v35, %v4656_v56  ;;  %v1912_v63 = vpop.xlane.xlu2 %1911  ;;  %v2801_v2 = vpop.eup %2800  ;;  %v5282_v26 = vld [vmem:[#allocation51_spill] sm:$0xff] }
 0x6e3   :  { %2367 = vst.msk [vmem:[%s5036_s11 + $0xd8] sm:$0xff] %vm340_vm1, %v2335_v51  ;;  %2802 = vrcp.f32 %v1912_v63  ;;  %v1523_v25 = vmul.f32 %v2801_v2, %v5272_v53 }
 0x6e4   :  { %v2047_v47 = vsel %vm1185_vm2, %v1534_v28, %v2015_v20  ;;  %2804 = vrcp.f32 %v4600_v10  ;;  %v5283_v20 = vld [vmem:[#allocation46_spill] sm:$0xff] }
 0x6e5   :  { %v2175_v38 = vmul.f32 %v5270_v49, %v2047_v47 }
 0x6e7   :  { %v2336_v33 = vsel %vm2307_vm4, %v2175_v38, %v5271_v27 }
 0x6e8   :  { %2368 = vst.msk [vmem:[%s5036_s11 + $0xe0] sm:$0xff] %vm340_vm1, %v2336_v33 }
 0x6e9   :  { %v2803_v56 = vpop.eup %2802 }
 0x6ea   :  { %v2004_v60 = vmul.f32 %v2803_v56, %v5273_v37  ;;  %v1921_v46 = vpop.xlane.xlu2 %1920  ;;  %v2805_v43 = vpop.eup %2804  ;;  %v5284_v37 = vld [vmem:[#allocation45_spill] sm:$0xff] }
 0x6eb   :  { %2806 = vrcp.f32 %v1921_v46  ;;  %v1526_v34 = vmul.f32 %v2805_v43, %v4454_v12 }
 0x6ec   :  { %v2036_v58 = vsel %vm1185_vm2, %v1523_v25, %v2004_v60  ;;  %2808 = vrcp.f32 %v4693_v16 }
 0x6ed   :  { %v2164_v42 = vmul.f32 %v5274_v36, %v2036_v58 }
 0x6ef   :  { %v2325_v6 = vsel %vm2307_vm4, %v2164_v42, %v5275_v23 }
 0x6f0   :  { %2357 = vst.msk [vmem:[%s5036_s11 + $0x88] sm:$0xff] %vm340_vm1, %v2325_v6 }
 0x6f1   :  { %v2807_v10 = vpop.eup %2806 }
 0x6f2   :  { %v2007_v31 = vmul.f32 %v2807_v10, %v5276_v14  ;;  %v1930_v59 = vpop.xlane.xlu2 %1929  ;;  %v2809_v17 = vpop.eup %2808 }
 0x6f3   :  { %2810 = vrcp.f32 %v1930_v59  ;;  %v1529_v12 = vmul.f32 %v2809_v17, %v4545_v4 }
 0x6f4   :  { %v2039_v3 = vsel %vm1185_vm2, %v1526_v34, %v2007_v31  ;;  %2812 = vrcp.f32 %v4778_v22 }
 0x6f5   :  { %v2167_v57 = vmul.f32 %v5277_v40, %v2039_v3 }
 0x6f7   :  { %v2328_v19 = vsel %vm2307_vm4, %v2167_v57, %v5278_v39 }
 0x6f8   :  { %2360 = vst.msk [vmem:[%s5036_s11 + $0xa0] sm:$0xff] %vm340_vm1, %v2328_v19 }
 0x6f9   :  { %v2811_v16 = vpop.eup %2810 }
 0x6fa   :  { %v2010_v24 = vmul.f32 %v2811_v16, %v4495_v44  ;;  %v1939_v15 = vpop.xlane.xlu2 %1938  ;;  %v2813_v5 = vpop.eup %2812 }
 0x6fb   :  { %2814 = vrcp.f32 %v1939_v15  ;;  %v1532_v4 = vmul.f32 %v2813_v5, %v4635_v61 }
 0x6fc   :  { %v2042_v21 = vsel %vm1185_vm2, %v1529_v12, %v2010_v24  ;;  %v1951_v22 = vpop.xlane.xlu1 %1950 }
 0x6fd   :  { %v2170_v48 = vmul.f32 %v5279_v11, %v2042_v21  ;;  %2816 = vrcp.f32 %v1951_v22 }
 0x6fe   :  { %2818 = vrcp.f32 %v4822_v62 }
 0x6ff   :  { %v2331_v9 = vsel %vm2307_vm4, %v2170_v48, %v5280_v7  ;;  %2820 = vrcp.f32 %v4842_v52 }
 0x700   :  { %2363 = vst.msk [vmem:[%s5036_s11 + $0xb8] sm:$0xff] %vm340_vm1, %v2331_v9 }
 0x701   :  { %v2815_v41 = vpop.eup %2814 }
 0x702   :  { %v2013_v44 = vmul.f32 %v2815_v41, %v4584_v18  ;;  %v1948_v49 = vpop.xlane.xlu2 %1947 }
 0x703   :  { %v2817_v28 = vpop.eup %2816 }
 0x704   :  { %v2045_v13 = vsel %vm1185_vm2, %v1532_v4, %v2013_v44  ;;  %v2819_v1 = vpop.eup %2818  ;;  %v2017_v61 = vmul.f32 %v2817_v28, %v4681_v45 }
 0x705   :  { %v2173_v50 = vmul.f32 %v5281_v8, %v2045_v13  ;;  %v1536_v18 = vmul.f32 %v2819_v1, %v4708_v54  ;;  %v2821_v45 = vpop.eup %2820 }
 0x706   :  { %v1537_v27 = vmul.f32 %v2821_v45, %v4743_v55 }
 0x707   :  { %v2334_v35 = vsel %vm2307_vm4, %v2173_v50, %v5282_v26  ;;  %v2049_v51 = vsel %vm1185_vm2, %v1536_v18, %v2017_v61 }
 0x708   :  { %2366 = vst.msk [vmem:[%s5036_s11 + $0xd0] sm:$0xff] %vm340_vm1, %v2334_v35  ;;  %v2177_v62 = vmul.f32 %v5283_v20, %v2049_v51 }
 0x70a   :  { %v2274_v60 = vpop.permute.xlu2 %2273 }
 0x714   :  { %v2272_v63 = vpop.permute.xlu1 %2271 }
 0x715   :  { %v2338_v47 = vsel %vm2307_vm4, %v2177_v62, %v2272_v63 }
 0x716   :  { %2370 = vst.msk [vmem:[%s5036_s11 + $0xf0] sm:$0xff] %vm340_vm1, %v2338_v47 }
 0x71e   :  { %v1954_v38 = vpop.xlane.xlu0 %1953 }
 0x71f   :  { %2822 = vrcp.f32 %v1954_v38 }
 0x720   :  { %2824 = vrcp.f32 %v1948_v49 }
 0x721   :  { %2826 = vrcp.f32 %v4835_v29 }
 0x725   :  { %v2823_v54 = vpop.eup %2822 }
 0x726   :  { %v2825_v2 = vpop.eup %2824  ;;  %v2018_v33 = vmul.f32 %v2823_v54, %v4745_v30  ;;  %v5285_v30 = vld [vmem:[#allocation41_spill] sm:$0xff] }
 0x727   :  { %v2827_v56 = vpop.eup %2826  ;;  %v2016_v25 = vmul.f32 %v2825_v2, %v4671_v0 }
 0x728   :  { %v2050_v53 = vsel %vm1185_vm2, %v1537_v27, %v2018_v33  ;;  %v1535_v46 = vmul.f32 %v2827_v56, %v4731_v32 }
 0x729   :  { %v2178_v52 = vmul.f32 %v5284_v37, %v2050_v53 }
 0x72a   :  { %v2048_v55 = vsel %vm1185_vm2, %v1535_v46, %v2016_v25 }
 0x72b   :  { %v2339_v58 = vsel %vm2307_vm4, %v2178_v52, %v2274_v60  ;;  %v2176_v29 = vmul.f32 %v5285_v30, %v2048_v55 }
 0x72c   :  { %2371 = vst.msk [vmem:[%s5036_s11 + $0xf8] sm:$0xff] %vm340_vm1, %v2339_v58 }
 0x731   :  { %v2270_v36 = vpop.permute.xlu0 %2269 }
 0x732   :  { %v2337_v42 = vsel %vm2307_vm4, %v2176_v29, %v2270_v36 }
 0x733   :  { %2369 = vst.msk [vmem:[%s5036_s11 + $0xe8] sm:$0xff] %vm340_vm1, %v2337_v42 }

</bundles_post_ra>
